<compile_context>
chip_gen: v6e
topology: v6e:2x2x1
jax: 0.10.0
libtpu: 0.0.40
codegen_flags: <defaults>
</compile_context>

<pallas_src>
import functools

import jax
import jax.numpy as jnp
from jax.experimental import pallas as pl
from jax.experimental.pallas import tpu as pltpu

FEAT = 512
MAX_BLOCK_B = 256  # rows per batch tile (MXU-friendly, tiny VMEM footprint)


def _mlp3_kernel(x_ref, w1_ref, b1_ref, w2_ref, b2_ref, w3_ref, b3_ref, o_ref):
    # Fused 3-layer MLP on one batch tile: all three MXU matmuls + bias adds
    # happen in-kernel while the tile (and the resident weights) sit in VMEM.
    h = jnp.dot(x_ref[...], w1_ref[...], preferred_element_type=jnp.float32)
    h = h + b1_ref[...]
    h = jnp.dot(h, w2_ref[...], preferred_element_type=jnp.float32)
    h = h + b2_ref[...]
    h = jnp.dot(h, w3_ref[...], preferred_element_type=jnp.float32)
    h = h + b3_ref[...]
    o_ref[...] = h.astype(o_ref.dtype)


def _default_block_b(total_b):
    """Largest multiple-of-8 tile <= MAX_BLOCK_B dividing total_b, with >=2 steps."""
    if total_b < 8 or total_b % 8 != 0:
        # Fall back to a single full-extent tile (always a legal block shape).
        return total_b
    best = 8
    for cand in range(8, min(MAX_BLOCK_B, total_b) + 1, 8):
        if total_b % cand == 0:
            best = cand
    # Prefer at least 2 grid steps so v7x's two TensorCores both get work.
    if best == total_b and total_b >= 16 and (total_b // 2) % 8 == 0:
        best = total_b // 2
    return best


@functools.partial(jax.jit, static_argnames=("block_b", "single_buffer_weights"))
def _siamese_mlp(x, w1t, b1, w2t, b2, w3t, b3, *, block_b, single_buffer_weights):
    """Apply the shared 3-layer MLP to a stacked (rows, 512) activation slab."""
    total_b, f = x.shape
    assert f == FEAT
    assert total_b % block_b == 0

    grid = (total_b // block_b,)

    # Weights/biases have a constant block index across the grid — keep them
    # resident and single-buffered (no need for a second pipeline buffer).
    wb_kwargs = {}
    if single_buffer_weights and hasattr(pl, "Buffered"):
        wb_kwargs = dict(pipeline_mode=pl.Buffered(1))

    w_spec = pl.BlockSpec((FEAT, FEAT), lambda i: (0, 0), **wb_kwargs)
    b_spec = pl.BlockSpec((1, FEAT), lambda i: (0, 0), **wb_kwargs)
    x_spec = pl.BlockSpec((block_b, FEAT), lambda i: (i, 0))

    return pl.pallas_call(
        _mlp3_kernel,
        out_shape=jax.ShapeDtypeStruct((total_b, FEAT), x.dtype),
        grid_spec=pltpu.PrefetchScalarGridSpec(
            num_scalar_prefetch=0,
            grid=grid,
            in_specs=[
                x_spec,           # stacked activation tile
                w_spec, b_spec,   # layer 1
                w_spec, b_spec,   # layer 2
                w_spec, b_spec,   # layer 3
            ],
            out_specs=pl.BlockSpec((block_b, FEAT), lambda i: (i, 0)),
        ),
        compiler_params=pltpu.CompilerParams(
            dimension_semantics=("parallel",),
        ),
    )(x, w1t, b1, w2t, b2, w3t, b3)


def siamese_forward(x1, x2, params, block_b=None):
    """Matches Siamese.forward: the same weights applied to both inputs.

    The two branches are fused into a single kernel launch by stacking the
    inputs along the batch axis.
    """
    w1t, b1, w2t, b2, w3t, b3 = params
    n1 = x1.shape[0]
    x = jnp.concatenate([x1, x2], axis=0)
    if block_b is None:
        block_b = _default_block_b(x.shape[0])
    try:
        out = _siamese_mlp(
            x, w1t, b1, w2t, b2, w3t, b3,
            block_b=block_b, single_buffer_weights=True,
        )
    except Exception:
        # Fallback in case single-buffered pipeline_mode is unsupported.
        out = _siamese_mlp(
            x, w1t, b1, w2t, b2, w3t, b3,
            block_b=block_b, single_buffer_weights=False,
        )
    return out[:n1], out[n1:]


def init_params(key):
    """Deterministic synthetic init for 3 x nn.Linear(512, 512)."""
    keys = jax.random.split(key, 6)
    scale = 1.0 / jnp.sqrt(jnp.float32(FEAT))
    params = []
    for li in range(3):
        # Weight stored already transposed: (in, out), so y = x @ Wt + b.
        wt = jax.random.uniform(
            keys[2 * li], (FEAT, FEAT), jnp.float32, minval=-scale, maxval=scale
        )
        b = jax.random.uniform(
            keys[2 * li + 1], (1, FEAT), jnp.float32, minval=-scale, maxval=scale
        )
        params += [wt, b]
    return tuple(params)


def reference_forward(x1, x2, params):
    w1t, b1, w2t, b2, w3t, b3 = params

    def one(x):
        h = x @ w1t + b1
        h = h @ w2t + b2
        h = h @ w3t + b3
        return h

    return one(x1), one(x2)


if __name__ == "__main__":
    key = jax.random.PRNGKey(0)
    kp, k1, k2 = jax.random.split(key, 3)

    params = init_params(kp)

    B = 8  # small test batch; feature dim is fixed at 512 by the module
    x1 = jax.random.normal(k1, (B, FEAT), jnp.float32)
    x2 = jax.random.normal(k2, (B, FEAT), jnp.float32)

    out1, out2 = siamese_forward(x1, x2, params)
    out1, out2 = jax.block_until_ready((out1, out2))

    ref1, ref2 = reference_forward(x1, x2, params)
    assert out1.shape == (B, FEAT) and out2.shape == (B, FEAT)
    assert jnp.allclose(out1, ref1, atol=1e-4, rtol=1e-4)
    assert jnp.allclose(out2, ref2, atol=1e-4, rtol=1e-4)

    print("KERNEL_OK")
</pallas_src>

<mosaic_0001>
module attributes {stable_mosaic.version = 11 : i64} {
  func.func @_mlp3_kernel(%arg0: i32, %arg1: memref<8x512xf32, #tpu.memory_space<vmem>>, %arg2: memref<512x512xf32, #tpu.memory_space<vmem>>, %arg3: memref<1x512xf32, #tpu.memory_space<vmem>>, %arg4: memref<512x512xf32, #tpu.memory_space<vmem>>, %arg5: memref<1x512xf32, #tpu.memory_space<vmem>>, %arg6: memref<512x512xf32, #tpu.memory_space<vmem>>, %arg7: memref<1x512xf32, #tpu.memory_space<vmem>>, %arg8: memref<8x512xf32, #tpu.memory_space<vmem>>) attributes {dimension_semantics = [#tpu.dimension_semantics<parallel>], iteration_bounds = array<i64: 2>, scalar_prefetch = 0 : i64, scratch_operands = 0 : i64, tpu.core_type = #tpu.core_type<tc>, window_params = [{transform_indices = @transform_0, window_bounds = array<i64: 8, 512>}, {pipeline_mode = #tpu.pipeline_mode<synchronous>, transform_indices = @transform_1, window_bounds = array<i64: 512, 512>}, {pipeline_mode = #tpu.pipeline_mode<synchronous>, transform_indices = @transform_2, window_bounds = array<i64: 1, 512>}, {pipeline_mode = #tpu.pipeline_mode<synchronous>, transform_indices = @transform_3, window_bounds = array<i64: 512, 512>}, {pipeline_mode = #tpu.pipeline_mode<synchronous>, transform_indices = @transform_4, window_bounds = array<i64: 1, 512>}, {pipeline_mode = #tpu.pipeline_mode<synchronous>, transform_indices = @transform_5, window_bounds = array<i64: 512, 512>}, {pipeline_mode = #tpu.pipeline_mode<synchronous>, transform_indices = @transform_6, window_bounds = array<i64: 1, 512>}, {transform_indices = @transform_7, window_bounds = array<i64: 8, 512>}]} {
    %c0 = arith.constant 0 : index
    %c0_0 = arith.constant 0 : index
    %0 = vector.load %arg1[%c0, %c0_0] : memref<8x512xf32, #tpu.memory_space<vmem>>, vector<8x512xf32>
    %c0_1 = arith.constant 0 : index
    %c0_2 = arith.constant 0 : index
    %1 = vector.load %arg2[%c0_1, %c0_2] : memref<512x512xf32, #tpu.memory_space<vmem>>, vector<512x512xf32>
    %cst = arith.constant dense<0.000000e+00> : vector<8x512xf32>
    %2 = tpu.matmul %0, %1, %cst {dimension_numbers = #tpu.dot_dimension_numbers<[1], [0], [0], [1], [0, 0, 1, 1], [], []>} : vector<8x512xf32>, vector<512x512xf32>, vector<8x512xf32> -> vector<8x512xf32>
    %c0_3 = arith.constant 0 : index
    %c0_4 = arith.constant 0 : index
    %3 = vector.load %arg3[%c0_3, %c0_4] : memref<1x512xf32, #tpu.memory_space<vmem>>, vector<1x512xf32>
    %4 = vector.broadcast %3 : vector<1x512xf32> to vector<8x512xf32>
    %5 = arith.addf %2, %4 : vector<8x512xf32>
    %c0_5 = arith.constant 0 : index
    %c0_6 = arith.constant 0 : index
    %6 = vector.load %arg4[%c0_5, %c0_6] : memref<512x512xf32, #tpu.memory_space<vmem>>, vector<512x512xf32>
    %cst_7 = arith.constant dense<0.000000e+00> : vector<8x512xf32>
    %7 = tpu.matmul %5, %6, %cst_7 {dimension_numbers = #tpu.dot_dimension_numbers<[1], [0], [0], [1], [0, 0, 1, 1], [], []>} : vector<8x512xf32>, vector<512x512xf32>, vector<8x512xf32> -> vector<8x512xf32>
    %c0_8 = arith.constant 0 : index
    %c0_9 = arith.constant 0 : index
    %8 = vector.load %arg5[%c0_8, %c0_9] : memref<1x512xf32, #tpu.memory_space<vmem>>, vector<1x512xf32>
    %9 = vector.broadcast %8 : vector<1x512xf32> to vector<8x512xf32>
    %10 = arith.addf %7, %9 : vector<8x512xf32>
    %c0_10 = arith.constant 0 : index
    %c0_11 = arith.constant 0 : index
    %11 = vector.load %arg6[%c0_10, %c0_11] : memref<512x512xf32, #tpu.memory_space<vmem>>, vector<512x512xf32>
    %cst_12 = arith.constant dense<0.000000e+00> : vector<8x512xf32>
    %12 = tpu.matmul %10, %11, %cst_12 {dimension_numbers = #tpu.dot_dimension_numbers<[1], [0], [0], [1], [0, 0, 1, 1], [], []>} : vector<8x512xf32>, vector<512x512xf32>, vector<8x512xf32> -> vector<8x512xf32>
    %c0_13 = arith.constant 0 : index
    %c0_14 = arith.constant 0 : index
    %13 = vector.load %arg7[%c0_13, %c0_14] : memref<1x512xf32, #tpu.memory_space<vmem>>, vector<1x512xf32>
    %14 = vector.broadcast %13 : vector<1x512xf32> to vector<8x512xf32>
    %15 = arith.addf %12, %14 : vector<8x512xf32>
    %c0_15 = arith.constant 0 : index
    %c0_16 = arith.constant 0 : index
    %16 = vector.load %arg8[%c0_15, %c0_16] : memref<8x512xf32, #tpu.memory_space<vmem>>, vector<8x512xf32>
    tpu.vector_store %arg8[%c0_15, %c0_16], %15 {strides = array<i32>} : memref<8x512xf32, #tpu.memory_space<vmem>>, vector<8x512xf32>,
    return
  }
  func.func @transform_0(%arg0: i32) -> (i32, i32) {
    %c0_i32 = arith.constant 0 : i32
    %c0_i32_0 = arith.constant 0 : i32
    return %arg0, %c0_i32 : i32, i32
  }
  func.func @transform_1(%arg0: i32) -> (i32, i32) {
    %c0_i32 = arith.constant 0 : i32
    %c0_i32_0 = arith.constant 0 : i32
    %c0_i32_1 = arith.constant 0 : i32
    return %c0_i32, %c0_i32_0 : i32, i32
  }
  func.func @transform_2(%arg0: i32) -> (i32, i32) {
    %c0_i32 = arith.constant 0 : i32
    %c0_i32_0 = arith.constant 0 : i32
    %c0_i32_1 = arith.constant 0 : i32
    return %c0_i32, %c0_i32_0 : i32, i32
  }
  func.func @transform_3(%arg0: i32) -> (i32, i32) {
    %c0_i32 = arith.constant 0 : i32
    %c0_i32_0 = arith.constant 0 : i32
    %c0_i32_1 = arith.constant 0 : i32
    return %c0_i32, %c0_i32_0 : i32, i32
  }
  func.func @transform_4(%arg0: i32) -> (i32, i32) {
    %c0_i32 = arith.constant 0 : i32
    %c0_i32_0 = arith.constant 0 : i32
    %c0_i32_1 = arith.constant 0 : i32
    return %c0_i32, %c0_i32_0 : i32, i32
  }
  func.func @transform_5(%arg0: i32) -> (i32, i32) {
    %c0_i32 = arith.constant 0 : i32
    %c0_i32_0 = arith.constant 0 : i32
    %c0_i32_1 = arith.constant 0 : i32
    return %c0_i32, %c0_i32_0 : i32, i32
  }
  func.func @transform_6(%arg0: i32) -> (i32, i32) {
    %c0_i32 = arith.constant 0 : i32
    %c0_i32_0 = arith.constant 0 : i32
    %c0_i32_1 = arith.constant 0 : i32
    return %c0_i32, %c0_i32_0 : i32, i32
  }
  func.func @transform_7(%arg0: i32) -> (i32, i32) {
    %c0_i32 = arith.constant 0 : i32
    %c0_i32_0 = arith.constant 0 : i32
    return %arg0, %c0_i32 : i32, i32
  }
}

module attributes {stable_mosaic.version = 11 : i64} {
  func.func @_mlp3_kernel(%arg0: i32, %arg1: memref<8x512xf32, #tpu.memory_space<vmem>>, %arg2: memref<512x512xf32, #tpu.memory_space<vmem>>, %arg3: memref<1x512xf32, #tpu.memory_space<vmem>>, %arg4: memref<512x512xf32, #tpu.memory_space<vmem>>, %arg5: memref<1x512xf32, #tpu.memory_space<vmem>>, %arg6: memref<512x512xf32, #tpu.memory_space<vmem>>, %arg7: memref<1x512xf32, #tpu.memory_space<vmem>>, %arg8: memref<8x512xf32, #tpu.memory_space<vmem>>) attributes {dimension_semantics = [#tpu.dimension_semantics<parallel>], iteration_bounds = array<i64: 2>, scalar_prefetch = 0 : i64, scratch_operands = 0 : i64, tpu.core_type = #tpu.core_type<tc>, window_params = [{transform_indices = @transform_0, window_bounds = array<i64: 8, 512>}, {pipeline_mode = #tpu.pipeline_mode<synchronous>, transform_indices = @transform_1, window_bounds = array<i64: 512, 512>}, {pipeline_mode = #tpu.pipeline_mode<synchronous>, transform_indices = @transform_2, window_bounds = array<i64: 1, 512>}, {pipeline_mode = #tpu.pipeline_mode<synchronous>, transform_indices = @transform_3, window_bounds = array<i64: 512, 512>}, {pipeline_mode = #tpu.pipeline_mode<synchronous>, transform_indices = @transform_4, window_bounds = array<i64: 1, 512>}, {pipeline_mode = #tpu.pipeline_mode<synchronous>, transform_indices = @transform_5, window_bounds = array<i64: 512, 512>}, {pipeline_mode = #tpu.pipeline_mode<synchronous>, transform_indices = @transform_6, window_bounds = array<i64: 1, 512>}, {transform_indices = @transform_7, window_bounds = array<i64: 8, 512>}]} {
    %c0 = arith.constant 0 : index
    %c0_0 = arith.constant 0 : index
    %0 = vector.load %arg1[%c0, %c0_0] : memref<8x512xf32, #tpu.memory_space<vmem>>, vector<8x512xf32>
    %c0_1 = arith.constant 0 : index
    %c0_2 = arith.constant 0 : index
    %1 = vector.load %arg2[%c0_1, %c0_2] : memref<512x512xf32, #tpu.memory_space<vmem>>, vector<512x512xf32>
    %cst = arith.constant dense<0.000000e+00> : vector<8x512xf32>
    %2 = tpu.matmul %0, %1, %cst {dimension_numbers = #tpu.dot_dimension_numbers<[1], [0], [0], [1], [0, 0, 1, 1], [], []>} : vector<8x512xf32>, vector<512x512xf32>, vector<8x512xf32> -> vector<8x512xf32>
    %c0_3 = arith.constant 0 : index
    %c0_4 = arith.constant 0 : index
    %3 = vector.load %arg3[%c0_3, %c0_4] : memref<1x512xf32, #tpu.memory_space<vmem>>, vector<1x512xf32>
    %4 = vector.broadcast %3 : vector<1x512xf32> to vector<8x512xf32>
    %5 = arith.addf %2, %4 : vector<8x512xf32>
    %c0_5 = arith.constant 0 : index
    %c0_6 = arith.constant 0 : index
    %6 = vector.load %arg4[%c0_5, %c0_6] : memref<512x512xf32, #tpu.memory_space<vmem>>, vector<512x512xf32>
    %cst_7 = arith.constant dense<0.000000e+00> : vector<8x512xf32>
    %7 = tpu.matmul %5, %6, %cst_7 {dimension_numbers = #tpu.dot_dimension_numbers<[1], [0], [0], [1], [0, 0, 1, 1], [], []>} : vector<8x512xf32>, vector<512x512xf32>, vector<8x512xf32> -> vector<8x512xf32>
    %c0_8 = arith.constant 0 : index
    %c0_9 = arith.constant 0 : index
    %8 = vector.load %arg5[%c0_8, %c0_9] : memref<1x512xf32, #tpu.memory_space<vmem>>, vector<1x512xf32>
    %9 = vector.broadcast %8 : vector<1x512xf32> to vector<8x512xf32>
    %10 = arith.addf %7, %9 : vector<8x512xf32>
    %c0_10 = arith.constant 0 : index
    %c0_11 = arith.constant 0 : index
    %11 = vector.load %arg6[%c0_10, %c0_11] : memref<512x512xf32, #tpu.memory_space<vmem>>, vector<512x512xf32>
    %cst_12 = arith.constant dense<0.000000e+00> : vector<8x512xf32>
    %12 = tpu.matmul %10, %11, %cst_12 {dimension_numbers = #tpu.dot_dimension_numbers<[1], [0], [0], [1], [0, 0, 1, 1], [], []>} : vector<8x512xf32>, vector<512x512xf32>, vector<8x512xf32> -> vector<8x512xf32>
    %c0_13 = arith.constant 0 : index
    %c0_14 = arith.constant 0 : index
    %13 = vector.load %arg7[%c0_13, %c0_14] : memref<1x512xf32, #tpu.memory_space<vmem>>, vector<1x512xf32>
    %14 = vector.broadcast %13 : vector<1x512xf32> to vector<8x512xf32>
    %15 = arith.addf %12, %14 : vector<8x512xf32>
    %c0_15 = arith.constant 0 : index
    %c0_16 = arith.constant 0 : index
    %16 = vector.load %arg8[%c0_15, %c0_16] : memref<8x512xf32, #tpu.memory_space<vmem>>, vector<8x512xf32>
    tpu.vector_store %arg8[%c0_15, %c0_16], %15 {strides = array<i32>} : memref<8x512xf32, #tpu.memory_space<vmem>>, vector<8x512xf32>,
    return
  }
  func.func @transform_0(%arg0: i32) -> (i32, i32) {
    %c0_i32 = arith.constant 0 : i32
    %c0_i32_0 = arith.constant 0 : i32
    return %arg0, %c0_i32 : i32, i32
  }
  func.func @transform_1(%arg0: i32) -> (i32, i32) {
    %c0_i32 = arith.constant 0 : i32
    %c0_i32_0 = arith.constant 0 : i32
    %c0_i32_1 = arith.constant 0 : i32
    return %c0_i32, %c0_i32_0 : i32, i32
  }
  func.func @transform_2(%arg0: i32) -> (i32, i32) {
    %c0_i32 = arith.constant 0 : i32
    %c0_i32_0 = arith.constant 0 : i32
    %c0_i32_1 = arith.constant 0 : i32
    return %c0_i32, %c0_i32_0 : i32, i32
  }
  func.func @transform_3(%arg0: i32) -> (i32, i32) {
    %c0_i32 = arith.constant 0 : i32
    %c0_i32_0 = arith.constant 0 : i32
    %c0_i32_1 = arith.constant 0 : i32
    return %c0_i32, %c0_i32_0 : i32, i32
  }
  func.func @transform_4(%arg0: i32) -> (i32, i32) {
    %c0_i32 = arith.constant 0 : i32
    %c0_i32_0 = arith.constant 0 : i32
    %c0_i32_1 = arith.constant 0 : i32
    return %c0_i32, %c0_i32_0 : i32, i32
  }
  func.func @transform_5(%arg0: i32) -> (i32, i32) {
    %c0_i32 = arith.constant 0 : i32
    %c0_i32_0 = arith.constant 0 : i32
    %c0_i32_1 = arith.constant 0 : i32
    return %c0_i32, %c0_i32_0 : i32, i32
  }
  func.func @transform_6(%arg0: i32) -> (i32, i32) {
    %c0_i32 = arith.constant 0 : i32
    %c0_i32_0 = arith.constant 0 : i32
    %c0_i32_1 = arith.constant 0 : i32
    return %c0_i32, %c0_i32_0 : i32, i32
  }
  func.func @transform_7(%arg0: i32) -> (i32, i32) {
    %c0_i32 = arith.constant 0 : i32
    %c0_i32_0 = arith.constant 0 : i32
    return %arg0, %c0_i32 : i32, i32
  }
}

</mosaic_0001>

<bundles_post_ra>
// kernel: _siamese_mlp.1
= control target key start
LH: loop header
LB: loop body
LE: loop exit
PB: predicated region body
PF: predicated region fallthrough
CT: control target
= control target key end

     0   :  { %s2833_s0 = inlined_call_operand.hbm [shape: f32[16,512], index: 0, kind: input, shape index: {}]   ;;  %s2834_s1 = inlined_call_operand.hbm [shape: f32[512,512], index: 1, kind: input, shape index: {}]   ;;  %s2835_s2 = inlined_call_operand.hbm [shape: f32[1,512], index: 2, kind: input, shape index: {}]   ;;  %s2836_s3 = inlined_call_operand.hbm [shape: f32[512,512], index: 3, kind: input, shape index: {}]   ;;  %s2837_s4 = inlined_call_operand.vmem [shape: f32[1,512], index: 4, kind: input, shape index: {}]   ;;  %s2838_s5 = inlined_call_operand.hbm [shape: f32[512,512], index: 5, kind: input, shape index: {}]   ;;  %s2839_s6 = inlined_call_operand.vmem [shape: f32[1,512], index: 6, kind: input, shape index: {}]   ;;  %s2840_s7 = inlined_call_operand.hbm [shape: f32[16,512], index: 7, kind: output, shape index: {}]  }
   0x1   :  { %2845 = sst [smem:[#allocation16_spill]] %s2834_s1 }
   0x2   :  { %2846 = sst [smem:[#allocation17_spill]] %s2835_s2 }
   0x3   :  { %12 = vsyncpa [#allocation3], 0 }
   0x4   :  { %14 = vsyncpa [#allocation3 + $0x1], 0 }
   0x5   :  { %15 = vsyncpa [#allocation6], 0 }
   0x6   :  { %16 = vsyncpa [#allocation9], 0 }
   0x7   :  { %17 = vsyncpa [#allocation4], 0 }
   0x8   :  { %19 = vsyncpa [#allocation4 + $0x1], 0  ;;  %s2535_s24 = smov 0   ;;  %s2537_s25 = smov 0  }
   0x9   :  { %s2539_s26 = smov 0   ;;  %s2541_s27 = smov 0  }
   0xa LB: > { %s2487_s28 = smov [#allocation5]   ;;  %s2556_s30 = sadd.s32 4294967295, %s2485_s27   ;;  %s2485_s27 = sphi %s2541_s27, %s2868_s27   ;;  %s2481_s26 = sphi %s2539_s26, %s2867_s26   ;;  %s2477_s25 = sphi %s2537_s25, %s2866_s25   ;;  %s2473_s24 = sphi %s2535_s24, %s2865_s24  }
   0xb   : > { %s220_s29 = sshll.u32 %s2487_s28, 4  ;;  %p2169_p0 = scmp.ge.s32.totalorder %s2485_s27, 1  ;;  %s221_s29 = int_to_ptr.vmem [resolvable:$true] %s220_s29 }
   0xc   : > { %p2841_p1 = scmp.eq.s32.totalorder %s2556_s30, 0  ;;  %p208_p2 = scmp.lt.s32.totalorder %s2485_s27, 3 }
   0xd   : > { %s2488_s9 = smov [#allocation8]   ;;  %s2489_s12 = smov [#allocation7]  }
   0xe   : > { %p2561_p3 = pnand %p2169_p0, %p208_p2  ;;  %s244_s10 = sshll.u32 %s2488_s9, 4  ;;  %s2574_s10 = int_to_ptr.vmem [resolvable:$true] %s244_s10 }
   0xf   : > { %s234_s13 = sshll.u32 %s2489_s12, 4  ;;  %s2292_s14 = scalar_lea.vmem %s221_s29, 32768  ;;  %s2576_s13 = int_to_ptr.vmem [resolvable:$true] %s234_s13 }
  0x10   : > { %s2847_s8 = scalar_select %p2561_p3, 1, 0 }
  0x11   : > { %p2212_p5 = pneg %p2561_p3  ;;  %p2293_p8 = scmp.ne.s32.totalorder %s221_s29, %s2292_s14 }
  0x12   : > { %p2300_p11 = scmp.lt.s32.totalorder %s221_s29, %s221_s29  ;;  %p2301_p12 = scmp.lt.s32.totalorder %s2292_s14, %s2292_s14 }
  0x13   : > { %p2570_p6 = pnand %p2212_p5, %p2841_p1 }
  0x14   : > { %p2302_p13 = por %p2301_p12, %p2300_p11 }
  0x15   : > { %p2283_p7 = pneg %p2570_p6 }
  0x17   : > { %p2295_p9 = pnand %p2293_p8, %p2283_p7 }
  0x19   : > { %p2296_p10 = pneg %p2295_p9 }
  0x1b   : > { %p2303_p0 = pnand %p2302_p13, %p2296_p10 }
  0x1d   : > { %2306 = shalt.err (!%p2303_p0)
}
  0x1e   : > { %s2490_s15 = smov 512   ;;  %s2491_s16 = smov 32  }
  0x1f   : > { %s2849_s1 = sld [smem:[#allocation16_spill]]  ;;  %s2318_s19 = scalar_lea.vmem %s2574_s10, 32768 }
  0x20   : > { %p2319_p2 = scmp.ne.s32.totalorder %s2574_s10, %s2318_s19  ;;  %p2326_p9 = scmp.lt.s32.totalorder %s2574_s10, %s2574_s10 }
  0x21   : > { %p2327_p10 = scmp.lt.s32.totalorder %s2318_s19, %s2318_s19 }
  0x22   : > { %p2321_p5 = pnand %p2319_p2, %p2283_p7 }
  0x23   : > { %p2328_p11 = por %p2327_p10, %p2326_p9 }
  0x24   : > { %p2322_p8 = pneg %p2321_p5 }
  0x25   : > { %2215 = dma.hbm_to_vmem [thread:$0]  (!%p2570_p6), %s2849_s1, 32768, %s221_s29, [#allocation6], %s2490_s15, %s2490_s15, %s2491_s16  }
  0x26   : > { %p2329_p12 = pnand %p2328_p11, %p2322_p8 }
  0x28   : > { %2332 = shalt.err (!%p2329_p12)
}
  0x29   : > { %2221 = dma.hbm_to_vmem [thread:$0]  (!%p2570_p6), %s2836_s3, 32768, %s2574_s10, [#allocation9], %s2490_s15, %s2490_s15, %s2491_s16  }
  0x2a   : > { %s2344_s22 = scalar_lea.vmem %s2576_s13, 64  ;;  %p2352_p5 = scmp.lt.s32.totalorder %s2576_s13, %s2576_s13 }
  0x2b   : > { %p2345_p13 = scmp.ne.s32.totalorder %s2576_s13, %s2344_s22  ;;  %p2353_p8 = scmp.lt.s32.totalorder %s2344_s22, %s2344_s22 }
  0x2d   : > { %p2347_p0 = pnand %p2345_p13, %p2283_p7  ;;  %p2354_p9 = por %p2353_p8, %p2352_p5 }
  0x2f   : > { %p2348_p2 = pneg %p2347_p0 }
  0x31   : > { %p2355_p10 = pnand %p2354_p9, %p2348_p2 }
  0x33   : > { %2358 = shalt.err (!%p2355_p10)
}
  0x34   : > { %s2850_s2 = sld [smem:[#allocation17_spill]]  ;;  %s2492_s29 = smov [#allocation10]  }
  0x35   : > { %s260_s9 = sshll.u32 %s2492_s29, 4  ;;  %s261_s9 = int_to_ptr.vmem [resolvable:$true] %s260_s9 }
  0x36   : > { %s2370_s10 = scalar_lea.vmem %s261_s9, 32768  ;;  %p2378_p0 = scmp.lt.s32.totalorder %s261_s9, %s261_s9 }
  0x37   : > { %p2371_p11 = scmp.ne.s32.totalorder %s261_s9, %s2370_s10  ;;  %p2379_p2 = scmp.lt.s32.totalorder %s2370_s10, %s2370_s10 }
  0x39   : > { %p2373_p12 = pnand %p2371_p11, %p2283_p7  ;;  %p2380_p5 = por %p2379_p2, %p2378_p0 }
  0x3a   : > { %2218 = dma.hbm_to_vmem [thread:$0]  (!%p2570_p6), %s2850_s2, 64, %s2576_s13, [#allocation6]  }
  0x3b   : > { %p2374_p13 = pneg %p2373_p12 }
  0x3d   : > { %p2381_p8 = pnand %p2380_p5, %p2374_p13 }
  0x3f   : > { %2384 = shalt.err (!%p2381_p8)
}
  0x40   : > { %2224 = dma.hbm_to_vmem [thread:$0]  (!%p2570_p6), %s2838_s5, 32768, %s261_s9, [#allocation9], %s2490_s15, %s2490_s15, %s2491_s16  }
  0x41   : > { %s2168_s11 = sadd.s32 4294967294, %s2485_s27   ;;  %s2633_s14 = sadd.s32 1, %s2485_s27  }
  0x42   : > { %s29_s17 = ssub.s32 %s2485_s27, %s2633_s14  ;;  %s32_s18 = sadd.s32 1, %s2481_s26 }
  0x43   : > { %p30_p7 = scmp.eq.s32.totalorder %s29_s17, 0  ;;  %p39_p9 = scmp.ne.s32.totalorder %s2481_s26, %s2477_s25 }
  0x44   : > { %p40_p10 = scmp.eq.s32.totalorder %s2485_s27, 0  ;;  %p45_p11 = scmp.ne.s32.totalorder %s2477_s25, %s2473_s24 }
  0x45   : > { %s2644_s19 = scalar_select %p30_p7, %s2481_s26, %s32_s18  }
  0x46   : > { %p2646_p12 = por %p40_p10, %p39_p9  ;;  %p2652_p6 = por %p2841_p1, %p45_p11 }
  0x47   : > { %p195_p13 = scmp.eq.s32.totalorder %s2556_s30, 1  ;;  %p201_p0 = scmp.eq.s32.totalorder %s2168_s11, 1 }
  0x48   : > { %s2852_s15 = scalar_select %p2652_p6, 1, 0 }
  0x49   : > { %p2237_p2 = scmp.lt.s32.totalorder %s2485_s27, 2  ;;  %s277_s16 = sand.u32 1, %s2481_s26  }
  0x4a   : > { %p2659_p5 = por %p195_p13, %p39_p9  ;;  %p2663_p8 = por %p201_p0, %p45_p11 }
  0x4b   : > { %s2175_s23 = sshll.u32 %s277_s16, 5  ;;  %s2190_s28 = sshll.u32 %s2485_s27, 9 }
  0x4c   : > { %s2853_s21 = scalar_select %p2659_p5, 1, 0 }
  0x4d   : > { %s2854_s22 = scalar_select %p2663_p8, 1, 0 }
  0x4e   : > { %s2671_s10 = scalar_lea.hbm %s2833_s0, %s2190_s28  ;;  %s281_s12 = scalar_lea.vmem [#allocation2], %s2175_s23 }
  0x4f   : > { %s289_s13 = sshll.u32 %s281_s12, 4  ;;  %p2675_p7 = pnand %p2237_p2, %p2646_p12  ;;  %s290_s13 = int_to_ptr.vmem [resolvable:$true] %s289_s13 }
  0x50   : > { %s278_s17 = scalar_lea.sflag [#allocation3], %s277_s16  ;;  %s2385_s18 = scalar_lea.hbm %s2671_s10, 512 }
  0x51   : > { %p2386_p9 = scmp.ne.s32.totalorder %s2671_s10, %s2385_s18  ;;  %p2387_p10 = pneg %p2675_p7 }
  0x52   : > { %s2390_s9 = scalar_lea.hbm %s2833_s0, 1024  ;;  %p2391_p0 = scmp.lt.s32.totalorder %s2671_s10, %s2833_s0 }
  0x53   : > { %p2388_p11 = pnand %p2387_p10, %p2386_p9  ;;  %p2392_p12 = scmp.lt.s32.totalorder %s2390_s9, %s2385_s18 }
  0x55   : > { %p2389_p13 = pneg %p2388_p11  ;;  %p2393_p2 = por %p2392_p12, %p2391_p0 }
  0x57   : > { %p2394_p4 = pnand %p2393_p2, %p2389_p13 }
  0x59   : > { %2397 = shalt.err (!%p2394_p4)
}
  0x5a   : > { %s2398_s20 = scalar_lea.vmem %s290_s13, 512  ;;  %s2493_s16 = smov [#allocation2]  }
  0x5b   : > { %p2399_p1 = scmp.ne.s32.totalorder %s290_s13, %s2398_s20  ;;  %s2403_s1 = sshll.u32 %s2493_s16, 4  ;;  %s2404_s1 = int_to_ptr.vmem [resolvable:$false] %s2403_s1 }
  0x5c   : > { %s2405_s2 = scalar_lea.vmem %s2404_s1, 1024  ;;  %p2406_p9 = scmp.lt.s32.totalorder %s290_s13, %s2404_s1 }
  0x5d   : > { %p2401_p8 = pnand %p2399_p1, %p2387_p10  ;;  %p2407_p11 = scmp.lt.s32.totalorder %s2405_s2, %s2398_s20 }
  0x5f   : > { %p2402_p5 = pneg %p2401_p8  ;;  %p2408_p6 = por %p2407_p11, %p2406_p9 }
  0x61   : > { %p2409_p3 = pnand %p2408_p6, %p2402_p5 }
  0x63   : > { %2412 = shalt.err (!%p2409_p3)
}
  0x64   : > { %2228 = dma.hbm_to_vmem [thread:$0]  (!%p2675_p7), %s2671_s10, 512, %s290_s13, %s278_s17  }
  0x65   : > { %p2856_p13 = scmp.ne.s32.totalorder %s2847_s8, 0 }
  0x66   : > { %s2696_s18 = sand.u32 (!%p2856_p13), 1, %s2477_s25   ;;  %p2857_p1 = scmp.ne.s32.totalorder (!%p2856_p13), %s2852_s15, 0 }
  0x67   : > { %298 = sbr.rel (%p2856_p13) target bundleno = 983 (0x3d7), region = 48  ;;  %s2179_s28 = sshll.u32 (!%p2856_p13), %s2696_s18, 5 }
  0x68   : > { %s301_s1 = scalar_lea.sflag (!%p2856_p13), [#allocation3], %s2696_s18  ;;  %s2702_s2 = scalar_lea.vmem (!%p2856_p13), [#allocation2], %s2179_s28 }
  0x6c   : > { %2456 = dma.done.wait (%p2857_p1), %s301_s1, 512  }
  0x6d   : > { %2458 = vsyncadd (%p2857_p1), %s301_s1, 4294966784  ;;  %p2858_p3 = scmp.eq.s32.totalorder %s2556_s30, 0 }
  0x6f   : > { %2460 = dma.done.wait (%p2858_p3), [#allocation6], 32832   ;;  %p2859_p4 = pmov %p2858_p3 }
  0x70   : > { %p2860_p6 = pmov %p2858_p3 }
  0x71   : > { %2462 = vsyncadd (%p2859_p4), [#allocation6], 4294934464 }
  0x72   : > { %2464 = dma.done.wait (%p2860_p6), [#allocation9], 65536   ;;  %p2861_p5 = pmov %p2858_p3 }
  0x73   : > { %v416_v0 = vld [vmem:[#allocation5 + $0x1e8] sm:$0xff]  ;;  %v415_v2 = vld [vmem:[#allocation5 + $0x1e0] sm:$0xff]  ;;  %s350_s11 = scalar_lea.vmem [#allocation11], %s2179_s28  ;;  %s2191_s17 = sshll.u32 %s2556_s30, 9 }
  0x74   : > { %2466 = vsyncadd (%p2861_p5), [#allocation9], 4294901760  ;;  %v544_v1 = vld [vmem:[#allocation5 + $0x5e8] sm:$0xff]  ;;  %633 = vmatprep.subr.mxu0 %v416_v0  ;;  %v543_v3 = vld [vmem:[#allocation5 + $0x5e0] sm:$0xff]  ;;  %s2060_s29 = sshll.u32 %s350_s11, 4  ;;  %s2058_s12 = scalar_lea.hbm %s2840_s7, %s2191_s17  ;;  %s2061_s29 = int_to_ptr.vmem [resolvable:$true] %s2060_s29 }
  0x75   : > { %704 = vmatprep.subr.mxu1 %v544_v1  ;;  %v412_v4 = vld [vmem:[#allocation5 + $0x1c8] sm:$0xff]  ;;  %634 = vmatpush1.msra.mxu0 %v415_v2  ;;  %v411_v6 = vld [vmem:[#allocation5 + $0x1c0] sm:$0xff]  ;;  %s2046_s20 = scalar_lea.sflag [#allocation4], %s2696_s18  ;;  %s2413_s16 = scalar_lea.vmem %s2061_s29, 512 }
  0x76   : > { %v540_v5 = vld [vmem:[#allocation5 + $0x5c8] sm:$0xff]  ;;  %705 = vmatpush1.msra.mxu1 %v543_v3  ;;  %v539_v7 = vld [vmem:[#allocation5 + $0x5c0] sm:$0xff]  ;;  %635 = vmatprep.subr.mxu0 %v412_v4  ;;  %p2414_p8 = scmp.ne.s32.totalorder %s2061_s29, %s2413_s16  ;;  %p2862_p7 = scmp.ne.s32.totalorder %s2853_s21, 0 }
  0x77   : > { %v408_v8 = vld [vmem:[#allocation5 + $0x1a8] sm:$0xff]  ;;  %706 = vmatprep.subr.mxu1 %v540_v5  ;;  %v407_v10 = vld [vmem:[#allocation5 + $0x1a0] sm:$0xff]  ;;  %636 = vmatpush1.msra.mxu0 %v411_v6  ;;  %s2494_s28 = smov [#allocation11]  }
  0x78   : > { %v536_v9 = vld [vmem:[#allocation5 + $0x5a8] sm:$0xff]  ;;  %v535_v11 = vld [vmem:[#allocation5 + $0x5a0] sm:$0xff]  ;;  %707 = vmatpush1.msra.mxu1 %v539_v7  ;;  %637 = vmatprep.subr.mxu0 %v408_v8  ;;  %p2415_p10 = pnand %p2414_p8, %p2862_p7  ;;  %s2417_s30 = sshll.u32 %s2494_s28, 4  ;;  %s2418_s30 = int_to_ptr.vmem [resolvable:$false] %s2417_s30 }
  0x79   : > { %v404_v12 = vld [vmem:[#allocation5 + $0x188] sm:$0xff]  ;;  %708 = vmatprep.subr.mxu1 %v536_v9  ;;  %v403_v14 = vld [vmem:[#allocation5 + $0x180] sm:$0xff]  ;;  %638 = vmatpush1.msra.mxu0 %v407_v10  ;;  %s2419_s1 = scalar_lea.vmem %s2418_s30, 1024  ;;  %p2420_p12 = scmp.lt.s32.totalorder %s2061_s29, %s2418_s30 }
  0x7a   : > { %v532_v13 = vld [vmem:[#allocation5 + $0x588] sm:$0xff]  ;;  %v531_v15 = vld [vmem:[#allocation5 + $0x580] sm:$0xff]  ;;  %709 = vmatpush1.msra.mxu1 %v535_v11  ;;  %639 = vmatprep.subr.mxu0 %v404_v12  ;;  %p2416_p0 = pneg %p2415_p10  ;;  %p2421_p2 = scmp.lt.s32.totalorder %s2419_s1, %s2413_s16 }
  0x7b   : > { %v400_v16 = vld [vmem:[#allocation5 + $0x168] sm:$0xff]  ;;  %710 = vmatprep.subr.mxu1 %v532_v13  ;;  %v399_v18 = vld [vmem:[#allocation5 + $0x160] sm:$0xff]  ;;  %640 = vmatpush1.msra.mxu0 %v403_v14 }
  0x7c   : > { %v528_v17 = vld [vmem:[#allocation5 + $0x568] sm:$0xff]  ;;  %v527_v19 = vld [vmem:[#allocation5 + $0x560] sm:$0xff]  ;;  %711 = vmatpush1.msra.mxu1 %v531_v15  ;;  %641 = vmatprep.subr.mxu0 %v400_v16  ;;  %p2422_p9 = por %p2421_p2, %p2420_p12 }
  0x7d   : > { %v396_v20 = vld [vmem:[#allocation5 + $0x148] sm:$0xff]  ;;  %712 = vmatprep.subr.mxu1 %v528_v17  ;;  %v395_v22 = vld [vmem:[#allocation5 + $0x140] sm:$0xff]  ;;  %642 = vmatpush1.msra.mxu0 %v399_v18 }
  0x7e   : > { %v524_v21 = vld [vmem:[#allocation5 + $0x548] sm:$0xff]  ;;  %v523_v23 = vld [vmem:[#allocation5 + $0x540] sm:$0xff]  ;;  %713 = vmatpush1.msra.mxu1 %v527_v19  ;;  %643 = vmatprep.subr.mxu0 %v396_v20  ;;  %p2423_p11 = pnand %p2422_p9, %p2416_p0 }
  0x7f   : > { %v392_v24 = vld [vmem:[#allocation5 + $0x128] sm:$0xff]  ;;  %714 = vmatprep.subr.mxu1 %v524_v21  ;;  %v391_v26 = vld [vmem:[#allocation5 + $0x120] sm:$0xff]  ;;  %644 = vmatpush1.msra.mxu0 %v395_v22 }
  0x80   : > { %v520_v25 = vld [vmem:[#allocation5 + $0x528] sm:$0xff]  ;;  %v519_v27 = vld [vmem:[#allocation5 + $0x520] sm:$0xff]  ;;  %715 = vmatpush1.msra.mxu1 %v523_v23  ;;  %645 = vmatprep.subr.mxu0 %v392_v24 }
  0x81   : > { %v388_v28 = vld [vmem:[#allocation5 + $0x108] sm:$0xff]  ;;  %716 = vmatprep.subr.mxu1 %v520_v25  ;;  %v387_v30 = vld [vmem:[#allocation5 + $0x100] sm:$0xff]  ;;  %646 = vmatpush1.msra.mxu0 %v391_v26 }
  0x82   : > { %v516_v29 = vld [vmem:[#allocation5 + $0x508] sm:$0xff]  ;;  %v515_v31 = vld [vmem:[#allocation5 + $0x500] sm:$0xff]  ;;  %717 = vmatpush1.msra.mxu1 %v519_v27  ;;  %647 = vmatprep.subr.mxu0 %v388_v28 }
  0x83   : > { %v384_v32 = vld [vmem:[#allocation5 + $0xe8] sm:$0xff]  ;;  %718 = vmatprep.subr.mxu1 %v516_v29  ;;  %v383_v34 = vld [vmem:[#allocation5 + $0xe0] sm:$0xff]  ;;  %648 = vmatpush1.msra.mxu0 %v387_v30 }
  0x84   : > { %v512_v33 = vld [vmem:[#allocation5 + $0x4e8] sm:$0xff]  ;;  %v511_v35 = vld [vmem:[#allocation5 + $0x4e0] sm:$0xff]  ;;  %719 = vmatpush1.msra.mxu1 %v515_v31  ;;  %649 = vmatprep.subr.mxu0 %v384_v32 }
  0x85   : > { %v380_v36 = vld [vmem:[#allocation5 + $0xc8] sm:$0xff]  ;;  %720 = vmatprep.subr.mxu1 %v512_v33  ;;  %v379_v38 = vld [vmem:[#allocation5 + $0xc0] sm:$0xff]  ;;  %650 = vmatpush1.msra.mxu0 %v383_v34 }
  0x86   : > { %v508_v37 = vld [vmem:[#allocation5 + $0x4c8] sm:$0xff]  ;;  %v507_v39 = vld [vmem:[#allocation5 + $0x4c0] sm:$0xff]  ;;  %721 = vmatpush1.msra.mxu1 %v511_v35  ;;  %651 = vmatprep.subr.mxu0 %v380_v36 }
  0x87   : > { %v376_v40 = vld [vmem:[#allocation5 + $0xa8] sm:$0xff]  ;;  %722 = vmatprep.subr.mxu1 %v508_v37  ;;  %v375_v42 = vld [vmem:[#allocation5 + $0xa0] sm:$0xff]  ;;  %652 = vmatpush1.msra.mxu0 %v379_v38 }
  0x88   : > { %v504_v41 = vld [vmem:[#allocation5 + $0x4a8] sm:$0xff]  ;;  %v503_v43 = vld [vmem:[#allocation5 + $0x4a0] sm:$0xff]  ;;  %723 = vmatpush1.msra.mxu1 %v507_v39  ;;  %653 = vmatprep.subr.mxu0 %v376_v40 }
  0x89   : > { %v372_v44 = vld [vmem:[#allocation5 + $0x88] sm:$0xff]  ;;  %724 = vmatprep.subr.mxu1 %v504_v41  ;;  %v371_v46 = vld [vmem:[#allocation5 + $0x80] sm:$0xff]  ;;  %654 = vmatpush1.msra.mxu0 %v375_v42 }
  0x8a   : > { %v500_v45 = vld [vmem:[#allocation5 + $0x488] sm:$0xff]  ;;  %v499_v47 = vld [vmem:[#allocation5 + $0x480] sm:$0xff]  ;;  %725 = vmatpush1.msra.mxu1 %v503_v43  ;;  %655 = vmatprep.subr.mxu0 %v372_v44 }
  0x8b   : > { %v368_v48 = vld [vmem:[#allocation5 + $0x68] sm:$0xff]  ;;  %726 = vmatprep.subr.mxu1 %v500_v45  ;;  %v367_v50 = vld [vmem:[#allocation5 + $0x60] sm:$0xff]  ;;  %656 = vmatpush1.msra.mxu0 %v371_v46 }
  0x8c   : > { %v496_v49 = vld [vmem:[#allocation5 + $0x468] sm:$0xff]  ;;  %v495_v51 = vld [vmem:[#allocation5 + $0x460] sm:$0xff]  ;;  %727 = vmatpush1.msra.mxu1 %v499_v47  ;;  %657 = vmatprep.subr.mxu0 %v368_v48 }
  0x8d   : > { %v364_v52 = vld [vmem:[#allocation5 + $0x48] sm:$0xff]  ;;  %728 = vmatprep.subr.mxu1 %v496_v49  ;;  %v363_v54 = vld [vmem:[#allocation5 + $0x40] sm:$0xff]  ;;  %658 = vmatpush1.msra.mxu0 %v367_v50 }
  0x8e   : > { %v492_v53 = vld [vmem:[#allocation5 + $0x448] sm:$0xff]  ;;  %v491_v55 = vld [vmem:[#allocation5 + $0x440] sm:$0xff]  ;;  %729 = vmatpush1.msra.mxu1 %v495_v51  ;;  %659 = vmatprep.subr.mxu0 %v364_v52 }
  0x8f   : > { %v360_v56 = vld [vmem:[#allocation5 + $0x28] sm:$0xff]  ;;  %730 = vmatprep.subr.mxu1 %v492_v53  ;;  %v359_v58 = vld [vmem:[#allocation5 + $0x20] sm:$0xff]  ;;  %660 = vmatpush1.msra.mxu0 %v363_v54 }
  0x90   : > { %v488_v57 = vld [vmem:[#allocation5 + $0x428] sm:$0xff]  ;;  %v487_v59 = vld [vmem:[#allocation5 + $0x420] sm:$0xff]  ;;  %731 = vmatpush1.msra.mxu1 %v491_v55  ;;  %661 = vmatprep.subr.mxu0 %v360_v56 }
  0x91   : > { %v356_v60 = vld [vmem:[#allocation5 + $0x8] sm:$0xff]  ;;  %732 = vmatprep.subr.mxu1 %v488_v57  ;;  %v355_v62 = vld [vmem:[#allocation5] sm:$0xff]  ;;  %662 = vmatpush1.msra.mxu0 %v359_v58 }
  0x92   : > { %v484_v61 = vld [vmem:[#allocation5 + $0x408] sm:$0xff]  ;;  %v483_v63 = vld [vmem:[#allocation5 + $0x400] sm:$0xff]  ;;  %733 = vmatpush1.msra.mxu1 %v487_v59  ;;  %663 = vmatprep.subr.mxu0 %v356_v60 }
  0x93   : > { %v480_v0 = vld [vmem:[#allocation5 + $0x3e8] sm:$0xff]  ;;  %734 = vmatprep.subr.mxu1 %v484_v61  ;;  %v479_v2 = vld [vmem:[#allocation5 + $0x3e0] sm:$0xff]  ;;  %664 = vmatpush1.msra.mxu0 %v355_v62 }
  0x94   : > { %v608_v1 = vld [vmem:[#allocation5 + $0x7e8] sm:$0xff]  ;;  %v607_v3 = vld [vmem:[#allocation5 + $0x7e0] sm:$0xff]  ;;  %735 = vmatpush1.msra.mxu1 %v483_v63  ;;  %665 = vmatprep.subr.mxu0 %v480_v0 }
  0x95   : > { %v476_v4 = vld [vmem:[#allocation5 + $0x3c8] sm:$0xff]  ;;  %736 = vmatprep.subr.mxu1 %v608_v1  ;;  %v475_v6 = vld [vmem:[#allocation5 + $0x3c0] sm:$0xff]  ;;  %666 = vmatpush2.msra.mxu0 %v479_v2  ;;  %v2723_v2 = vld [vmem:[%s2702_s2 + $0x18] sm:$0xff] }
  0x96   : > { %v604_v5 = vld [vmem:[#allocation5 + $0x7c8] sm:$0xff]  ;;  %v603_v7 = vld [vmem:[#allocation5 + $0x7c0] sm:$0xff]  ;;  %737 = vmatpush2.msra.mxu1 %v607_v3  ;;  %667 = vmatprep.subr.mxu0 %v476_v4  ;;  %v418_v3 = vld [vmem:[#allocation5 + $0x1f8] sm:$0xff] }
  0x97   : > { %v472_v8 = vld [vmem:[#allocation5 + $0x3a8] sm:$0xff]  ;;  %738 = vmatprep.subr.mxu1 %v604_v5  ;;  %v471_v10 = vld [vmem:[#allocation5 + $0x3a0] sm:$0xff]  ;;  %668 = vmatpush2.msra.mxu0 %v475_v6  ;;  %v546_v4 = vld [vmem:[#allocation5 + $0x5f8] sm:$0xff] }
  0x98   : > { %v600_v9 = vld [vmem:[#allocation5 + $0x7a8] sm:$0xff]  ;;  %v599_v11 = vld [vmem:[#allocation5 + $0x7a0] sm:$0xff]  ;;  %739 = vmatpush2.msra.mxu1 %v603_v7  ;;  %669 = vmatprep.subr.mxu0 %v472_v8  ;;  %v2727_v5 = vld [vmem:[%s2702_s2 + $0x10] sm:$0xff] }
  0x99   : > { %v468_v12 = vld [vmem:[#allocation5 + $0x388] sm:$0xff]  ;;  %740 = vmatprep.subr.mxu1 %v600_v9  ;;  %v467_v14 = vld [vmem:[#allocation5 + $0x380] sm:$0xff]  ;;  %670 = vmatpush2.msra.mxu0 %v471_v10  ;;  %v417_v6 = vld [vmem:[#allocation5 + $0x1f0] sm:$0xff] }
  0x9a   : > { %v596_v13 = vld [vmem:[#allocation5 + $0x788] sm:$0xff]  ;;  %v595_v15 = vld [vmem:[#allocation5 + $0x780] sm:$0xff]  ;;  %741 = vmatpush2.msra.mxu1 %v599_v11  ;;  %671 = vmatprep.subr.mxu0 %v468_v12  ;;  %v545_v7 = vld [vmem:[#allocation5 + $0x5f0] sm:$0xff] }
  0x9b   : > { %v464_v16 = vld [vmem:[#allocation5 + $0x368] sm:$0xff]  ;;  %742 = vmatprep.subr.mxu1 %v596_v13  ;;  %v463_v18 = vld [vmem:[#allocation5 + $0x360] sm:$0xff]  ;;  %672 = vmatpush2.msra.mxu0 %v467_v14  ;;  %v414_v8 = vld [vmem:[#allocation5 + $0x1d8] sm:$0xff] }
  0x9c   : > { %v592_v17 = vld [vmem:[#allocation5 + $0x768] sm:$0xff]  ;;  %v591_v19 = vld [vmem:[#allocation5 + $0x760] sm:$0xff]  ;;  %743 = vmatpush2.msra.mxu1 %v595_v15  ;;  %673 = vmatprep.subr.mxu0 %v464_v16  ;;  %v542_v9 = vld [vmem:[#allocation5 + $0x5d8] sm:$0xff] }
  0x9d   : > { %v460_v20 = vld [vmem:[#allocation5 + $0x348] sm:$0xff]  ;;  %744 = vmatprep.subr.mxu1 %v592_v17  ;;  %v459_v22 = vld [vmem:[#allocation5 + $0x340] sm:$0xff]  ;;  %674 = vmatpush2.msra.mxu0 %v463_v18  ;;  %v413_v10 = vld [vmem:[#allocation5 + $0x1d0] sm:$0xff] }
  0x9e   : > { %v588_v21 = vld [vmem:[#allocation5 + $0x748] sm:$0xff]  ;;  %v587_v23 = vld [vmem:[#allocation5 + $0x740] sm:$0xff]  ;;  %745 = vmatpush2.msra.mxu1 %v591_v19  ;;  %675 = vmatprep.subr.mxu0 %v460_v20  ;;  %v541_v11 = vld [vmem:[#allocation5 + $0x5d0] sm:$0xff] }
  0x9f   : > { %v456_v24 = vld [vmem:[#allocation5 + $0x328] sm:$0xff]  ;;  %746 = vmatprep.subr.mxu1 %v588_v21  ;;  %v455_v26 = vld [vmem:[#allocation5 + $0x320] sm:$0xff]  ;;  %676 = vmatpush2.msra.mxu0 %v459_v22  ;;  %v410_v12 = vld [vmem:[#allocation5 + $0x1b8] sm:$0xff] }
  0xa0   : > { %v584_v25 = vld [vmem:[#allocation5 + $0x728] sm:$0xff]  ;;  %v583_v27 = vld [vmem:[#allocation5 + $0x720] sm:$0xff]  ;;  %747 = vmatpush2.msra.mxu1 %v587_v23  ;;  %677 = vmatprep.subr.mxu0 %v456_v24  ;;  %v538_v13 = vld [vmem:[#allocation5 + $0x5b8] sm:$0xff] }
  0xa1   : > { %v452_v28 = vld [vmem:[#allocation5 + $0x308] sm:$0xff]  ;;  %748 = vmatprep.subr.mxu1 %v584_v25  ;;  %v451_v30 = vld [vmem:[#allocation5 + $0x300] sm:$0xff]  ;;  %678 = vmatpush2.msra.mxu0 %v455_v26  ;;  %v409_v14 = vld [vmem:[#allocation5 + $0x1b0] sm:$0xff] }
  0xa2   : > { %v580_v29 = vld [vmem:[#allocation5 + $0x708] sm:$0xff]  ;;  %v579_v31 = vld [vmem:[#allocation5 + $0x700] sm:$0xff]  ;;  %749 = vmatpush2.msra.mxu1 %v583_v27  ;;  %679 = vmatprep.subr.mxu0 %v452_v28  ;;  %v537_v15 = vld [vmem:[#allocation5 + $0x5b0] sm:$0xff] }
  0xa3   : > { %v448_v32 = vld [vmem:[#allocation5 + $0x2e8] sm:$0xff]  ;;  %750 = vmatprep.subr.mxu1 %v580_v29  ;;  %v447_v34 = vld [vmem:[#allocation5 + $0x2e0] sm:$0xff]  ;;  %680 = vmatpush2.msra.mxu0 %v451_v30  ;;  %v406_v16 = vld [vmem:[#allocation5 + $0x198] sm:$0xff] }
  0xa4   : > { %v576_v33 = vld [vmem:[#allocation5 + $0x6e8] sm:$0xff]  ;;  %v575_v35 = vld [vmem:[#allocation5 + $0x6e0] sm:$0xff]  ;;  %751 = vmatpush2.msra.mxu1 %v579_v31  ;;  %681 = vmatprep.subr.mxu0 %v448_v32  ;;  %v534_v17 = vld [vmem:[#allocation5 + $0x598] sm:$0xff] }
  0xa5   : > { %v444_v36 = vld [vmem:[#allocation5 + $0x2c8] sm:$0xff]  ;;  %752 = vmatprep.subr.mxu1 %v576_v33  ;;  %v443_v38 = vld [vmem:[#allocation5 + $0x2c0] sm:$0xff]  ;;  %682 = vmatpush2.msra.mxu0 %v447_v34  ;;  %v405_v18 = vld [vmem:[#allocation5 + $0x190] sm:$0xff] }
  0xa6   : > { %v572_v37 = vld [vmem:[#allocation5 + $0x6c8] sm:$0xff]  ;;  %v571_v39 = vld [vmem:[#allocation5 + $0x6c0] sm:$0xff]  ;;  %753 = vmatpush2.msra.mxu1 %v575_v35  ;;  %683 = vmatprep.subr.mxu0 %v444_v36  ;;  %v533_v19 = vld [vmem:[#allocation5 + $0x590] sm:$0xff] }
  0xa7   : > { %v440_v40 = vld [vmem:[#allocation5 + $0x2a8] sm:$0xff]  ;;  %754 = vmatprep.subr.mxu1 %v572_v37  ;;  %v439_v42 = vld [vmem:[#allocation5 + $0x2a0] sm:$0xff]  ;;  %684 = vmatpush2.msra.mxu0 %v443_v38  ;;  %v402_v20 = vld [vmem:[#allocation5 + $0x178] sm:$0xff] }
  0xa8   : > { %v568_v41 = vld [vmem:[#allocation5 + $0x6a8] sm:$0xff]  ;;  %v567_v43 = vld [vmem:[#allocation5 + $0x6a0] sm:$0xff]  ;;  %755 = vmatpush2.msra.mxu1 %v571_v39  ;;  %685 = vmatprep.subr.mxu0 %v440_v40  ;;  %v530_v21 = vld [vmem:[#allocation5 + $0x578] sm:$0xff] }
  0xa9   : > { %v436_v44 = vld [vmem:[#allocation5 + $0x288] sm:$0xff]  ;;  %756 = vmatprep.subr.mxu1 %v568_v41  ;;  %v435_v46 = vld [vmem:[#allocation5 + $0x280] sm:$0xff]  ;;  %686 = vmatpush2.msra.mxu0 %v439_v42  ;;  %v401_v22 = vld [vmem:[#allocation5 + $0x170] sm:$0xff] }
  0xaa   : > { %v564_v45 = vld [vmem:[#allocation5 + $0x688] sm:$0xff]  ;;  %v563_v47 = vld [vmem:[#allocation5 + $0x680] sm:$0xff]  ;;  %757 = vmatpush2.msra.mxu1 %v567_v43  ;;  %687 = vmatprep.subr.mxu0 %v436_v44  ;;  %v529_v23 = vld [vmem:[#allocation5 + $0x570] sm:$0xff] }
  0xab   : > { %v432_v48 = vld [vmem:[#allocation5 + $0x268] sm:$0xff]  ;;  %758 = vmatprep.subr.mxu1 %v564_v45  ;;  %v431_v50 = vld [vmem:[#allocation5 + $0x260] sm:$0xff]  ;;  %688 = vmatpush2.msra.mxu0 %v435_v46  ;;  %v398_v24 = vld [vmem:[#allocation5 + $0x158] sm:$0xff] }
  0xac   : > { %v560_v49 = vld [vmem:[#allocation5 + $0x668] sm:$0xff]  ;;  %v559_v51 = vld [vmem:[#allocation5 + $0x660] sm:$0xff]  ;;  %759 = vmatpush2.msra.mxu1 %v563_v47  ;;  %689 = vmatprep.subr.mxu0 %v432_v48  ;;  %v526_v25 = vld [vmem:[#allocation5 + $0x558] sm:$0xff] }
  0xad   : > { %v428_v52 = vld [vmem:[#allocation5 + $0x248] sm:$0xff]  ;;  %760 = vmatprep.subr.mxu1 %v560_v49  ;;  %v427_v54 = vld [vmem:[#allocation5 + $0x240] sm:$0xff]  ;;  %690 = vmatpush2.msra.mxu0 %v431_v50  ;;  %v397_v26 = vld [vmem:[#allocation5 + $0x150] sm:$0xff] }
  0xae   : > { %v556_v53 = vld [vmem:[#allocation5 + $0x648] sm:$0xff]  ;;  %v555_v55 = vld [vmem:[#allocation5 + $0x640] sm:$0xff]  ;;  %761 = vmatpush2.msra.mxu1 %v559_v51  ;;  %691 = vmatprep.subr.mxu0 %v428_v52  ;;  %v525_v27 = vld [vmem:[#allocation5 + $0x550] sm:$0xff] }
  0xaf   : > { %v424_v56 = vld [vmem:[#allocation5 + $0x228] sm:$0xff]  ;;  %762 = vmatprep.subr.mxu1 %v556_v53  ;;  %v423_v58 = vld [vmem:[#allocation5 + $0x220] sm:$0xff]  ;;  %692 = vmatpush2.msra.mxu0 %v427_v54  ;;  %v394_v28 = vld [vmem:[#allocation5 + $0x138] sm:$0xff] }
  0xb0   : > { %v552_v57 = vld [vmem:[#allocation5 + $0x628] sm:$0xff]  ;;  %v551_v59 = vld [vmem:[#allocation5 + $0x620] sm:$0xff]  ;;  %763 = vmatpush2.msra.mxu1 %v555_v55  ;;  %693 = vmatprep.subr.mxu0 %v424_v56  ;;  %v522_v29 = vld [vmem:[#allocation5 + $0x538] sm:$0xff] }
  0xb1   : > { %v420_v60 = vld [vmem:[#allocation5 + $0x208] sm:$0xff]  ;;  %764 = vmatprep.subr.mxu1 %v552_v57  ;;  %v419_v62 = vld [vmem:[#allocation5 + $0x200] sm:$0xff]  ;;  %694 = vmatpush2.msra.mxu0 %v423_v58  ;;  %v393_v30 = vld [vmem:[#allocation5 + $0x130] sm:$0xff] }
  0xb2   : > { %v548_v61 = vld [vmem:[#allocation5 + $0x608] sm:$0xff]  ;;  %765 = vmatpush2.msra.mxu1 %v551_v59  ;;  %v547_v0 = vld [vmem:[#allocation5 + $0x600] sm:$0xff]  ;;  %695 = vmatprep.subr.mxu0 %v420_v60  ;;  %v521_v31 = vld [vmem:[#allocation5 + $0x530] sm:$0xff] }
  0xb3   : > { %v2717_v63 = vld [vmem:[%s2702_s2 + $0x8] sm:$0xff]  ;;  %v2720_v1 = vld [vmem:[%s2702_s2] sm:$0xff]  ;;  %766 = vmatprep.subr.mxu1 %v548_v61  ;;  %696 = vmatpush2.msra.mxu0 %v419_v62  ;;  %v390_v32 = vld [vmem:[#allocation5 + $0x118] sm:$0xff] }
  0xb4   : > { %697 = vmatprep.mubr.f32.mxu0 %v2717_v63  ;;  %767 = vmatpush2.msra.mxu1 %v547_v0  ;;  %v518_v33 = vld [vmem:[#allocation5 + $0x518] sm:$0xff]  ;;  %v389_v34 = vld [vmem:[#allocation5 + $0x110] sm:$0xff] }
  0xb5   : > { %698 = vmatmul.mubr.f32.vlgmr.msra.gmra.mxu0 %v2720_v1  ;;  %768 = vmatprep.mubr.f32.mxu1 %v2723_v2  ;;  %v517_v35 = vld [vmem:[#allocation5 + $0x510] sm:$0xff]  ;;  %v386_v36 = vld [vmem:[#allocation5 + $0xf8] sm:$0xff] }
  0xb6   : > { %775 = vmatprep.subr.mxu0 %v418_v3  ;;  %846 = vmatprep.subr.mxu1 %v546_v4  ;;  %v514_v37 = vld [vmem:[#allocation5 + $0x4f8] sm:$0xff]  ;;  %v385_v38 = vld [vmem:[#allocation5 + $0xf0] sm:$0xff] }
  0xb7   : > { %769 = vmatmul.mubr.f32.vlgmr.msra.gmra.mxu1 %v2727_v5  ;;  %776 = vmatpush1.msra.mxu0 %v417_v6  ;;  %v513_v39 = vld [vmem:[#allocation5 + $0x4f0] sm:$0xff]  ;;  %v382_v40 = vld [vmem:[#allocation5 + $0xd8] sm:$0xff] }
  0xb8   : > { %847 = vmatpush1.msra.mxu1 %v545_v7  ;;  %777 = vmatprep.subr.mxu0 %v414_v8  ;;  %v510_v41 = vld [vmem:[#allocation5 + $0x4d8] sm:$0xff]  ;;  %v381_v42 = vld [vmem:[#allocation5 + $0xd0] sm:$0xff] }
  0xb9   : > { %848 = vmatprep.subr.mxu1 %v542_v9  ;;  %778 = vmatpush1.msra.mxu0 %v413_v10  ;;  %v509_v43 = vld [vmem:[#allocation5 + $0x4d0] sm:$0xff]  ;;  %v378_v44 = vld [vmem:[#allocation5 + $0xb8] sm:$0xff] }
  0xba   : > { %849 = vmatpush1.msra.mxu1 %v541_v11  ;;  %779 = vmatprep.subr.mxu0 %v410_v12  ;;  %v506_v45 = vld [vmem:[#allocation5 + $0x4b8] sm:$0xff]  ;;  %v377_v46 = vld [vmem:[#allocation5 + $0xb0] sm:$0xff] }
  0xbb   : > { %850 = vmatprep.subr.mxu1 %v538_v13  ;;  %780 = vmatpush1.msra.mxu0 %v409_v14  ;;  %v505_v47 = vld [vmem:[#allocation5 + $0x4b0] sm:$0xff]  ;;  %v374_v48 = vld [vmem:[#allocation5 + $0x98] sm:$0xff] }
  0xbc   : > { %851 = vmatpush1.msra.mxu1 %v537_v15  ;;  %781 = vmatprep.subr.mxu0 %v406_v16  ;;  %v502_v49 = vld [vmem:[#allocation5 + $0x498] sm:$0xff]  ;;  %v373_v50 = vld [vmem:[#allocation5 + $0x90] sm:$0xff] }
  0xbd   : > { %852 = vmatprep.subr.mxu1 %v534_v17  ;;  %782 = vmatpush1.msra.mxu0 %v405_v18  ;;  %v501_v51 = vld [vmem:[#allocation5 + $0x490] sm:$0xff]  ;;  %v370_v52 = vld [vmem:[#allocation5 + $0x78] sm:$0xff] }
  0xbe   : > { %853 = vmatpush1.msra.mxu1 %v533_v19  ;;  %783 = vmatprep.subr.mxu0 %v402_v20  ;;  %v498_v53 = vld [vmem:[#allocation5 + $0x478] sm:$0xff]  ;;  %v369_v54 = vld [vmem:[#allocation5 + $0x70] sm:$0xff] }
  0xbf   : > { %854 = vmatprep.subr.mxu1 %v530_v21  ;;  %784 = vmatpush1.msra.mxu0 %v401_v22  ;;  %v497_v55 = vld [vmem:[#allocation5 + $0x470] sm:$0xff]  ;;  %v366_v56 = vld [vmem:[#allocation5 + $0x58] sm:$0xff] }
  0xc0   : > { %855 = vmatpush1.msra.mxu1 %v529_v23  ;;  %785 = vmatprep.subr.mxu0 %v398_v24  ;;  %v494_v57 = vld [vmem:[#allocation5 + $0x458] sm:$0xff]  ;;  %v365_v58 = vld [vmem:[#allocation5 + $0x50] sm:$0xff] }
  0xc1   : > { %856 = vmatprep.subr.mxu1 %v526_v25  ;;  %786 = vmatpush1.msra.mxu0 %v397_v26  ;;  %v493_v59 = vld [vmem:[#allocation5 + $0x450] sm:$0xff]  ;;  %v362_v60 = vld [vmem:[#allocation5 + $0x38] sm:$0xff] }
  0xc2   : > { %857 = vmatpush1.msra.mxu1 %v525_v27  ;;  %787 = vmatprep.subr.mxu0 %v394_v28  ;;  %v490_v61 = vld [vmem:[#allocation5 + $0x438] sm:$0xff]  ;;  %v361_v62 = vld [vmem:[#allocation5 + $0x30] sm:$0xff] }
  0xc3   : > { %858 = vmatprep.subr.mxu1 %v522_v29  ;;  %788 = vmatpush1.msra.mxu0 %v393_v30  ;;  %v489_v0 = vld [vmem:[#allocation5 + $0x430] sm:$0xff]  ;;  %v358_v3 = vld [vmem:[#allocation5 + $0x18] sm:$0xff] }
  0xc4   : > { %859 = vmatpush1.msra.mxu1 %v521_v31  ;;  %789 = vmatprep.subr.mxu0 %v390_v32  ;;  %v486_v4 = vld [vmem:[#allocation5 + $0x418] sm:$0xff]  ;;  %v357_v6 = vld [vmem:[#allocation5 + $0x10] sm:$0xff] }
  0xc5   : > { %860 = vmatprep.subr.mxu1 %v518_v33  ;;  %790 = vmatpush1.msra.mxu0 %v389_v34  ;;  %v485_v7 = vld [vmem:[#allocation5 + $0x410] sm:$0xff]  ;;  %v482_v8 = vld [vmem:[#allocation5 + $0x3f8] sm:$0xff] }
  0xc6   : > { %861 = vmatpush1.msra.mxu1 %v517_v35  ;;  %791 = vmatprep.subr.mxu0 %v386_v36  ;;  %v610_v9 = vld [vmem:[#allocation5 + $0x7f8] sm:$0xff]  ;;  %v481_v10 = vld [vmem:[#allocation5 + $0x3f0] sm:$0xff] }
  0xc7   : > { %862 = vmatprep.subr.mxu1 %v514_v37  ;;  %792 = vmatpush1.msra.mxu0 %v385_v38  ;;  %v609_v11 = vld [vmem:[#allocation5 + $0x7f0] sm:$0xff]  ;;  %v478_v12 = vld [vmem:[#allocation5 + $0x3d8] sm:$0xff] }
  0xc8   : > { %863 = vmatpush1.msra.mxu1 %v513_v39  ;;  %793 = vmatprep.subr.mxu0 %v382_v40  ;;  %v606_v13 = vld [vmem:[#allocation5 + $0x7d8] sm:$0xff]  ;;  %v477_v14 = vld [vmem:[#allocation5 + $0x3d0] sm:$0xff] }
  0xc9   : > { %864 = vmatprep.subr.mxu1 %v510_v41  ;;  %794 = vmatpush1.msra.mxu0 %v381_v42  ;;  %v605_v15 = vld [vmem:[#allocation5 + $0x7d0] sm:$0xff]  ;;  %v474_v16 = vld [vmem:[#allocation5 + $0x3b8] sm:$0xff] }
  0xca   : > { %865 = vmatpush1.msra.mxu1 %v509_v43  ;;  %795 = vmatprep.subr.mxu0 %v378_v44  ;;  %v602_v17 = vld [vmem:[#allocation5 + $0x7b8] sm:$0xff]  ;;  %v473_v18 = vld [vmem:[#allocation5 + $0x3b0] sm:$0xff] }
  0xcb   : > { %866 = vmatprep.subr.mxu1 %v506_v45  ;;  %796 = vmatpush1.msra.mxu0 %v377_v46  ;;  %v601_v19 = vld [vmem:[#allocation5 + $0x7b0] sm:$0xff]  ;;  %v470_v20 = vld [vmem:[#allocation5 + $0x398] sm:$0xff] }
  0xcc   : > { %867 = vmatpush1.msra.mxu1 %v505_v47  ;;  %797 = vmatprep.subr.mxu0 %v374_v48  ;;  %v598_v21 = vld [vmem:[#allocation5 + $0x798] sm:$0xff]  ;;  %v469_v22 = vld [vmem:[#allocation5 + $0x390] sm:$0xff] }
  0xcd   : > { %868 = vmatprep.subr.mxu1 %v502_v49  ;;  %798 = vmatpush1.msra.mxu0 %v373_v50  ;;  %v597_v23 = vld [vmem:[#allocation5 + $0x790] sm:$0xff]  ;;  %v466_v24 = vld [vmem:[#allocation5 + $0x378] sm:$0xff] }
  0xce   : > { %869 = vmatpush1.msra.mxu1 %v501_v51  ;;  %799 = vmatprep.subr.mxu0 %v370_v52  ;;  %v594_v25 = vld [vmem:[#allocation5 + $0x778] sm:$0xff]  ;;  %v465_v26 = vld [vmem:[#allocation5 + $0x370] sm:$0xff] }
  0xcf   : > { %870 = vmatprep.subr.mxu1 %v498_v53  ;;  %800 = vmatpush1.msra.mxu0 %v369_v54  ;;  %v593_v27 = vld [vmem:[#allocation5 + $0x770] sm:$0xff]  ;;  %v462_v28 = vld [vmem:[#allocation5 + $0x358] sm:$0xff] }
  0xd0   : > { %871 = vmatpush1.msra.mxu1 %v497_v55  ;;  %801 = vmatprep.subr.mxu0 %v366_v56  ;;  %v590_v29 = vld [vmem:[#allocation5 + $0x758] sm:$0xff]  ;;  %v461_v30 = vld [vmem:[#allocation5 + $0x350] sm:$0xff] }
  0xd1   : > { %872 = vmatprep.subr.mxu1 %v494_v57  ;;  %802 = vmatpush1.msra.mxu0 %v365_v58  ;;  %v589_v31 = vld [vmem:[#allocation5 + $0x750] sm:$0xff]  ;;  %v458_v32 = vld [vmem:[#allocation5 + $0x338] sm:$0xff] }
  0xd2   : > { %873 = vmatpush1.msra.mxu1 %v493_v59  ;;  %803 = vmatprep.subr.mxu0 %v362_v60  ;;  %v586_v33 = vld [vmem:[#allocation5 + $0x738] sm:$0xff]  ;;  %v457_v34 = vld [vmem:[#allocation5 + $0x330] sm:$0xff] }
  0xd3   : > { %874 = vmatprep.subr.mxu1 %v490_v61  ;;  %804 = vmatpush1.msra.mxu0 %v361_v62  ;;  %v585_v35 = vld [vmem:[#allocation5 + $0x730] sm:$0xff]  ;;  %v454_v36 = vld [vmem:[#allocation5 + $0x318] sm:$0xff] }
  0xd4   : > { %875 = vmatpush1.msra.mxu1 %v489_v0  ;;  %805 = vmatprep.subr.mxu0 %v358_v3  ;;  %v582_v37 = vld [vmem:[#allocation5 + $0x718] sm:$0xff]  ;;  %v453_v38 = vld [vmem:[#allocation5 + $0x310] sm:$0xff] }
  0xd5   : > { %876 = vmatprep.subr.mxu1 %v486_v4  ;;  %806 = vmatpush1.msra.mxu0 %v357_v6  ;;  %v581_v39 = vld [vmem:[#allocation5 + $0x710] sm:$0xff]  ;;  %v450_v40 = vld [vmem:[#allocation5 + $0x2f8] sm:$0xff] }
  0xd6   : > { %877 = vmatpush1.msra.mxu1 %v485_v7  ;;  %807 = vmatprep.subr.mxu0 %v482_v8  ;;  %v578_v41 = vld [vmem:[#allocation5 + $0x6f8] sm:$0xff]  ;;  %v449_v42 = vld [vmem:[#allocation5 + $0x2f0] sm:$0xff] }
  0xd7   : > { %878 = vmatprep.subr.mxu1 %v610_v9  ;;  %808 = vmatpush2.msra.mxu0 %v481_v10  ;;  %v577_v43 = vld [vmem:[#allocation5 + $0x6f0] sm:$0xff]  ;;  %v446_v44 = vld [vmem:[#allocation5 + $0x2d8] sm:$0xff] }
  0xd8   : > { %879 = vmatpush2.msra.mxu1 %v609_v11  ;;  %809 = vmatprep.subr.mxu0 %v478_v12  ;;  %v574_v45 = vld [vmem:[#allocation5 + $0x6d8] sm:$0xff]  ;;  %v445_v46 = vld [vmem:[#allocation5 + $0x2d0] sm:$0xff] }
  0xd9   : > { %880 = vmatprep.subr.mxu1 %v606_v13  ;;  %810 = vmatpush2.msra.mxu0 %v477_v14  ;;  %v573_v47 = vld [vmem:[#allocation5 + $0x6d0] sm:$0xff]  ;;  %v442_v48 = vld [vmem:[#allocation5 + $0x2b8] sm:$0xff]  ;;  %v977_v13 = vld [vmem:[#allocation8 + $0x1e0] sm:$0xff] }
  0xda   : > { %881 = vmatpush2.msra.mxu1 %v605_v15  ;;  %811 = vmatprep.subr.mxu0 %v474_v16  ;;  %v570_v49 = vld [vmem:[#allocation5 + $0x6b8] sm:$0xff]  ;;  %v441_v50 = vld [vmem:[#allocation5 + $0x2b0] sm:$0xff]  ;;  %v973_v15 = vld [vmem:[#allocation8 + $0x1c0] sm:$0xff] }
  0xdb   : > { %882 = vmatprep.subr.mxu1 %v602_v17  ;;  %812 = vmatpush2.msra.mxu0 %v473_v18  ;;  %v569_v51 = vld [vmem:[#allocation5 + $0x6b0] sm:$0xff]  ;;  %v438_v52 = vld [vmem:[#allocation5 + $0x298] sm:$0xff]  ;;  %v969_v17 = vld [vmem:[#allocation8 + $0x1a0] sm:$0xff] }
  0xdc   : > { %883 = vmatpush2.msra.mxu1 %v601_v19  ;;  %813 = vmatprep.subr.mxu0 %v470_v20  ;;  %v566_v53 = vld [vmem:[#allocation5 + $0x698] sm:$0xff]  ;;  %v437_v54 = vld [vmem:[#allocation5 + $0x290] sm:$0xff]  ;;  %v1105_v20 = vld [vmem:[#allocation8 + $0x5e0] sm:$0xff] }
  0xdd   : > { %884 = vmatprep.subr.mxu1 %v598_v21  ;;  %814 = vmatpush2.msra.mxu0 %v469_v22  ;;  %v565_v55 = vld [vmem:[#allocation5 + $0x690] sm:$0xff]  ;;  %v434_v56 = vld [vmem:[#allocation5 + $0x278] sm:$0xff]  ;;  %v1101_v21 = vld [vmem:[#allocation8 + $0x5c0] sm:$0xff] }
  0xde   : > { %885 = vmatpush2.msra.mxu1 %v597_v23  ;;  %815 = vmatprep.subr.mxu0 %v466_v24  ;;  %v562_v57 = vld [vmem:[#allocation5 + $0x678] sm:$0xff]  ;;  %v433_v58 = vld [vmem:[#allocation5 + $0x270] sm:$0xff]  ;;  %v957_v24 = vld [vmem:[#allocation8 + $0x140] sm:$0xff] }
  0xdf   : > { %886 = vmatprep.subr.mxu1 %v594_v25  ;;  %816 = vmatpush2.msra.mxu0 %v465_v26  ;;  %v561_v59 = vld [vmem:[#allocation5 + $0x670] sm:$0xff]  ;;  %v430_v60 = vld [vmem:[#allocation5 + $0x258] sm:$0xff]  ;;  %v1097_v25 = vld [vmem:[#allocation8 + $0x5a0] sm:$0xff] }
  0xe0   : > { %887 = vmatpush2.msra.mxu1 %v593_v27  ;;  %817 = vmatprep.subr.mxu0 %v462_v28  ;;  %v558_v61 = vld [vmem:[#allocation5 + $0x658] sm:$0xff]  ;;  %v429_v62 = vld [vmem:[#allocation5 + $0x250] sm:$0xff]  ;;  %v953_v28 = vld [vmem:[#allocation8 + $0x120] sm:$0xff] }
  0xe1   : > { %888 = vmatprep.subr.mxu1 %v590_v29  ;;  %818 = vmatpush2.msra.mxu0 %v461_v30  ;;  %v557_v0 = vld [vmem:[#allocation5 + $0x650] sm:$0xff]  ;;  %v426_v3 = vld [vmem:[#allocation5 + $0x238] sm:$0xff]  ;;  %v1093_v29 = vld [vmem:[#allocation8 + $0x580] sm:$0xff] }
  0xe2   : > { %889 = vmatpush2.msra.mxu1 %v589_v31  ;;  %819 = vmatprep.subr.mxu0 %v458_v32  ;;  %v554_v4 = vld [vmem:[#allocation5 + $0x638] sm:$0xff]  ;;  %v425_v6 = vld [vmem:[#allocation5 + $0x230] sm:$0xff]  ;;  %v949_v32 = vld [vmem:[#allocation8 + $0x100] sm:$0xff] }
  0xe3   : > { %890 = vmatprep.subr.mxu1 %v586_v33  ;;  %820 = vmatpush2.msra.mxu0 %v457_v34  ;;  %v553_v7 = vld [vmem:[#allocation5 + $0x630] sm:$0xff]  ;;  %v422_v8 = vld [vmem:[#allocation5 + $0x218] sm:$0xff]  ;;  %v1089_v33 = vld [vmem:[#allocation8 + $0x560] sm:$0xff] }
  0xe4   : > { %891 = vmatpush2.msra.mxu1 %v585_v35  ;;  %821 = vmatprep.subr.mxu0 %v454_v36  ;;  %v550_v9 = vld [vmem:[#allocation5 + $0x618] sm:$0xff]  ;;  %v421_v10 = vld [vmem:[#allocation5 + $0x210] sm:$0xff]  ;;  %v945_v36 = vld [vmem:[#allocation8 + $0xe0] sm:$0xff] }
  0xe5   : > { %892 = vmatprep.subr.mxu1 %v582_v37  ;;  %822 = vmatpush2.msra.mxu0 %v453_v38  ;;  %v549_v11 = vld [vmem:[#allocation5 + $0x610] sm:$0xff]  ;;  %v1085_v37 = vld [vmem:[#allocation8 + $0x540] sm:$0xff] }
  0xe6   : > { %893 = vmatpush2.msra.mxu1 %v581_v39  ;;  %823 = vmatprep.subr.mxu0 %v450_v40  ;;  %v978_v12 = vld [vmem:[#allocation8 + $0x1e8] sm:$0xff]  ;;  %v941_v40 = vld [vmem:[#allocation8 + $0xc0] sm:$0xff] }
  0xe7   : > { %894 = vmatprep.subr.mxu1 %v578_v41  ;;  %824 = vmatpush2.msra.mxu0 %v449_v42  ;;  %v974_v14 = vld [vmem:[#allocation8 + $0x1c8] sm:$0xff]  ;;  %v1081_v41 = vld [vmem:[#allocation8 + $0x520] sm:$0xff] }
  0xe8   : > { %895 = vmatpush2.msra.mxu1 %v577_v43  ;;  %825 = vmatprep.subr.mxu0 %v446_v44  ;;  %v970_v16 = vld [vmem:[#allocation8 + $0x1a8] sm:$0xff]  ;;  %v937_v44 = vld [vmem:[#allocation8 + $0xa0] sm:$0xff] }
  0xe9   : > { %896 = vmatprep.subr.mxu1 %v574_v45  ;;  %826 = vmatpush2.msra.mxu0 %v445_v46  ;;  %v966_v18 = vld [vmem:[#allocation8 + $0x188] sm:$0xff]  ;;  %v1077_v45 = vld [vmem:[#allocation8 + $0x500] sm:$0xff] }
  0xea   : > { %897 = vmatpush2.msra.mxu1 %v573_v47  ;;  %827 = vmatprep.subr.mxu0 %v442_v48  ;;  %v1106_v19 = vld [vmem:[#allocation8 + $0x5e8] sm:$0xff]  ;;  %v933_v48 = vld [vmem:[#allocation8 + $0x80] sm:$0xff] }
  0xeb   : > { %898 = vmatprep.subr.mxu1 %v570_v49  ;;  %828 = vmatpush2.msra.mxu0 %v441_v50  ;;  %v958_v22 = vld [vmem:[#allocation8 + $0x148] sm:$0xff]  ;;  %v1073_v49 = vld [vmem:[#allocation8 + $0x4e0] sm:$0xff] }
  0xec   : > { %899 = vmatpush2.msra.mxu1 %v569_v51  ;;  %829 = vmatprep.subr.mxu0 %v438_v52  ;;  %v1098_v23 = vld [vmem:[#allocation8 + $0x5a8] sm:$0xff]  ;;  %v929_v52 = vld [vmem:[#allocation8 + $0x60] sm:$0xff] }
  0xed   : > { %900 = vmatprep.subr.mxu1 %v566_v53  ;;  %830 = vmatpush2.msra.mxu0 %v437_v54  ;;  %v954_v26 = vld [vmem:[#allocation8 + $0x128] sm:$0xff]  ;;  %v1069_v53 = vld [vmem:[#allocation8 + $0x4c0] sm:$0xff] }
  0xee   : > { %901 = vmatpush2.msra.mxu1 %v565_v55  ;;  %831 = vmatprep.subr.mxu0 %v434_v56  ;;  %v1094_v27 = vld [vmem:[#allocation8 + $0x588] sm:$0xff]  ;;  %v925_v56 = vld [vmem:[#allocation8 + $0x40] sm:$0xff] }
  0xef   : > { %902 = vmatprep.subr.mxu1 %v562_v57  ;;  %832 = vmatpush2.msra.mxu0 %v433_v58  ;;  %v950_v30 = vld [vmem:[#allocation8 + $0x108] sm:$0xff]  ;;  %v1065_v57 = vld [vmem:[#allocation8 + $0x4a0] sm:$0xff] }
  0xf0   : > { %903 = vmatpush2.msra.mxu1 %v561_v59  ;;  %833 = vmatprep.subr.mxu0 %v430_v60  ;;  %v1090_v31 = vld [vmem:[#allocation8 + $0x568] sm:$0xff]  ;;  %v921_v60 = vld [vmem:[#allocation8 + $0x20] sm:$0xff] }
  0xf1   : > { %904 = vmatprep.subr.mxu1 %v558_v61  ;;  %834 = vmatpush2.msra.mxu0 %v429_v62  ;;  %v946_v34 = vld [vmem:[#allocation8 + $0xe8] sm:$0xff]  ;;  %v1061_v61 = vld [vmem:[#allocation8 + $0x480] sm:$0xff] }
  0xf2   : > { %905 = vmatpush2.msra.mxu1 %v557_v0  ;;  %835 = vmatprep.subr.mxu0 %v426_v3  ;;  %v1086_v35 = vld [vmem:[#allocation8 + $0x548] sm:$0xff]  ;;  %v917_v3 = vld [vmem:[#allocation8] sm:$0xff] }
  0xf3   : > { %906 = vmatprep.subr.mxu1 %v554_v4  ;;  %836 = vmatpush2.msra.mxu0 %v425_v6  ;;  %v942_v38 = vld [vmem:[#allocation8 + $0xc8] sm:$0xff]  ;;  %v1057_v4 = vld [vmem:[#allocation8 + $0x460] sm:$0xff] }
  0xf4   : > { %907 = vmatpush2.msra.mxu1 %v553_v7  ;;  %837 = vmatprep.subr.mxu0 %v422_v8  ;;  %v1082_v39 = vld [vmem:[#allocation8 + $0x528] sm:$0xff]  ;;  %v1041_v8 = vld [vmem:[#allocation8 + $0x3e0] sm:$0xff] }
  0xf5   : > { %908 = vmatprep.subr.mxu1 %v550_v9  ;;  %838 = vmatpush2.msra.mxu0 %v421_v10  ;;  %v938_v42 = vld [vmem:[#allocation8 + $0xa8] sm:$0xff]  ;;  %v1053_v9 = vld [vmem:[#allocation8 + $0x440] sm:$0xff] }
  0xf6   : > { %839 = vmatprep.mubr.f32.mxu0 %v2717_v63  ;;  %909 = vmatpush2.msra.mxu1 %v549_v11  ;;  %v965_v63 = vld [vmem:[#allocation8 + $0x180] sm:$0xff]  ;;  %v1078_v43 = vld [vmem:[#allocation8 + $0x508] sm:$0xff] }
  0xf7   : > { %910 = vmatprep.mubr.f32.mxu1 %v2723_v2  ;;  %840 = vmatmul.mubr.f32.vlgmr.msra.gmra.mxu0 %v2720_v1  ;;  %v962_v2 = vld [vmem:[#allocation8 + $0x168] sm:$0xff] }
  0xf8   : > { %911 = vmatmul.mubr.f32.vlgmr.msra.gmra.mxu1 %v2727_v5  ;;  %1195 = vmatprep.subr.mxu0 %v978_v12  ;;  %v1102_v1 = vld [vmem:[#allocation8 + $0x5c8] sm:$0xff]  ;;  %v961_v5 = vld [vmem:[#allocation8 + $0x160] sm:$0xff] }
  0xf9   : > { %1196 = vmatpush1.msra.mxu0 %v977_v13  ;;  %1266 = vmatprep.subr.mxu1 %v1106_v19  ;;  %v934_v46 = vld [vmem:[#allocation8 + $0x88] sm:$0xff]  ;;  %v1037_v12 = vld [vmem:[#allocation8 + $0x3c0] sm:$0xff] }
  0xfa   : > { %1197 = vmatprep.subr.mxu0 %v974_v14  ;;  %1267 = vmatpush1.msra.mxu1 %v1105_v20  ;;  %v1074_v47 = vld [vmem:[#allocation8 + $0x4e8] sm:$0xff]  ;;  %v1049_v13 = vld [vmem:[#allocation8 + $0x420] sm:$0xff] }
  0xfb   : > { %1198 = vmatpush1.msra.mxu0 %v973_v15  ;;  %1268 = vmatprep.subr.mxu1 %v1102_v1  ;;  %v930_v50 = vld [vmem:[#allocation8 + $0x68] sm:$0xff]  ;;  %v1169_v20 = vld [vmem:[#allocation8 + $0x7e0] sm:$0xff] }
  0xfc   : > { %1199 = vmatprep.subr.mxu0 %v970_v16  ;;  %1269 = vmatpush1.msra.mxu1 %v1101_v21  ;;  %v1070_v51 = vld [vmem:[#allocation8 + $0x4c8] sm:$0xff]  ;;  %v1033_v16 = vld [vmem:[#allocation8 + $0x3a0] sm:$0xff] }
  0xfd   : > { %1200 = vmatpush1.msra.mxu0 %v969_v17  ;;  %1270 = vmatprep.subr.mxu1 %v1098_v23  ;;  %v926_v54 = vld [vmem:[#allocation8 + $0x48] sm:$0xff]  ;;  %v1045_v17 = vld [vmem:[#allocation8 + $0x400] sm:$0xff] }
  0xfe   : > { %1201 = vmatprep.subr.mxu0 %v966_v18  ;;  %1271 = vmatpush1.msra.mxu1 %v1097_v25  ;;  %v1066_v55 = vld [vmem:[#allocation8 + $0x4a8] sm:$0xff]  ;;  %v1165_v21 = vld [vmem:[#allocation8 + $0x7c0] sm:$0xff] }
  0xff   : > { %1202 = vmatpush1.msra.mxu0 %v965_v63  ;;  %1272 = vmatprep.subr.mxu1 %v1094_v27  ;;  %v922_v58 = vld [vmem:[#allocation8 + $0x28] sm:$0xff]  ;;  %v1029_v63 = vld [vmem:[#allocation8 + $0x380] sm:$0xff] }
 0x100   : > { %1203 = vmatprep.subr.mxu0 %v962_v2  ;;  %1273 = vmatpush1.msra.mxu1 %v1093_v29  ;;  %v1062_v59 = vld [vmem:[#allocation8 + $0x488] sm:$0xff]  ;;  %v1161_v25 = vld [vmem:[#allocation8 + $0x7a0] sm:$0xff] }
 0x101   : > { %1204 = vmatpush1.msra.mxu0 %v961_v5  ;;  %1274 = vmatprep.subr.mxu1 %v1090_v31  ;;  %v918_v62 = vld [vmem:[#allocation8 + $0x8] sm:$0xff]  ;;  %v1025_v5 = vld [vmem:[#allocation8 + $0x360] sm:$0xff] }
 0x102   : > { %1205 = vmatprep.subr.mxu0 %v958_v22  ;;  %1275 = vmatpush1.msra.mxu1 %v1089_v33  ;;  %v1058_v0 = vld [vmem:[#allocation8 + $0x468] sm:$0xff]  ;;  %v1157_v29 = vld [vmem:[#allocation8 + $0x780] sm:$0xff] }
 0x103   : > { %1206 = vmatpush1.msra.mxu0 %v957_v24  ;;  %1276 = vmatprep.subr.mxu1 %v1086_v35  ;;  %v1042_v6 = vld [vmem:[#allocation8 + $0x3e8] sm:$0xff]  ;;  %v1021_v24 = vld [vmem:[#allocation8 + $0x340] sm:$0xff] }
 0x104   : > { %1207 = vmatprep.subr.mxu0 %v954_v26  ;;  %1277 = vmatpush1.msra.mxu1 %v1085_v37  ;;  %v1054_v7 = vld [vmem:[#allocation8 + $0x448] sm:$0xff]  ;;  %v1153_v33 = vld [vmem:[#allocation8 + $0x760] sm:$0xff] }
 0x105   : > { %1208 = vmatpush1.msra.mxu0 %v953_v28  ;;  %1278 = vmatprep.subr.mxu1 %v1082_v39  ;;  %v1038_v10 = vld [vmem:[#allocation8 + $0x3c8] sm:$0xff]  ;;  %v1017_v28 = vld [vmem:[#allocation8 + $0x320] sm:$0xff] }
 0x106   : > { %1209 = vmatprep.subr.mxu0 %v950_v30  ;;  %1279 = vmatpush1.msra.mxu1 %v1081_v41  ;;  %v1050_v11 = vld [vmem:[#allocation8 + $0x428] sm:$0xff]  ;;  %v1149_v37 = vld [vmem:[#allocation8 + $0x740] sm:$0xff] }
 0x107   : > { %1210 = vmatpush1.msra.mxu0 %v949_v32  ;;  %1280 = vmatprep.subr.mxu1 %v1078_v43  ;;  %v1034_v14 = vld [vmem:[#allocation8 + $0x3a8] sm:$0xff]  ;;  %v1013_v32 = vld [vmem:[#allocation8 + $0x300] sm:$0xff] }
 0x108   : > { %1211 = vmatprep.subr.mxu0 %v946_v34  ;;  %1281 = vmatpush1.msra.mxu1 %v1077_v45  ;;  %v1046_v15 = vld [vmem:[#allocation8 + $0x408] sm:$0xff]  ;;  %v1145_v41 = vld [vmem:[#allocation8 + $0x720] sm:$0xff] }
 0x109   : > { %1212 = vmatpush1.msra.mxu0 %v945_v36  ;;  %1282 = vmatprep.subr.mxu1 %v1074_v47  ;;  %v1030_v18 = vld [vmem:[#allocation8 + $0x388] sm:$0xff]  ;;  %v1009_v36 = vld [vmem:[#allocation8 + $0x2e0] sm:$0xff] }
 0x10a   : > { %1213 = vmatprep.subr.mxu0 %v942_v38  ;;  %1283 = vmatpush1.msra.mxu1 %v1073_v49  ;;  %v1170_v19 = vld [vmem:[#allocation8 + $0x7e8] sm:$0xff]  ;;  %v1141_v45 = vld [vmem:[#allocation8 + $0x700] sm:$0xff] }
 0x10b   : > { %1214 = vmatpush1.msra.mxu0 %v941_v40  ;;  %1284 = vmatprep.subr.mxu1 %v1070_v51  ;;  %v1026_v2 = vld [vmem:[#allocation8 + $0x368] sm:$0xff]  ;;  %v1005_v40 = vld [vmem:[#allocation8 + $0x2c0] sm:$0xff] }
 0x10c   : > { %1215 = vmatprep.subr.mxu0 %v938_v42  ;;  %1285 = vmatpush1.msra.mxu1 %v1069_v53  ;;  %v1166_v1 = vld [vmem:[#allocation8 + $0x7c8] sm:$0xff]  ;;  %v1137_v49 = vld [vmem:[#allocation8 + $0x6e0] sm:$0xff] }
 0x10d   : > { %1216 = vmatpush1.msra.mxu0 %v937_v44  ;;  %1286 = vmatprep.subr.mxu1 %v1066_v55  ;;  %v1022_v22 = vld [vmem:[#allocation8 + $0x348] sm:$0xff]  ;;  %v1001_v44 = vld [vmem:[#allocation8 + $0x2a0] sm:$0xff] }
 0x10e   : > { %1217 = vmatprep.subr.mxu0 %v934_v46  ;;  %1287 = vmatpush1.msra.mxu1 %v1065_v57  ;;  %v1162_v23 = vld [vmem:[#allocation8 + $0x7a8] sm:$0xff]  ;;  %v1133_v53 = vld [vmem:[#allocation8 + $0x6c0] sm:$0xff] }
 0x10f   : > { %1218 = vmatpush1.msra.mxu0 %v933_v48  ;;  %1288 = vmatprep.subr.mxu1 %v1062_v59  ;;  %v1018_v26 = vld [vmem:[#allocation8 + $0x328] sm:$0xff]  ;;  %v997_v48 = vld [vmem:[#allocation8 + $0x280] sm:$0xff] }
 0x110   : > { %1219 = vmatprep.subr.mxu0 %v930_v50  ;;  %1289 = vmatpush1.msra.mxu1 %v1061_v61  ;;  %v1158_v27 = vld [vmem:[#allocation8 + $0x788] sm:$0xff]  ;;  %v1129_v57 = vld [vmem:[#allocation8 + $0x6a0] sm:$0xff] }
 0x111   : > { %1220 = vmatpush1.msra.mxu0 %v929_v52  ;;  %1290 = vmatprep.subr.mxu1 %v1058_v0  ;;  %v1014_v30 = vld [vmem:[#allocation8 + $0x308] sm:$0xff]  ;;  %v993_v52 = vld [vmem:[#allocation8 + $0x260] sm:$0xff] }
 0x112   : > { %1221 = vmatprep.subr.mxu0 %v926_v54  ;;  %1291 = vmatpush1.msra.mxu1 %v1057_v4  ;;  %v1154_v31 = vld [vmem:[#allocation8 + $0x768] sm:$0xff]  ;;  %v1125_v61 = vld [vmem:[#allocation8 + $0x680] sm:$0xff]  ;;  %v980_v4 = vld [vmem:[#allocation8 + $0x1f8] sm:$0xff] }
 0x113   : > { %1222 = vmatpush1.msra.mxu0 %v925_v56  ;;  %1292 = vmatprep.subr.mxu1 %v1054_v7  ;;  %v1010_v34 = vld [vmem:[#allocation8 + $0x2e8] sm:$0xff]  ;;  %v989_v56 = vld [vmem:[#allocation8 + $0x240] sm:$0xff] }
 0x114   : > { %1223 = vmatprep.subr.mxu0 %v922_v58  ;;  %1293 = vmatpush1.msra.mxu1 %v1053_v9  ;;  %v1150_v35 = vld [vmem:[#allocation8 + $0x748] sm:$0xff] }
 0x115   : > { %1224 = vmatpush1.msra.mxu0 %v921_v60  ;;  %1294 = vmatprep.subr.mxu1 %v1050_v11  ;;  %v1006_v38 = vld [vmem:[#allocation8 + $0x2c8] sm:$0xff]  ;;  %v985_v60 = vld [vmem:[#allocation8 + $0x220] sm:$0xff] }
 0x116   : > { %1225 = vmatprep.subr.mxu0 %v918_v62  ;;  %1295 = vmatpush1.msra.mxu1 %v1049_v13  ;;  %v1146_v39 = vld [vmem:[#allocation8 + $0x728] sm:$0xff]  ;;  %v1108_v13 = vld [vmem:[#allocation8 + $0x5f8] sm:$0xff] }
 0x117   : > { %1226 = vmatpush1.msra.mxu0 %v917_v3  ;;  %1296 = vmatprep.subr.mxu1 %v1046_v15  ;;  %v1002_v42 = vld [vmem:[#allocation8 + $0x2a8] sm:$0xff]  ;;  %v981_v3 = vld [vmem:[#allocation8 + $0x200] sm:$0xff] }
 0x118   : > { %1227 = vmatprep.subr.mxu0 %v1042_v6  ;;  %1297 = vmatpush1.msra.mxu1 %v1045_v17  ;;  %v1142_v43 = vld [vmem:[#allocation8 + $0x708] sm:$0xff]  ;;  %v1121_v6 = vld [vmem:[#allocation8 + $0x660] sm:$0xff]  ;;  %v2741_v17 = vld [vmem:[#allocation7] sm:$0xf] }
 0x119   : > { %1228 = vmatpush2.msra.mxu0 %v1041_v8  ;;  %1298 = vmatprep.subr.mxu1 %v1170_v19  ;;  %v998_v46 = vld [vmem:[#allocation8 + $0x288] sm:$0xff]  ;;  %v1117_v8 = vld [vmem:[#allocation8 + $0x640] sm:$0xff] }
 0x11a   : > { %1229 = vmatprep.subr.mxu0 %v1038_v10  ;;  %1299 = vmatpush2.msra.mxu1 %v1169_v20  ;;  %v1138_v47 = vld [vmem:[#allocation8 + $0x6e8] sm:$0xff]  ;;  %v1113_v10 = vld [vmem:[#allocation8 + $0x620] sm:$0xff] }
 0x11b   : > { %1230 = vmatpush2.msra.mxu0 %v1037_v12  ;;  %1300 = vmatprep.subr.mxu1 %v1166_v1  ;;  %v994_v50 = vld [vmem:[#allocation8 + $0x268] sm:$0xff]  ;;  %v1109_v12 = vld [vmem:[#allocation8 + $0x600] sm:$0xff] }
 0x11c   : > { %1231 = vmatprep.subr.mxu0 %v1034_v14  ;;  %1301 = vmatpush2.msra.mxu1 %v1165_v21  ;;  %v1134_v51 = vld [vmem:[#allocation8 + $0x6c8] sm:$0xff]  ;;  %v613_v14 = vlaneseq }
 0x11d   : > { %1232 = vmatpush2.msra.mxu0 %v1033_v16  ;;  %1302 = vmatprep.subr.mxu1 %v1162_v23  ;;  %v990_v54 = vld [vmem:[#allocation8 + $0x248] sm:$0xff] }
 0x11e   : > { %1233 = vmatprep.subr.mxu0 %v1030_v18  ;;  %1303 = vmatpush2.msra.mxu1 %v1161_v25  ;;  %v1130_v55 = vld [vmem:[#allocation8 + $0x6a8] sm:$0xff]  ;;  %v2736_v15 = vshrl.u32 %v613_v14, 7  ;;  %v979_v25 = vld [vmem:[#allocation8 + $0x1f0] sm:$0xff]  ;;  %v1008_v14 = vld [vmem:[#allocation8 + $0x2d8] sm:$0xff] }
 0x11f   : > { %1234 = vmatpush2.msra.mxu0 %v1029_v63  ;;  %1304 = vmatprep.subr.mxu1 %v1158_v27  ;;  %v986_v58 = vld [vmem:[#allocation8 + $0x228] sm:$0xff]  ;;  %v975_v27 = vld [vmem:[#allocation8 + $0x1d0] sm:$0xff] }
 0x120   : > { %1235 = vmatprep.subr.mxu0 %v1026_v2  ;;  %1305 = vmatpush2.msra.mxu1 %v1157_v29  ;;  %v1126_v59 = vld [vmem:[#allocation8 + $0x688] sm:$0xff]  ;;  %v2739_v16 = vsub.s32 0, %v2736_v15  ;;  %v2744_v18 = vsub.s32 1, %v2736_v15  ;;  %v971_v29 = vld [vmem:[#allocation8 + $0x1b0] sm:$0xff] }
 0x121   : > { %1236 = vmatpush2.msra.mxu0 %v1025_v5  ;;  %1306 = vmatprep.subr.mxu1 %v1154_v31  ;;  %v982_v62 = vld [vmem:[#allocation8 + $0x208] sm:$0xff]  ;;  %v967_v31 = vld [vmem:[#allocation8 + $0x190] sm:$0xff] }
 0x122   : > { %1237 = vmatprep.subr.mxu0 %v1022_v22  ;;  %1307 = vmatpush2.msra.mxu1 %v1153_v33  ;;  %v1122_v0 = vld [vmem:[#allocation8 + $0x668] sm:$0xff]  ;;  %v616_v19 = vrot.slane %v2741_v17, %v2739_v16  ;;  %v620_v63 = vrot.slane %v2741_v17, %v2744_v18  ;;  %v963_v33 = vld [vmem:[#allocation8 + $0x170] sm:$0xff] }
 0x123   : > { %1238 = vmatpush2.msra.mxu0 %v1021_v24  ;;  %1308 = vmatprep.subr.mxu1 %v1150_v35  ;;  %v1118_v7 = vld [vmem:[#allocation8 + $0x648] sm:$0xff]  ;;  %v959_v35 = vld [vmem:[#allocation8 + $0x150] sm:$0xff] }
 0x124   : > { %1239 = vmatprep.subr.mxu0 %v1018_v26  ;;  %1309 = vmatpush2.msra.mxu1 %v1149_v37  ;;  %v1114_v9 = vld [vmem:[#allocation8 + $0x628] sm:$0xff]  ;;  %v976_v26 = vld [vmem:[#allocation8 + $0x1d8] sm:$0xff]  ;;  %v955_v37 = vld [vmem:[#allocation8 + $0x130] sm:$0xff] }
 0x125   : > { %1240 = vmatpush2.msra.mxu0 %v1017_v28  ;;  %1310 = vmatprep.subr.mxu1 %v1146_v39  ;;  %v1110_v11 = vld [vmem:[#allocation8 + $0x608] sm:$0xff]  ;;  %v972_v28 = vld [vmem:[#allocation8 + $0x1b8] sm:$0xff]  ;;  %v951_v39 = vld [vmem:[#allocation8 + $0x110] sm:$0xff] }
 0x126   : > { %1241 = vmatprep.subr.mxu0 %v1014_v30  ;;  %1311 = vmatpush2.msra.mxu1 %v1145_v41  ;;  %v968_v30 = vld [vmem:[#allocation8 + $0x198] sm:$0xff]  ;;  %v947_v41 = vld [vmem:[#allocation8 + $0xf0] sm:$0xff] }
 0x127   : > { %1242 = vmatpush2.msra.mxu0 %v1013_v32  ;;  %1312 = vmatprep.subr.mxu1 %v1142_v43  ;;  %v964_v32 = vld [vmem:[#allocation8 + $0x178] sm:$0xff]  ;;  %v943_v43 = vld [vmem:[#allocation8 + $0xd0] sm:$0xff] }
 0x128   : > { %1243 = vmatprep.subr.mxu0 %v1010_v34  ;;  %1313 = vmatpush2.msra.mxu1 %v1141_v45  ;;  %v960_v34 = vld [vmem:[#allocation8 + $0x158] sm:$0xff]  ;;  %v939_v45 = vld [vmem:[#allocation8 + $0xb0] sm:$0xff] }
 0x129   : > { %1244 = vmatpush2.msra.mxu0 %v1009_v36  ;;  %1314 = vmatprep.subr.mxu1 %v1138_v47  ;;  %v956_v36 = vld [vmem:[#allocation8 + $0x138] sm:$0xff]  ;;  %v935_v47 = vld [vmem:[#allocation8 + $0x90] sm:$0xff] }
 0x12a   : > { %1245 = vmatprep.subr.mxu0 %v1006_v38  ;;  %1315 = vmatpush2.msra.mxu1 %v1137_v49  ;;  %v952_v38 = vld [vmem:[#allocation8 + $0x118] sm:$0xff]  ;;  %v931_v49 = vld [vmem:[#allocation8 + $0x70] sm:$0xff] }
 0x12b   : > { %1246 = vmatpush2.msra.mxu0 %v1005_v40  ;;  %1316 = vmatprep.subr.mxu1 %v1134_v51  ;;  %v948_v40 = vld [vmem:[#allocation8 + $0xf8] sm:$0xff]  ;;  %v927_v51 = vld [vmem:[#allocation8 + $0x50] sm:$0xff] }
 0x12c   : > { %1247 = vmatprep.subr.mxu0 %v1002_v42  ;;  %1317 = vmatpush2.msra.mxu1 %v1133_v53  ;;  %v944_v42 = vld [vmem:[#allocation8 + $0xd8] sm:$0xff]  ;;  %v923_v53 = vld [vmem:[#allocation8 + $0x30] sm:$0xff] }
 0x12d   : > { %1248 = vmatpush2.msra.mxu0 %v1001_v44  ;;  %1318 = vmatprep.subr.mxu1 %v1130_v55  ;;  %v940_v44 = vld [vmem:[#allocation8 + $0xb8] sm:$0xff]  ;;  %v919_v55 = vld [vmem:[#allocation8 + $0x10] sm:$0xff] }
 0x12e   : > { %1249 = vmatprep.subr.mxu0 %v998_v46  ;;  %1319 = vmatpush2.msra.mxu1 %v1129_v57  ;;  %v936_v46 = vld [vmem:[#allocation8 + $0x98] sm:$0xff]  ;;  %v1043_v57 = vld [vmem:[#allocation8 + $0x3f0] sm:$0xff] }
 0x12f   : > { %1250 = vmatpush2.msra.mxu0 %v997_v48  ;;  %1320 = vmatprep.subr.mxu1 %v1126_v59  ;;  %v932_v48 = vld [vmem:[#allocation8 + $0x78] sm:$0xff]  ;;  %v1039_v59 = vld [vmem:[#allocation8 + $0x3d0] sm:$0xff] }
 0x130   : > { %1251 = vmatprep.subr.mxu0 %v994_v50  ;;  %1321 = vmatpush2.msra.mxu1 %v1125_v61  ;;  %v928_v50 = vld [vmem:[#allocation8 + $0x58] sm:$0xff]  ;;  %v1035_v61 = vld [vmem:[#allocation8 + $0x3b0] sm:$0xff] }
 0x131   : > { %1252 = vmatpush2.msra.mxu0 %v993_v52  ;;  %1322 = vmatprep.subr.mxu1 %v1122_v0  ;;  %v924_v52 = vld [vmem:[#allocation8 + $0x38] sm:$0xff]  ;;  %v1031_v0 = vld [vmem:[#allocation8 + $0x390] sm:$0xff] }
 0x132   : > { %1253 = vmatprep.subr.mxu0 %v990_v54  ;;  %1323 = vmatpush2.msra.mxu1 %v1121_v6  ;;  %v920_v54 = vld [vmem:[#allocation8 + $0x18] sm:$0xff] }
 0x133   : > { %1254 = vmatpush2.msra.mxu0 %v989_v56  ;;  %1324 = vmatprep.subr.mxu1 %v1118_v7  ;;  %v1044_v56 = vld [vmem:[#allocation8 + $0x3f8] sm:$0xff]  ;;  %v1023_v7 = vld [vmem:[#allocation8 + $0x350] sm:$0xff] }
 0x134   : > { %1255 = vmatprep.subr.mxu0 %v986_v58  ;;  %1325 = vmatpush2.msra.mxu1 %v1117_v8  ;;  %v1040_v58 = vld [vmem:[#allocation8 + $0x3d8] sm:$0xff] }
 0x135   : > { %1256 = vmatpush2.msra.mxu0 %v985_v60  ;;  %1326 = vmatprep.subr.mxu1 %v1114_v9  ;;  %v1036_v60 = vld [vmem:[#allocation8 + $0x3b8] sm:$0xff]  ;;  %v1019_v9 = vld [vmem:[#allocation8 + $0x330] sm:$0xff] }
 0x136   : > { %1257 = vmatprep.subr.mxu0 %v982_v62  ;;  %1327 = vmatpush2.msra.mxu1 %v1113_v10  ;;  %v1032_v62 = vld [vmem:[#allocation8 + $0x398] sm:$0xff] }
 0x137   : > { %1258 = vmatpush2.msra.mxu0 %v981_v3  ;;  %1328 = vmatprep.subr.mxu1 %v1110_v11  ;;  %v1028_v3 = vld [vmem:[#allocation8 + $0x378] sm:$0xff]  ;;  %v1015_v11 = vld [vmem:[#allocation8 + $0x310] sm:$0xff] }
 0x138   : > { %1337 = vmatprep.subr.mxu0 %v980_v4  ;;  %1329 = vmatpush2.msra.mxu1 %v1109_v12  ;;  %v1027_v4 = vld [vmem:[#allocation8 + $0x370] sm:$0xff]  ;;  %v1024_v6 = vld [vmem:[#allocation8 + $0x358] sm:$0xff] }
 0x139   : > { %1408 = vmatprep.subr.mxu1 %v1108_v13  ;;  %v1020_v8 = vld [vmem:[#allocation8 + $0x338] sm:$0xff]  ;;  %v1011_v13 = vld [vmem:[#allocation8 + $0x2f0] sm:$0xff] }
 0x13a   : > { %v1016_v10 = vld [vmem:[#allocation8 + $0x318] sm:$0xff] }
 0x13b   : > { %v1012_v12 = vld [vmem:[#allocation8 + $0x2f8] sm:$0xff] }
 0x175   : > { %v699_v20 = vpop.f32.mrf.mxu0 }
 0x176   : > { %v700_v2 = vadd.f32 %v699_v20, %v616_v19  ;;  %v1007_v19 = vld [vmem:[#allocation8 + $0x2d0] sm:$0xff] }
 0x177   : > { %v770_v1 = vpop.f32.mrf.mxu1  ;;  %v701_v5 = vpop.f32.mrf.mxu0  ;;  %v1003_v20 = vld [vmem:[#allocation8 + $0x2b0] sm:$0xff] }
 0x178   : > { %v702_v21 = vadd.f32 %v701_v5, %v620_v63  ;;  %v2750_v24 = vadd.f32 %v770_v1, %v700_v2  ;;  %v1004_v63 = vld [vmem:[#allocation8 + $0x2b8] sm:$0xff]  ;;  %v999_v1 = vld [vmem:[#allocation8 + $0x290] sm:$0xff] }
 0x179   : > { %v772_v22 = vpop.f32.mrf.mxu1  ;;  %v1000_v2 = vld [vmem:[#allocation8 + $0x298] sm:$0xff] }
 0x17a   : > { %v773_v23 = vadd.f32 %v772_v22, %v702_v21  ;;  %v996_v5 = vld [vmem:[#allocation8 + $0x278] sm:$0xff]  ;;  %v2754_v21 = vsub.s32 2, %v2736_v15  ;;  %v995_v22 = vld [vmem:[#allocation8 + $0x270] sm:$0xff] }
 0x17c   : > { %1259 = vmatprep.mubr.f32.mxu0 %v773_v23 }
 0x17d   : > { %1260 = vmatmul.mubr.f32.vlgmr.msra.gmra.mxu0 %v2750_v24 }
 0x17e   : > { %1338 = vmatpush1.msra.mxu0 %v979_v25  ;;  %1401 = vmatprep.mubr.f32.mxu0 %v773_v23  ;;  %v2757_v23 = vsub.s32 3, %v2736_v15  ;;  %v992_v25 = vld [vmem:[#allocation8 + $0x258] sm:$0xff]  ;;  %v983_v15 = vld [vmem:[#allocation8 + $0x210] sm:$0xff] }
 0x17f   : > { %1339 = vmatprep.subr.mxu0 %v976_v26  ;;  %v991_v26 = vld [vmem:[#allocation8 + $0x250] sm:$0xff] }
 0x180   : > { %1340 = vmatpush1.msra.mxu0 %v975_v27  ;;  %v624_v27 = vrot.slane %v2741_v17, %v2754_v21 }
 0x181   : > { %1341 = vmatprep.subr.mxu0 %v972_v28  ;;  %v988_v28 = vld [vmem:[#allocation8 + $0x238] sm:$0xff] }
 0x182   : > { %1342 = vmatpush1.msra.mxu0 %v971_v29  ;;  %v628_v29 = vrot.slane %v2741_v17, %v2757_v23  ;;  %v1107_v17 = vld [vmem:[#allocation8 + $0x5f0] sm:$0xff] }
 0x183   : > { %1343 = vmatprep.subr.mxu0 %v968_v30  ;;  %v987_v30 = vld [vmem:[#allocation8 + $0x230] sm:$0xff] }
 0x184   : > { %1344 = vmatpush1.msra.mxu0 %v967_v31 }
 0x185   : > { %1345 = vmatprep.subr.mxu0 %v964_v32 }
 0x186   : > { %1346 = vmatpush1.msra.mxu0 %v963_v33  ;;  %v984_v33 = vld [vmem:[#allocation8 + $0x218] sm:$0xff] }
 0x187   : > { %1347 = vmatprep.subr.mxu0 %v960_v34 }
 0x188   : > { %1348 = vmatpush1.msra.mxu0 %v959_v35 }
 0x189   : > { %1349 = vmatprep.subr.mxu0 %v956_v36 }
 0x18a   : > { %1350 = vmatpush1.msra.mxu0 %v955_v37 }
 0x18b   : > { %1351 = vmatprep.subr.mxu0 %v952_v38 }
 0x18c   : > { %1352 = vmatpush1.msra.mxu0 %v951_v39 }
 0x18d   : > { %1353 = vmatprep.subr.mxu0 %v948_v40  ;;  %v1104_v40 = vld [vmem:[#allocation8 + $0x5d8] sm:$0xff] }
 0x18e   : > { %1354 = vmatpush1.msra.mxu0 %v947_v41  ;;  %v1103_v41 = vld [vmem:[#allocation8 + $0x5d0] sm:$0xff] }
 0x18f   : > { %1355 = vmatprep.subr.mxu0 %v944_v42  ;;  %v1540_v42 = vld [vmem:[#allocation10 + $0x1e8] sm:$0xff] }
 0x190   : > { %1356 = vmatpush1.msra.mxu0 %v943_v43  ;;  %v1539_v43 = vld [vmem:[#allocation10 + $0x1e0] sm:$0xff] }
 0x191   : > { %1357 = vmatprep.subr.mxu0 %v940_v44  ;;  %v1100_v44 = vld [vmem:[#allocation8 + $0x5b8] sm:$0xff] }
 0x192   : > { %1358 = vmatpush1.msra.mxu0 %v939_v45  ;;  %v1536_v45 = vld [vmem:[#allocation10 + $0x1c8] sm:$0xff] }
 0x193   : > { %1359 = vmatprep.subr.mxu0 %v936_v46  ;;  %v1099_v46 = vld [vmem:[#allocation8 + $0x5b0] sm:$0xff] }
 0x194   : > { %1360 = vmatpush1.msra.mxu0 %v935_v47  ;;  %v1535_v47 = vld [vmem:[#allocation10 + $0x1c0] sm:$0xff] }
 0x195   : > { %1361 = vmatprep.subr.mxu0 %v932_v48  ;;  %v1532_v48 = vld [vmem:[#allocation10 + $0x1a8] sm:$0xff] }
 0x196   : > { %1362 = vmatpush1.msra.mxu0 %v931_v49  ;;  %v1095_v49 = vld [vmem:[#allocation8 + $0x590] sm:$0xff] }
 0x197   : > { %1363 = vmatprep.subr.mxu0 %v928_v50  ;;  %v1531_v50 = vld [vmem:[#allocation10 + $0x1a0] sm:$0xff] }
 0x198   : > { %1364 = vmatpush1.msra.mxu0 %v927_v51  ;;  %v1092_v51 = vld [vmem:[#allocation8 + $0x578] sm:$0xff] }
 0x199   : > { %1365 = vmatprep.subr.mxu0 %v924_v52  ;;  %v1528_v52 = vld [vmem:[#allocation10 + $0x188] sm:$0xff] }
 0x19a   : > { %1366 = vmatpush1.msra.mxu0 %v923_v53  ;;  %v1091_v53 = vld [vmem:[#allocation8 + $0x570] sm:$0xff] }
 0x19b   : > { %1367 = vmatprep.subr.mxu0 %v920_v54  ;;  %v1527_v54 = vld [vmem:[#allocation10 + $0x180] sm:$0xff] }
 0x19c   : > { %1368 = vmatpush1.msra.mxu0 %v919_v55  ;;  %v1088_v55 = vld [vmem:[#allocation8 + $0x558] sm:$0xff] }
 0x19d   : > { %1369 = vmatprep.subr.mxu0 %v1044_v56  ;;  %v1524_v56 = vld [vmem:[#allocation10 + $0x168] sm:$0xff] }
 0x19e   : > { %1370 = vmatpush2.msra.mxu0 %v1043_v57  ;;  %v1087_v57 = vld [vmem:[#allocation8 + $0x550] sm:$0xff] }
 0x19f   : > { %1371 = vmatprep.subr.mxu0 %v1040_v58  ;;  %v1523_v58 = vld [vmem:[#allocation10 + $0x160] sm:$0xff] }
 0x1a0   : > { %1372 = vmatpush2.msra.mxu0 %v1039_v59  ;;  %v1084_v59 = vld [vmem:[#allocation8 + $0x538] sm:$0xff] }
 0x1a1   : > { %1373 = vmatprep.subr.mxu0 %v1036_v60  ;;  %v1520_v60 = vld [vmem:[#allocation10 + $0x148] sm:$0xff] }
 0x1a2   : > { %1374 = vmatpush2.msra.mxu0 %v1035_v61  ;;  %v1083_v61 = vld [vmem:[#allocation8 + $0x530] sm:$0xff] }
 0x1a3   : > { %1375 = vmatprep.subr.mxu0 %v1032_v62  ;;  %v1519_v62 = vld [vmem:[#allocation10 + $0x140] sm:$0xff] }
 0x1a4   : > { %1376 = vmatpush2.msra.mxu0 %v1031_v0  ;;  %v1080_v0 = vld [vmem:[#allocation8 + $0x518] sm:$0xff] }
 0x1a5   : > { %1377 = vmatprep.subr.mxu0 %v1028_v3  ;;  %v1516_v3 = vld [vmem:[#allocation10 + $0x128] sm:$0xff] }
 0x1a6   : > { %1378 = vmatpush2.msra.mxu0 %v1027_v4  ;;  %v1079_v4 = vld [vmem:[#allocation8 + $0x510] sm:$0xff] }
 0x1a7   : > { %1379 = vmatprep.subr.mxu0 %v1024_v6  ;;  %v1515_v6 = vld [vmem:[#allocation10 + $0x120] sm:$0xff] }
 0x1a8   : > { %1380 = vmatpush2.msra.mxu0 %v1023_v7  ;;  %v1076_v7 = vld [vmem:[#allocation8 + $0x4f8] sm:$0xff] }
 0x1a9   : > { %1381 = vmatprep.subr.mxu0 %v1020_v8  ;;  %v1512_v8 = vld [vmem:[#allocation10 + $0x108] sm:$0xff] }
 0x1aa   : > { %1382 = vmatpush2.msra.mxu0 %v1019_v9  ;;  %v1075_v9 = vld [vmem:[#allocation8 + $0x4f0] sm:$0xff] }
 0x1ab   : > { %1383 = vmatprep.subr.mxu0 %v1016_v10  ;;  %v1511_v10 = vld [vmem:[#allocation10 + $0x100] sm:$0xff] }
 0x1ac   : > { %1384 = vmatpush2.msra.mxu0 %v1015_v11  ;;  %v1072_v11 = vld [vmem:[#allocation8 + $0x4d8] sm:$0xff] }
 0x1ad   : > { %1385 = vmatprep.subr.mxu0 %v1012_v12  ;;  %v1508_v12 = vld [vmem:[#allocation10 + $0xe8] sm:$0xff] }
 0x1ae   : > { %1386 = vmatpush2.msra.mxu0 %v1011_v13  ;;  %v1071_v13 = vld [vmem:[#allocation8 + $0x4d0] sm:$0xff] }
 0x1af   : > { %1387 = vmatprep.subr.mxu0 %v1008_v14  ;;  %v1507_v14 = vld [vmem:[#allocation10 + $0xe0] sm:$0xff] }
 0x1b0   : > { %1388 = vmatpush2.msra.mxu0 %v1007_v19  ;;  %v1068_v19 = vld [vmem:[#allocation8 + $0x4b8] sm:$0xff] }
 0x1b1   : > { %1389 = vmatprep.subr.mxu0 %v1004_v63  ;;  %v1504_v63 = vld [vmem:[#allocation10 + $0xc8] sm:$0xff] }
 0x1b2   : > { %1390 = vmatpush2.msra.mxu0 %v1003_v20  ;;  %v1067_v20 = vld [vmem:[#allocation8 + $0x4b0] sm:$0xff] }
 0x1b3   : > { %1391 = vmatprep.subr.mxu0 %v1000_v2  ;;  %v1503_v2 = vld [vmem:[#allocation10 + $0xc0] sm:$0xff] }
 0x1b4   : > { %1392 = vmatpush2.msra.mxu0 %v999_v1  ;;  %v1064_v1 = vld [vmem:[#allocation8 + $0x498] sm:$0xff] }
 0x1b5   : > { %1393 = vmatprep.subr.mxu0 %v996_v5  ;;  %v1500_v5 = vld [vmem:[#allocation10 + $0xa8] sm:$0xff] }
 0x1b6   : > { %1394 = vmatpush2.msra.mxu0 %v995_v22  ;;  %v1063_v22 = vld [vmem:[#allocation8 + $0x490] sm:$0xff] }
 0x1b7   : > { %1395 = vmatprep.subr.mxu0 %v992_v25  ;;  %v841_v31 = vpop.f32.mrf.mxu0  ;;  %v1499_v25 = vld [vmem:[#allocation10 + $0xa0] sm:$0xff] }
 0x1b8   : > { %v912_v32 = vpop.f32.mrf.mxu1  ;;  %1396 = vmatpush2.msra.mxu0 %v991_v26  ;;  %v842_v34 = vadd.f32 %v841_v31, %v624_v27  ;;  %v1060_v26 = vld [vmem:[#allocation8 + $0x478] sm:$0xff]  ;;  %v1496_v27 = vld [vmem:[#allocation10 + $0x88] sm:$0xff] }
 0x1b9   : > { %1397 = vmatprep.subr.mxu0 %v988_v28  ;;  %v843_v35 = vpop.f32.mrf.mxu0  ;;  %v1059_v28 = vld [vmem:[#allocation8 + $0x470] sm:$0xff]  ;;  %v1492_v31 = vld [vmem:[#allocation10 + $0x68] sm:$0xff] }
 0x1ba   : > { %1398 = vmatpush2.msra.mxu0 %v987_v30  ;;  %v844_v36 = vadd.f32 %v843_v35, %v628_v29  ;;  %v914_v37 = vpop.f32.mrf.mxu1  ;;  %v2764_v39 = vadd.f32 %v912_v32, %v842_v34  ;;  %v1495_v29 = vld [vmem:[#allocation10 + $0x80] sm:$0xff]  ;;  %v1056_v30 = vld [vmem:[#allocation8 + $0x458] sm:$0xff]  ;;  %v1055_v32 = vld [vmem:[#allocation8 + $0x450] sm:$0xff] }
 0x1bb   : > { %1399 = vmatprep.subr.mxu0 %v984_v33  ;;  %v1491_v33 = vld [vmem:[#allocation10 + $0x60] sm:$0xff]  ;;  %v1488_v34 = vld [vmem:[#allocation10 + $0x48] sm:$0xff]  ;;  %v1051_v35 = vld [vmem:[#allocation8 + $0x430] sm:$0xff] }
 0x1bc   : > { %1400 = vmatpush2.msra.mxu0 %v983_v15  ;;  %v915_v38 = vadd.f32 %v914_v37, %v844_v36  ;;  %v1052_v15 = vld [vmem:[#allocation8 + $0x438] sm:$0xff]  ;;  %v1487_v36 = vld [vmem:[#allocation10 + $0x40] sm:$0xff] }
 0x1bd   : > { %1402 = vmatmul.mubr.f32.vlgmr.msra.gmra.mxu0 %v2750_v24  ;;  %1757 = vmatprep.subr.mxu0 %v1540_v42  ;;  %v1096_v24 = vld [vmem:[#allocation8 + $0x598] sm:$0xff]  ;;  %v1480_v42 = vld [vmem:[#allocation10 + $0x8] sm:$0xff] }
 0x1be   : > { %1330 = vmatprep.mubr.f32.mxu1 %v915_v38  ;;  %1758 = vmatpush1.msra.mxu0 %v1539_v43  ;;  %v1048_v37 = vld [vmem:[#allocation8 + $0x418] sm:$0xff]  ;;  %v1171_v43 = vld [vmem:[#allocation8 + $0x7f0] sm:$0xff] }
 0x1bf   : > { %1331 = vmatmul.mubr.f32.vlgmr.msra.gmra.mxu1 %v2764_v39  ;;  %1759 = vmatprep.subr.mxu0 %v1536_v45  ;;  %v1168_v45 = vld [vmem:[#allocation8 + $0x7d8] sm:$0xff] }
 0x1c0   : > { %1409 = vmatpush1.msra.mxu1 %v1107_v17  ;;  %1472 = vmatprep.mubr.f32.mxu1 %v915_v38  ;;  %v1484_v38 = vld [vmem:[#allocation10 + $0x28] sm:$0xff]  ;;  %v1047_v17 = vld [vmem:[#allocation8 + $0x410] sm:$0xff] }
 0x1c1   : > { %1410 = vmatprep.subr.mxu1 %v1104_v40  ;;  %1760 = vmatpush1.msra.mxu0 %v1535_v47  ;;  %v1483_v40 = vld [vmem:[#allocation10 + $0x20] sm:$0xff]  ;;  %v1167_v47 = vld [vmem:[#allocation8 + $0x7d0] sm:$0xff] }
 0x1c2   : > { %1411 = vmatpush1.msra.mxu1 %v1103_v41  ;;  %1761 = vmatprep.subr.mxu0 %v1532_v48  ;;  %v1172_v41 = vld [vmem:[#allocation8 + $0x7f8] sm:$0xff] }
 0x1c3   : > { %1412 = vmatprep.subr.mxu1 %v1100_v44  ;;  %1762 = vmatpush1.msra.mxu0 %v1531_v50  ;;  %v1479_v44 = vld [vmem:[#allocation10] sm:$0xff]  ;;  %v1164_v48 = vld [vmem:[#allocation8 + $0x7b8] sm:$0xff]  ;;  %v1163_v50 = vld [vmem:[#allocation8 + $0x7b0] sm:$0xff] }
 0x1c4   : > { %1413 = vmatpush1.msra.mxu1 %v1099_v46  ;;  %1763 = vmatprep.subr.mxu0 %v1528_v52  ;;  %v1604_v46 = vld [vmem:[#allocation10 + $0x3e8] sm:$0xff]  ;;  %v1160_v52 = vld [vmem:[#allocation8 + $0x798] sm:$0xff] }
 0x1c5   : > { %1414 = vmatprep.subr.mxu1 %v1096_v24  ;;  %1764 = vmatpush1.msra.mxu0 %v1527_v54  ;;  %v1603_v24 = vld [vmem:[#allocation10 + $0x3e0] sm:$0xff]  ;;  %v1159_v54 = vld [vmem:[#allocation8 + $0x790] sm:$0xff] }
 0x1c6   : > { %1415 = vmatpush1.msra.mxu1 %v1095_v49  ;;  %1765 = vmatprep.subr.mxu0 %v1524_v56  ;;  %v1600_v49 = vld [vmem:[#allocation10 + $0x3c8] sm:$0xff]  ;;  %v1156_v56 = vld [vmem:[#allocation8 + $0x778] sm:$0xff] }
 0x1c7   : > { %1416 = vmatprep.subr.mxu1 %v1092_v51  ;;  %1766 = vmatpush1.msra.mxu0 %v1523_v58  ;;  %v1599_v51 = vld [vmem:[#allocation10 + $0x3c0] sm:$0xff]  ;;  %v1155_v58 = vld [vmem:[#allocation8 + $0x770] sm:$0xff] }
 0x1c8   : > { %1417 = vmatpush1.msra.mxu1 %v1091_v53  ;;  %1767 = vmatprep.subr.mxu0 %v1520_v60  ;;  %v1596_v53 = vld [vmem:[#allocation10 + $0x3a8] sm:$0xff]  ;;  %v1152_v60 = vld [vmem:[#allocation8 + $0x758] sm:$0xff] }
 0x1c9   : > { %1418 = vmatprep.subr.mxu1 %v1088_v55  ;;  %1768 = vmatpush1.msra.mxu0 %v1519_v62  ;;  %v1595_v55 = vld [vmem:[#allocation10 + $0x3a0] sm:$0xff]  ;;  %v1151_v62 = vld [vmem:[#allocation8 + $0x750] sm:$0xff] }
 0x1ca   : > { %1419 = vmatpush1.msra.mxu1 %v1087_v57  ;;  %1769 = vmatprep.subr.mxu0 %v1516_v3  ;;  %v1592_v57 = vld [vmem:[#allocation10 + $0x388] sm:$0xff]  ;;  %v1148_v3 = vld [vmem:[#allocation8 + $0x738] sm:$0xff] }
 0x1cb   : > { %1420 = vmatprep.subr.mxu1 %v1084_v59  ;;  %1770 = vmatpush1.msra.mxu0 %v1515_v6  ;;  %v1591_v59 = vld [vmem:[#allocation10 + $0x380] sm:$0xff]  ;;  %v1147_v6 = vld [vmem:[#allocation8 + $0x730] sm:$0xff] }
 0x1cc   : > { %1421 = vmatpush1.msra.mxu1 %v1083_v61  ;;  %1771 = vmatprep.subr.mxu0 %v1512_v8  ;;  %v1588_v61 = vld [vmem:[#allocation10 + $0x368] sm:$0xff]  ;;  %v1144_v8 = vld [vmem:[#allocation8 + $0x718] sm:$0xff] }
 0x1cd   : > { %1422 = vmatprep.subr.mxu1 %v1080_v0  ;;  %1772 = vmatpush1.msra.mxu0 %v1511_v10  ;;  %v1587_v0 = vld [vmem:[#allocation10 + $0x360] sm:$0xff]  ;;  %v1143_v10 = vld [vmem:[#allocation8 + $0x710] sm:$0xff] }
 0x1ce   : > { %1423 = vmatpush1.msra.mxu1 %v1079_v4  ;;  %1773 = vmatprep.subr.mxu0 %v1508_v12  ;;  %v1584_v4 = vld [vmem:[#allocation10 + $0x348] sm:$0xff]  ;;  %v1140_v12 = vld [vmem:[#allocation8 + $0x6f8] sm:$0xff] }
 0x1cf   : > { %1424 = vmatprep.subr.mxu1 %v1076_v7  ;;  %1774 = vmatpush1.msra.mxu0 %v1507_v14  ;;  %v1583_v7 = vld [vmem:[#allocation10 + $0x340] sm:$0xff]  ;;  %v1139_v14 = vld [vmem:[#allocation8 + $0x6f0] sm:$0xff] }
 0x1d0   : > { %1425 = vmatpush1.msra.mxu1 %v1075_v9  ;;  %1775 = vmatprep.subr.mxu0 %v1504_v63  ;;  %v1580_v9 = vld [vmem:[#allocation10 + $0x328] sm:$0xff]  ;;  %v1136_v63 = vld [vmem:[#allocation8 + $0x6d8] sm:$0xff] }
 0x1d1   : > { %1426 = vmatprep.subr.mxu1 %v1072_v11  ;;  %1776 = vmatpush1.msra.mxu0 %v1503_v2  ;;  %v1579_v11 = vld [vmem:[#allocation10 + $0x320] sm:$0xff]  ;;  %v1135_v2 = vld [vmem:[#allocation8 + $0x6d0] sm:$0xff] }
 0x1d2   : > { %1427 = vmatpush1.msra.mxu1 %v1071_v13  ;;  %1777 = vmatprep.subr.mxu0 %v1500_v5  ;;  %v1576_v13 = vld [vmem:[#allocation10 + $0x308] sm:$0xff]  ;;  %v1132_v5 = vld [vmem:[#allocation8 + $0x6b8] sm:$0xff] }
 0x1d3   : > { %1428 = vmatprep.subr.mxu1 %v1068_v19  ;;  %1778 = vmatpush1.msra.mxu0 %v1499_v25  ;;  %v1575_v19 = vld [vmem:[#allocation10 + $0x300] sm:$0xff]  ;;  %v1131_v25 = vld [vmem:[#allocation8 + $0x6b0] sm:$0xff] }
 0x1d4   : > { %1429 = vmatpush1.msra.mxu1 %v1067_v20  ;;  %1779 = vmatprep.subr.mxu0 %v1496_v27  ;;  %v1572_v20 = vld [vmem:[#allocation10 + $0x2e8] sm:$0xff]  ;;  %v1128_v27 = vld [vmem:[#allocation8 + $0x698] sm:$0xff] }
 0x1d5   : > { %1430 = vmatprep.subr.mxu1 %v1064_v1  ;;  %1780 = vmatpush1.msra.mxu0 %v1495_v29  ;;  %v1571_v1 = vld [vmem:[#allocation10 + $0x2e0] sm:$0xff]  ;;  %v1127_v29 = vld [vmem:[#allocation8 + $0x690] sm:$0xff] }
 0x1d6   : > { %1431 = vmatpush1.msra.mxu1 %v1063_v22  ;;  %1781 = vmatprep.subr.mxu0 %v1492_v31  ;;  %v1568_v22 = vld [vmem:[#allocation10 + $0x2c8] sm:$0xff]  ;;  %v1124_v31 = vld [vmem:[#allocation8 + $0x678] sm:$0xff] }
 0x1d7   : > { %1432 = vmatprep.subr.mxu1 %v1060_v26  ;;  %1782 = vmatpush1.msra.mxu0 %v1491_v33  ;;  %v1567_v26 = vld [vmem:[#allocation10 + $0x2c0] sm:$0xff]  ;;  %v1123_v33 = vld [vmem:[#allocation8 + $0x670] sm:$0xff] }
 0x1d8   : > { %1433 = vmatpush1.msra.mxu1 %v1059_v28  ;;  %1783 = vmatprep.subr.mxu0 %v1488_v34  ;;  %v1564_v28 = vld [vmem:[#allocation10 + $0x2a8] sm:$0xff]  ;;  %v1120_v34 = vld [vmem:[#allocation8 + $0x658] sm:$0xff] }
 0x1d9   : > { %1434 = vmatprep.subr.mxu1 %v1056_v30  ;;  %1784 = vmatpush1.msra.mxu0 %v1487_v36  ;;  %v1563_v30 = vld [vmem:[#allocation10 + $0x2a0] sm:$0xff]  ;;  %v1119_v36 = vld [vmem:[#allocation8 + $0x650] sm:$0xff] }
 0x1da   : > { %1435 = vmatpush1.msra.mxu1 %v1055_v32  ;;  %1785 = vmatprep.subr.mxu0 %v1484_v38  ;;  %v1560_v32 = vld [vmem:[#allocation10 + $0x288] sm:$0xff]  ;;  %v1116_v38 = vld [vmem:[#allocation8 + $0x638] sm:$0xff] }
 0x1db   : > { %1436 = vmatprep.subr.mxu1 %v1052_v15  ;;  %1786 = vmatpush1.msra.mxu0 %v1483_v40  ;;  %v1559_v15 = vld [vmem:[#allocation10 + $0x280] sm:$0xff]  ;;  %v1112_v40 = vld [vmem:[#allocation8 + $0x618] sm:$0xff] }
 0x1dc   : > { %1437 = vmatpush1.msra.mxu1 %v1051_v35  ;;  %1787 = vmatprep.subr.mxu0 %v1480_v42  ;;  %v1556_v35 = vld [vmem:[#allocation10 + $0x268] sm:$0xff] }
 0x1dd   : > { %1438 = vmatprep.subr.mxu1 %v1048_v37  ;;  %1788 = vmatpush1.msra.mxu0 %v1479_v44  ;;  %v1555_v37 = vld [vmem:[#allocation10 + $0x260] sm:$0xff]  ;;  %v1552_v42 = vld [vmem:[#allocation10 + $0x248] sm:$0xff] }
 0x1de   : > { %1439 = vmatpush1.msra.mxu1 %v1047_v17  ;;  %1789 = vmatprep.subr.mxu0 %v1604_v46  ;;  %v1115_v17 = vld [vmem:[#allocation8 + $0x630] sm:$0xff]  ;;  %v1548_v44 = vld [vmem:[#allocation10 + $0x228] sm:$0xff] }
 0x1df   : > { %1440 = vmatprep.subr.mxu1 %v1172_v41  ;;  %1790 = vmatpush2.msra.mxu0 %v1603_v24  ;;  %v1111_v41 = vld [vmem:[#allocation8 + $0x610] sm:$0xff]  ;;  %v1544_v46 = vld [vmem:[#allocation10 + $0x208] sm:$0xff] }
 0x1e0   : > { %1441 = vmatpush2.msra.mxu1 %v1171_v43  ;;  %1791 = vmatprep.subr.mxu0 %v1600_v49  ;;  %v1551_v43 = vld [vmem:[#allocation10 + $0x240] sm:$0xff]  ;;  %v1668_v24 = vld [vmem:[#allocation10 + $0x5e8] sm:$0xff]  ;;  %v1542_v49 = vld [vmem:[#allocation10 + $0x1f8] sm:$0xff] }
 0x1e1   : > { %1442 = vmatprep.subr.mxu1 %v1168_v45  ;;  %1792 = vmatpush2.msra.mxu0 %v1599_v51  ;;  %v1547_v45 = vld [vmem:[#allocation10 + $0x220] sm:$0xff] }
 0x1e2   : > { %1443 = vmatpush2.msra.mxu1 %v1167_v47  ;;  %1793 = vmatprep.subr.mxu0 %v1596_v53  ;;  %v1543_v47 = vld [vmem:[#allocation10 + $0x200] sm:$0xff]  ;;  %v1656_v53 = vld [vmem:[#allocation10 + $0x588] sm:$0xff] }
 0x1e3   : > { %1444 = vmatprep.subr.mxu1 %v1164_v48  ;;  %1794 = vmatpush2.msra.mxu0 %v1595_v55  ;;  %v1667_v48 = vld [vmem:[#allocation10 + $0x5e0] sm:$0xff]  ;;  %v1652_v55 = vld [vmem:[#allocation10 + $0x568] sm:$0xff] }
 0x1e4   : > { %1445 = vmatpush2.msra.mxu1 %v1163_v50  ;;  %1795 = vmatprep.subr.mxu0 %v1592_v57  ;;  %v1664_v50 = vld [vmem:[#allocation10 + $0x5c8] sm:$0xff]  ;;  %v1663_v51 = vld [vmem:[#allocation10 + $0x5c0] sm:$0xff] }
 0x1e5   : > { %1446 = vmatprep.subr.mxu1 %v1160_v52  ;;  %1796 = vmatpush2.msra.mxu0 %v1591_v59  ;;  %v1659_v52 = vld [vmem:[#allocation10 + $0x5a0] sm:$0xff]  ;;  %v1648_v57 = vld [vmem:[#allocation10 + $0x548] sm:$0xff] }
 0x1e6   : > { %1447 = vmatpush2.msra.mxu1 %v1159_v54  ;;  %1797 = vmatprep.subr.mxu0 %v1588_v61  ;;  %v1655_v54 = vld [vmem:[#allocation10 + $0x580] sm:$0xff]  ;;  %v1644_v59 = vld [vmem:[#allocation10 + $0x528] sm:$0xff] }
 0x1e7   : > { %1448 = vmatprep.subr.mxu1 %v1156_v56  ;;  %1798 = vmatpush2.msra.mxu0 %v1587_v0  ;;  %v1651_v56 = vld [vmem:[#allocation10 + $0x560] sm:$0xff]  ;;  %v1640_v61 = vld [vmem:[#allocation10 + $0x508] sm:$0xff] }
 0x1e8   : > { %1449 = vmatpush2.msra.mxu1 %v1155_v58  ;;  %1799 = vmatprep.subr.mxu0 %v1584_v4  ;;  %v1647_v58 = vld [vmem:[#allocation10 + $0x540] sm:$0xff]  ;;  %v1636_v0 = vld [vmem:[#allocation10 + $0x4e8] sm:$0xff] }
 0x1e9   : > { %1450 = vmatprep.subr.mxu1 %v1152_v60  ;;  %1800 = vmatpush2.msra.mxu0 %v1583_v7  ;;  %v1643_v60 = vld [vmem:[#allocation10 + $0x520] sm:$0xff]  ;;  %v1632_v4 = vld [vmem:[#allocation10 + $0x4c8] sm:$0xff] }
 0x1ea   : > { %1451 = vmatpush2.msra.mxu1 %v1151_v62  ;;  %1801 = vmatprep.subr.mxu0 %v1580_v9  ;;  %v1639_v62 = vld [vmem:[#allocation10 + $0x500] sm:$0xff]  ;;  %v1628_v7 = vld [vmem:[#allocation10 + $0x4a8] sm:$0xff] }
 0x1eb   : > { %1452 = vmatprep.subr.mxu1 %v1148_v3  ;;  %1802 = vmatpush2.msra.mxu0 %v1579_v11  ;;  %v1635_v3 = vld [vmem:[#allocation10 + $0x4e0] sm:$0xff]  ;;  %v1624_v9 = vld [vmem:[#allocation10 + $0x488] sm:$0xff] }
 0x1ec   : > { %1453 = vmatpush2.msra.mxu1 %v1147_v6  ;;  %1803 = vmatprep.subr.mxu0 %v1576_v13  ;;  %v1631_v6 = vld [vmem:[#allocation10 + $0x4c0] sm:$0xff]  ;;  %v1620_v11 = vld [vmem:[#allocation10 + $0x468] sm:$0xff] }
 0x1ed   : > { %1454 = vmatprep.subr.mxu1 %v1144_v8  ;;  %1804 = vmatpush2.msra.mxu0 %v1575_v19  ;;  %v1627_v8 = vld [vmem:[#allocation10 + $0x4a0] sm:$0xff]  ;;  %v1616_v13 = vld [vmem:[#allocation10 + $0x448] sm:$0xff] }
 0x1ee   : > { %1455 = vmatpush2.msra.mxu1 %v1143_v10  ;;  %1805 = vmatprep.subr.mxu0 %v1572_v20  ;;  %v1623_v10 = vld [vmem:[#allocation10 + $0x480] sm:$0xff]  ;;  %v1612_v19 = vld [vmem:[#allocation10 + $0x428] sm:$0xff] }
 0x1ef   : > { %1456 = vmatprep.subr.mxu1 %v1140_v12  ;;  %1806 = vmatpush2.msra.mxu0 %v1571_v1  ;;  %v1619_v12 = vld [vmem:[#allocation10 + $0x460] sm:$0xff]  ;;  %v1608_v20 = vld [vmem:[#allocation10 + $0x408] sm:$0xff] }
 0x1f0   : > { %1457 = vmatpush2.msra.mxu1 %v1139_v14  ;;  %1807 = vmatprep.subr.mxu0 %v1568_v22  ;;  %v1615_v14 = vld [vmem:[#allocation10 + $0x440] sm:$0xff]  ;;  %v1732_v1 = vld [vmem:[#allocation10 + $0x7e8] sm:$0xff] }
 0x1f1   : > { %1458 = vmatprep.subr.mxu1 %v1136_v63  ;;  %1808 = vmatpush2.msra.mxu0 %v1567_v26  ;;  %v1611_v63 = vld [vmem:[#allocation10 + $0x420] sm:$0xff]  ;;  %v1728_v22 = vld [vmem:[#allocation10 + $0x7c8] sm:$0xff] }
 0x1f2   : > { %1459 = vmatpush2.msra.mxu1 %v1135_v2  ;;  %1809 = vmatprep.subr.mxu0 %v1564_v28  ;;  %v1607_v2 = vld [vmem:[#allocation10 + $0x400] sm:$0xff]  ;;  %v1724_v26 = vld [vmem:[#allocation10 + $0x7a8] sm:$0xff] }
 0x1f3   : > { %1460 = vmatprep.subr.mxu1 %v1132_v5  ;;  %1810 = vmatpush2.msra.mxu0 %v1563_v30  ;;  %v1731_v5 = vld [vmem:[#allocation10 + $0x7e0] sm:$0xff]  ;;  %v1720_v28 = vld [vmem:[#allocation10 + $0x788] sm:$0xff] }
 0x1f4   : > { %1461 = vmatpush2.msra.mxu1 %v1131_v25  ;;  %1811 = vmatprep.subr.mxu0 %v1560_v32  ;;  %v1727_v25 = vld [vmem:[#allocation10 + $0x7c0] sm:$0xff]  ;;  %v1716_v30 = vld [vmem:[#allocation10 + $0x768] sm:$0xff] }
 0x1f5   : > { %1462 = vmatprep.subr.mxu1 %v1128_v27  ;;  %1812 = vmatpush2.msra.mxu0 %v1559_v15  ;;  %v1723_v27 = vld [vmem:[#allocation10 + $0x7a0] sm:$0xff]  ;;  %v1712_v32 = vld [vmem:[#allocation10 + $0x748] sm:$0xff] }
 0x1f6   : > { %1463 = vmatpush2.msra.mxu1 %v1127_v29  ;;  %1813 = vmatprep.subr.mxu0 %v1556_v35  ;;  %v1719_v29 = vld [vmem:[#allocation10 + $0x780] sm:$0xff]  ;;  %v1708_v15 = vld [vmem:[#allocation10 + $0x728] sm:$0xff] }
 0x1f7   : > { %1464 = vmatprep.subr.mxu1 %v1124_v31  ;;  %1814 = vmatpush2.msra.mxu0 %v1555_v37  ;;  %v1715_v31 = vld [vmem:[#allocation10 + $0x760] sm:$0xff]  ;;  %v1704_v35 = vld [vmem:[#allocation10 + $0x708] sm:$0xff] }
 0x1f8   : > { %1465 = vmatpush2.msra.mxu1 %v1123_v33  ;;  %1815 = vmatprep.subr.mxu0 %v1552_v42  ;;  %v1711_v33 = vld [vmem:[#allocation10 + $0x740] sm:$0xff]  ;;  %v1700_v37 = vld [vmem:[#allocation10 + $0x6e8] sm:$0xff] }
 0x1f9   : > { %1466 = vmatprep.subr.mxu1 %v1120_v34  ;;  %1816 = vmatpush2.msra.mxu0 %v1551_v43  ;;  %v1707_v34 = vld [vmem:[#allocation10 + $0x720] sm:$0xff]  ;;  %v1688_v43 = vld [vmem:[#allocation10 + $0x688] sm:$0xff] }
 0x1fa   : > { %1467 = vmatpush2.msra.mxu1 %v1119_v36  ;;  %1817 = vmatprep.subr.mxu0 %v1548_v44  ;;  %v1703_v36 = vld [vmem:[#allocation10 + $0x700] sm:$0xff] }
 0x1fb   : > { %1468 = vmatprep.subr.mxu1 %v1116_v38  ;;  %1818 = vmatpush2.msra.mxu0 %v1547_v45  ;;  %v1699_v38 = vld [vmem:[#allocation10 + $0x6e0] sm:$0xff]  ;;  %v1684_v45 = vld [vmem:[#allocation10 + $0x668] sm:$0xff] }
 0x1fc   : > { %1469 = vmatpush2.msra.mxu1 %v1115_v17  ;;  %1819 = vmatprep.subr.mxu0 %v1544_v46  ;;  %v1696_v17 = vld [vmem:[#allocation10 + $0x6c8] sm:$0xff]  ;;  %v1691_v42 = vld [vmem:[#allocation10 + $0x6a0] sm:$0xff] }
 0x1fd   : > { %1470 = vmatprep.subr.mxu1 %v1112_v40  ;;  %1820 = vmatpush2.msra.mxu0 %v1543_v47  ;;  %v1695_v40 = vld [vmem:[#allocation10 + $0x6c0] sm:$0xff]  ;;  %v1680_v47 = vld [vmem:[#allocation10 + $0x648] sm:$0xff] }
 0x1fe   : > { %1471 = vmatpush2.msra.mxu1 %v1111_v41  ;;  %1899 = vmatprep.subr.mxu0 %v1542_v49  ;;  %v1692_v41 = vld [vmem:[#allocation10 + $0x6a8] sm:$0xff]  ;;  %v1687_v44 = vld [vmem:[#allocation10 + $0x680] sm:$0xff] }
 0x1ff   : > { %1473 = vmatmul.mubr.f32.vlgmr.msra.gmra.mxu1 %v2764_v39  ;;  %1828 = vmatprep.subr.mxu1 %v1668_v24  ;;  %v1660_v39 = vld [vmem:[#allocation10 + $0x5a8] sm:$0xff]  ;;  %v1683_v46 = vld [vmem:[#allocation10 + $0x660] sm:$0xff] }
 0x200   : > { %1829 = vmatpush1.msra.mxu1 %v1667_v48  ;;  %v1679_v24 = vld [vmem:[#allocation10 + $0x640] sm:$0xff]  ;;  %v1676_v48 = vld [vmem:[#allocation10 + $0x628] sm:$0xff] }
 0x201   : > { %1830 = vmatprep.subr.mxu1 %v1664_v50  ;;  %v1675_v49 = vld [vmem:[#allocation10 + $0x620] sm:$0xff]  ;;  %v1672_v50 = vld [vmem:[#allocation10 + $0x608] sm:$0xff] }
 0x202   : > { %1831 = vmatpush1.msra.mxu1 %v1663_v51  ;;  %v1671_v51 = vld [vmem:[#allocation10 + $0x600] sm:$0xff] }
 0x203   : > { %1832 = vmatprep.subr.mxu1 %v1660_v39  ;;  %v1670_v39 = vld [vmem:[#allocation10 + $0x5f8] sm:$0xff] }
 0x204   : > { %1833 = vmatpush1.msra.mxu1 %v1659_v52 }
 0x205   : > { %1834 = vmatprep.subr.mxu1 %v1656_v53  ;;  %v2771_v53 = vld [vmem:[%s2837_s4] sm:$0xf] }
 0x206   : > { %1835 = vmatpush1.msra.mxu1 %v1655_v54  ;;  %v1182_v54 = vrot.slane %v2771_v53, %v2744_v18 }
 0x207   : > { %1836 = vmatprep.subr.mxu1 %v1652_v55  ;;  %v1178_v55 = vrot.slane %v2771_v53, %v2739_v16 }
 0x208   : > { %1837 = vmatpush1.msra.mxu1 %v1651_v56 }
 0x209   : > { %1838 = vmatprep.subr.mxu1 %v1648_v57 }
 0x20a   : > { %1839 = vmatpush1.msra.mxu1 %v1647_v58 }
 0x20b   : > { %1840 = vmatprep.subr.mxu1 %v1644_v59 }
 0x20c   : > { %1841 = vmatpush1.msra.mxu1 %v1643_v60 }
 0x20d   : > { %1842 = vmatprep.subr.mxu1 %v1640_v61 }
 0x20e   : > { %1843 = vmatpush1.msra.mxu1 %v1639_v62 }
 0x20f   : > { %1844 = vmatprep.subr.mxu1 %v1636_v0  ;;  %v1541_v0 = vld [vmem:[#allocation10 + $0x1f0] sm:$0xff] }
 0x210   : > { %1845 = vmatpush1.msra.mxu1 %v1635_v3  ;;  %v1538_v3 = vld [vmem:[#allocation10 + $0x1d8] sm:$0xff] }
 0x211   : > { %1846 = vmatprep.subr.mxu1 %v1632_v4  ;;  %v1537_v4 = vld [vmem:[#allocation10 + $0x1d0] sm:$0xff] }
 0x212   : > { %1847 = vmatpush1.msra.mxu1 %v1631_v6  ;;  %v1534_v6 = vld [vmem:[#allocation10 + $0x1b8] sm:$0xff] }
 0x213   : > { %1848 = vmatprep.subr.mxu1 %v1628_v7  ;;  %v1533_v7 = vld [vmem:[#allocation10 + $0x1b0] sm:$0xff] }
 0x214   : > { %1849 = vmatpush1.msra.mxu1 %v1627_v8  ;;  %v1530_v8 = vld [vmem:[#allocation10 + $0x198] sm:$0xff] }
 0x215   : > { %1850 = vmatprep.subr.mxu1 %v1624_v9  ;;  %v1529_v9 = vld [vmem:[#allocation10 + $0x190] sm:$0xff] }
 0x216   : > { %1851 = vmatpush1.msra.mxu1 %v1623_v10  ;;  %v1526_v10 = vld [vmem:[#allocation10 + $0x178] sm:$0xff] }
 0x217   : > { %1852 = vmatprep.subr.mxu1 %v1620_v11  ;;  %v1525_v11 = vld [vmem:[#allocation10 + $0x170] sm:$0xff] }
 0x218   : > { %1853 = vmatpush1.msra.mxu1 %v1619_v12  ;;  %v1522_v12 = vld [vmem:[#allocation10 + $0x158] sm:$0xff] }
 0x219   : > { %1854 = vmatprep.subr.mxu1 %v1616_v13  ;;  %v1521_v13 = vld [vmem:[#allocation10 + $0x150] sm:$0xff] }
 0x21a   : > { %1855 = vmatpush1.msra.mxu1 %v1615_v14  ;;  %v1518_v14 = vld [vmem:[#allocation10 + $0x138] sm:$0xff] }
 0x21b   : > { %1856 = vmatprep.subr.mxu1 %v1612_v19  ;;  %v1517_v19 = vld [vmem:[#allocation10 + $0x130] sm:$0xff] }
 0x21c   : > { %1857 = vmatpush1.msra.mxu1 %v1611_v63  ;;  %v1514_v63 = vld [vmem:[#allocation10 + $0x118] sm:$0xff] }
 0x21d   : > { %1858 = vmatprep.subr.mxu1 %v1608_v20  ;;  %v1513_v20 = vld [vmem:[#allocation10 + $0x110] sm:$0xff] }
 0x21e   : > { %1859 = vmatpush1.msra.mxu1 %v1607_v2  ;;  %v1510_v2 = vld [vmem:[#allocation10 + $0xf8] sm:$0xff] }
 0x21f   : > { %1860 = vmatprep.subr.mxu1 %v1732_v1  ;;  %v1509_v1 = vld [vmem:[#allocation10 + $0xf0] sm:$0xff] }
 0x220   : > { %1861 = vmatpush2.msra.mxu1 %v1731_v5  ;;  %v1506_v5 = vld [vmem:[#allocation10 + $0xd8] sm:$0xff] }
 0x221   : > { %1862 = vmatprep.subr.mxu1 %v1728_v22  ;;  %v1505_v22 = vld [vmem:[#allocation10 + $0xd0] sm:$0xff] }
 0x222   : > { %1863 = vmatpush2.msra.mxu1 %v1727_v25  ;;  %v1502_v25 = vld [vmem:[#allocation10 + $0xb8] sm:$0xff] }
 0x223   : > { %1864 = vmatprep.subr.mxu1 %v1724_v26  ;;  %v1501_v26 = vld [vmem:[#allocation10 + $0xb0] sm:$0xff] }
 0x224   : > { %1865 = vmatpush2.msra.mxu1 %v1723_v27  ;;  %v1498_v27 = vld [vmem:[#allocation10 + $0x98] sm:$0xff] }
 0x225   : > { %1866 = vmatprep.subr.mxu1 %v1720_v28  ;;  %v1497_v28 = vld [vmem:[#allocation10 + $0x90] sm:$0xff] }
 0x226   : > { %1867 = vmatpush2.msra.mxu1 %v1719_v29  ;;  %v1494_v29 = vld [vmem:[#allocation10 + $0x78] sm:$0xff] }
 0x227   : > { %1868 = vmatprep.subr.mxu1 %v1716_v30  ;;  %v1493_v30 = vld [vmem:[#allocation10 + $0x70] sm:$0xff] }
 0x228   : > { %1869 = vmatpush2.msra.mxu1 %v1715_v31  ;;  %v1490_v31 = vld [vmem:[#allocation10 + $0x58] sm:$0xff] }
 0x229   : > { %1870 = vmatprep.subr.mxu1 %v1712_v32  ;;  %v1489_v32 = vld [vmem:[#allocation10 + $0x50] sm:$0xff] }
 0x22a   : > { %1871 = vmatpush2.msra.mxu1 %v1711_v33  ;;  %v1486_v33 = vld [vmem:[#allocation10 + $0x38] sm:$0xff] }
 0x22b   : > { %1872 = vmatprep.subr.mxu1 %v1708_v15  ;;  %v1485_v15 = vld [vmem:[#allocation10 + $0x30] sm:$0xff] }
 0x22c   : > { %1873 = vmatpush2.msra.mxu1 %v1707_v34  ;;  %v1482_v34 = vld [vmem:[#allocation10 + $0x18] sm:$0xff] }
 0x22d   : > { %1874 = vmatprep.subr.mxu1 %v1704_v35  ;;  %v1481_v35 = vld [vmem:[#allocation10 + $0x10] sm:$0xff] }
 0x22e   : > { %1875 = vmatpush2.msra.mxu1 %v1703_v36  ;;  %v1606_v36 = vld [vmem:[#allocation10 + $0x3f8] sm:$0xff] }
 0x22f   : > { %1876 = vmatprep.subr.mxu1 %v1700_v37  ;;  %v1605_v37 = vld [vmem:[#allocation10 + $0x3f0] sm:$0xff] }
 0x230   : > { %1877 = vmatpush2.msra.mxu1 %v1699_v38  ;;  %v1602_v38 = vld [vmem:[#allocation10 + $0x3d8] sm:$0xff] }
 0x231   : > { %1878 = vmatprep.subr.mxu1 %v1696_v17  ;;  %v1601_v17 = vld [vmem:[#allocation10 + $0x3d0] sm:$0xff] }
 0x232   : > { %1879 = vmatpush2.msra.mxu1 %v1695_v40  ;;  %v1598_v40 = vld [vmem:[#allocation10 + $0x3b8] sm:$0xff] }
 0x233   : > { %1880 = vmatprep.subr.mxu1 %v1692_v41  ;;  %v1597_v41 = vld [vmem:[#allocation10 + $0x3b0] sm:$0xff] }
 0x234   : > { %1881 = vmatpush2.msra.mxu1 %v1691_v42  ;;  %v1594_v42 = vld [vmem:[#allocation10 + $0x398] sm:$0xff] }
 0x235   : > { %1882 = vmatprep.subr.mxu1 %v1688_v43  ;;  %v1593_v43 = vld [vmem:[#allocation10 + $0x390] sm:$0xff] }
 0x236   : > { %1883 = vmatpush2.msra.mxu1 %v1687_v44  ;;  %v1590_v44 = vld [vmem:[#allocation10 + $0x378] sm:$0xff] }
 0x237   : > { %1884 = vmatprep.subr.mxu1 %v1684_v45  ;;  %v1589_v45 = vld [vmem:[#allocation10 + $0x370] sm:$0xff] }
 0x238   : > { %1885 = vmatpush2.msra.mxu1 %v1683_v46  ;;  %v1586_v46 = vld [vmem:[#allocation10 + $0x358] sm:$0xff] }
 0x239   : > { %1886 = vmatprep.subr.mxu1 %v1680_v47  ;;  %v1585_v47 = vld [vmem:[#allocation10 + $0x350] sm:$0xff] }
 0x23a   : > { %1887 = vmatpush2.msra.mxu1 %v1679_v24  ;;  %v1582_v24 = vld [vmem:[#allocation10 + $0x338] sm:$0xff] }
 0x23b   : > { %1888 = vmatprep.subr.mxu1 %v1676_v48  ;;  %v1581_v48 = vld [vmem:[#allocation10 + $0x330] sm:$0xff] }
 0x23c   : > { %1889 = vmatpush2.msra.mxu1 %v1675_v49  ;;  %v1578_v49 = vld [vmem:[#allocation10 + $0x318] sm:$0xff] }
 0x23d   : > { %1890 = vmatprep.subr.mxu1 %v1672_v50  ;;  %v1261_v52 = vpop.f32.mrf.mxu0  ;;  %v1577_v50 = vld [vmem:[#allocation10 + $0x310] sm:$0xff] }
 0x23e   : > { %1891 = vmatpush2.msra.mxu1 %v1671_v51  ;;  %v1262_v59 = vadd.f32 %v1261_v52, %v1178_v55  ;;  %v1574_v51 = vld [vmem:[#allocation10 + $0x2f8] sm:$0xff] }
 0x23f   : > { %1970 = vmatprep.subr.mxu1 %v1670_v39  ;;  %v1263_v56 = vpop.f32.mrf.mxu0  ;;  %v1573_v39 = vld [vmem:[#allocation10 + $0x2f0] sm:$0xff]  ;;  %v1570_v52 = vld [vmem:[#allocation10 + $0x2d8] sm:$0xff] }
 0x240   : > { %v1264_v58 = vadd.f32 %v1263_v56, %v1182_v54  ;;  %v1569_v54 = vld [vmem:[#allocation10 + $0x2d0] sm:$0xff]  ;;  %v1566_v55 = vld [vmem:[#allocation10 + $0x2b8] sm:$0xff] }
 0x241   : > { %v1565_v56 = vld [vmem:[#allocation10 + $0x2b0] sm:$0xff] }
 0x27f   : > { %v1332_v57 = vpop.f32.mrf.mxu1 }
 0x280   : > { %v2777_v62 = vadd.f32 %v1332_v57, %v1262_v59  ;;  %v1562_v57 = vld [vmem:[#allocation10 + $0x298] sm:$0xff]  ;;  %v1561_v59 = vld [vmem:[#allocation10 + $0x290] sm:$0xff] }
 0x281   : > { %v1334_v60 = vpop.f32.mrf.mxu1 }
 0x282   : > { %v1335_v61 = vadd.f32 %v1334_v60, %v1264_v58  ;;  %v1403_v58 = vpop.f32.mrf.mxu0  ;;  %v1558_v60 = vld [vmem:[#allocation10 + $0x278] sm:$0xff] }
 0x284   : > { %1821 = vmatprep.mubr.f32.mxu0 %v1335_v61 }
 0x285   : > { %1822 = vmatmul.mubr.f32.vlgmr.msra.gmra.mxu0 %v2777_v62 }
 0x286   : > { %1900 = vmatpush1.msra.mxu0 %v1541_v0  ;;  %1963 = vmatprep.mubr.f32.mxu0 %v1335_v61  ;;  %v1557_v61 = vld [vmem:[#allocation10 + $0x270] sm:$0xff]  ;;  %v1190_v0 = vrot.slane %v2771_v53, %v2757_v23 }
 0x287   : > { %1901 = vmatprep.subr.mxu0 %v1538_v3  ;;  %v1554_v3 = vld [vmem:[#allocation10 + $0x258] sm:$0xff] }
 0x288   : > { %1902 = vmatpush1.msra.mxu0 %v1537_v4  ;;  %v1186_v4 = vrot.slane %v2771_v53, %v2754_v21  ;;  %v1669_v53 = vld [vmem:[#allocation10 + $0x5f0] sm:$0xff] }
 0x289   : > { %1903 = vmatprep.subr.mxu0 %v1534_v6  ;;  %v1405_v6 = vpop.f32.mrf.mxu0 }
 0x28a   : > { %1904 = vmatpush1.msra.mxu0 %v1533_v7  ;;  %v1553_v7 = vld [vmem:[#allocation10 + $0x250] sm:$0xff] }
 0x28b   : > { %1905 = vmatprep.subr.mxu0 %v1530_v8  ;;  %v1550_v8 = vld [vmem:[#allocation10 + $0x238] sm:$0xff] }
 0x28c   : > { %1906 = vmatpush1.msra.mxu0 %v1529_v9 }
 0x28d   : > { %1907 = vmatprep.subr.mxu0 %v1526_v10  ;;  %v1549_v10 = vld [vmem:[#allocation10 + $0x230] sm:$0xff] }
 0x28e   : > { %1908 = vmatpush1.msra.mxu0 %v1525_v11  ;;  %v1406_v11 = vadd.f32 %v1405_v6, %v1190_v0  ;;  %v1706_v0 = vld [vmem:[#allocation10 + $0x718] sm:$0xff]  ;;  %v1701_v6 = vld [vmem:[#allocation10 + $0x6f0] sm:$0xff] }
 0x28f   : > { %1909 = vmatprep.subr.mxu0 %v1522_v12  ;;  %v1546_v12 = vld [vmem:[#allocation10 + $0x218] sm:$0xff] }
 0x290   : > { %1910 = vmatpush1.msra.mxu0 %v1521_v13  ;;  %v1404_v13 = vadd.f32 %v1403_v58, %v1186_v4  ;;  %v1714_v58 = vld [vmem:[#allocation10 + $0x758] sm:$0xff] }
 0x291   : > { %1911 = vmatprep.subr.mxu0 %v1518_v14  ;;  %v1702_v4 = vld [vmem:[#allocation10 + $0x6f8] sm:$0xff] }
 0x292   : > { %1912 = vmatpush1.msra.mxu0 %v1517_v19  ;;  %v1545_v19 = vld [vmem:[#allocation10 + $0x210] sm:$0xff] }
 0x293   : > { %1913 = vmatprep.subr.mxu0 %v1514_v63 }
 0x294   : > { %1914 = vmatpush1.msra.mxu0 %v1513_v20 }
 0x295   : > { %1915 = vmatprep.subr.mxu0 %v1510_v2  ;;  %v1666_v2 = vld [vmem:[#allocation10 + $0x5d8] sm:$0xff] }
 0x296   : > { %1916 = vmatpush1.msra.mxu0 %v1509_v1  ;;  %v1665_v1 = vld [vmem:[#allocation10 + $0x5d0] sm:$0xff] }
 0x297   : > { %1917 = vmatprep.subr.mxu0 %v1506_v5  ;;  %v1662_v5 = vld [vmem:[#allocation10 + $0x5b8] sm:$0xff] }
 0x298   : > { %1918 = vmatpush1.msra.mxu0 %v1505_v22  ;;  %v1661_v22 = vld [vmem:[#allocation10 + $0x5b0] sm:$0xff] }
 0x299   : > { %1919 = vmatprep.subr.mxu0 %v1502_v25  ;;  %v1658_v25 = vld [vmem:[#allocation10 + $0x598] sm:$0xff] }
 0x29a   : > { %1920 = vmatpush1.msra.mxu0 %v1501_v26  ;;  %v1657_v26 = vld [vmem:[#allocation10 + $0x590] sm:$0xff] }
 0x29b   : > { %1921 = vmatprep.subr.mxu0 %v1498_v27  ;;  %v1654_v27 = vld [vmem:[#allocation10 + $0x578] sm:$0xff] }
 0x29c   : > { %1922 = vmatpush1.msra.mxu0 %v1497_v28  ;;  %v1653_v28 = vld [vmem:[#allocation10 + $0x570] sm:$0xff] }
 0x29d   : > { %1923 = vmatprep.subr.mxu0 %v1494_v29  ;;  %v1650_v29 = vld [vmem:[#allocation10 + $0x558] sm:$0xff] }
 0x29e   : > { %1924 = vmatpush1.msra.mxu0 %v1493_v30  ;;  %v1649_v30 = vld [vmem:[#allocation10 + $0x550] sm:$0xff] }
 0x29f   : > { %1925 = vmatprep.subr.mxu0 %v1490_v31  ;;  %v1645_v31 = vld [vmem:[#allocation10 + $0x530] sm:$0xff] }
 0x2a0   : > { %1926 = vmatpush1.msra.mxu0 %v1489_v32  ;;  %v1642_v32 = vld [vmem:[#allocation10 + $0x518] sm:$0xff] }
 0x2a1   : > { %1927 = vmatprep.subr.mxu0 %v1486_v33  ;;  %v1641_v33 = vld [vmem:[#allocation10 + $0x510] sm:$0xff] }
 0x2a2   : > { %1928 = vmatpush1.msra.mxu0 %v1485_v15  ;;  %v1638_v15 = vld [vmem:[#allocation10 + $0x4f8] sm:$0xff] }
 0x2a3   : > { %1929 = vmatprep.subr.mxu0 %v1482_v34  ;;  %v1637_v34 = vld [vmem:[#allocation10 + $0x4f0] sm:$0xff] }
 0x2a4   : > { %1930 = vmatpush1.msra.mxu0 %v1481_v35  ;;  %v1634_v35 = vld [vmem:[#allocation10 + $0x4d8] sm:$0xff] }
 0x2a5   : > { %1931 = vmatprep.subr.mxu0 %v1606_v36  ;;  %v1633_v36 = vld [vmem:[#allocation10 + $0x4d0] sm:$0xff] }
 0x2a6   : > { %1932 = vmatpush2.msra.mxu0 %v1605_v37  ;;  %v1630_v37 = vld [vmem:[#allocation10 + $0x4b8] sm:$0xff] }
 0x2a7   : > { %1933 = vmatprep.subr.mxu0 %v1602_v38  ;;  %v1629_v38 = vld [vmem:[#allocation10 + $0x4b0] sm:$0xff] }
 0x2a8   : > { %1934 = vmatpush2.msra.mxu0 %v1601_v17  ;;  %v1626_v17 = vld [vmem:[#allocation10 + $0x498] sm:$0xff] }
 0x2a9   : > { %1935 = vmatprep.subr.mxu0 %v1598_v40  ;;  %v1625_v40 = vld [vmem:[#allocation10 + $0x490] sm:$0xff] }
 0x2aa   : > { %1936 = vmatpush2.msra.mxu0 %v1597_v41  ;;  %v1622_v41 = vld [vmem:[#allocation10 + $0x478] sm:$0xff] }
 0x2ab   : > { %1937 = vmatprep.subr.mxu0 %v1594_v42  ;;  %v1621_v42 = vld [vmem:[#allocation10 + $0x470] sm:$0xff] }
 0x2ac   : > { %1938 = vmatpush2.msra.mxu0 %v1593_v43  ;;  %v1618_v43 = vld [vmem:[#allocation10 + $0x458] sm:$0xff] }
 0x2ad   : > { %1939 = vmatprep.subr.mxu0 %v1590_v44  ;;  %v1617_v44 = vld [vmem:[#allocation10 + $0x450] sm:$0xff] }
 0x2ae   : > { %1940 = vmatpush2.msra.mxu0 %v1589_v45  ;;  %v1614_v45 = vld [vmem:[#allocation10 + $0x438] sm:$0xff] }
 0x2af   : > { %1941 = vmatprep.subr.mxu0 %v1586_v46  ;;  %v1613_v46 = vld [vmem:[#allocation10 + $0x430] sm:$0xff] }
 0x2b0   : > { %1942 = vmatpush2.msra.mxu0 %v1585_v47  ;;  %v1610_v47 = vld [vmem:[#allocation10 + $0x418] sm:$0xff] }
 0x2b1   : > { %1943 = vmatprep.subr.mxu0 %v1582_v24  ;;  %v1609_v24 = vld [vmem:[#allocation10 + $0x410] sm:$0xff] }
 0x2b2   : > { %1944 = vmatpush2.msra.mxu0 %v1581_v48  ;;  %v1734_v48 = vld [vmem:[#allocation10 + $0x7f8] sm:$0xff] }
 0x2b3   : > { %1945 = vmatprep.subr.mxu0 %v1578_v49  ;;  %v1733_v49 = vld [vmem:[#allocation10 + $0x7f0] sm:$0xff] }
 0x2b4   : > { %1946 = vmatpush2.msra.mxu0 %v1577_v50  ;;  %v1730_v50 = vld [vmem:[#allocation10 + $0x7d8] sm:$0xff] }
 0x2b5   : > { %1947 = vmatprep.subr.mxu0 %v1574_v51  ;;  %v1729_v51 = vld [vmem:[#allocation10 + $0x7d0] sm:$0xff] }
 0x2b6   : > { %1948 = vmatpush2.msra.mxu0 %v1573_v39  ;;  %v1726_v39 = vld [vmem:[#allocation10 + $0x7b8] sm:$0xff] }
 0x2b7   : > { %1949 = vmatprep.subr.mxu0 %v1570_v52  ;;  %v1725_v52 = vld [vmem:[#allocation10 + $0x7b0] sm:$0xff] }
 0x2b8   : > { %1950 = vmatpush2.msra.mxu0 %v1569_v54  ;;  %v1722_v54 = vld [vmem:[#allocation10 + $0x798] sm:$0xff] }
 0x2b9   : > { %1951 = vmatprep.subr.mxu0 %v1566_v55  ;;  %v1721_v55 = vld [vmem:[#allocation10 + $0x790] sm:$0xff] }
 0x2ba   : > { %1952 = vmatpush2.msra.mxu0 %v1565_v56  ;;  %v1718_v56 = vld [vmem:[#allocation10 + $0x778] sm:$0xff] }
 0x2bb   : > { %1953 = vmatprep.subr.mxu0 %v1562_v57  ;;  %v1717_v57 = vld [vmem:[#allocation10 + $0x770] sm:$0xff] }
 0x2bc   : > { %1954 = vmatpush2.msra.mxu0 %v1561_v59  ;;  %v1713_v59 = vld [vmem:[#allocation10 + $0x750] sm:$0xff] }
 0x2bd   : > { %1955 = vmatprep.subr.mxu0 %v1558_v60  ;;  %v1710_v60 = vld [vmem:[#allocation10 + $0x738] sm:$0xff] }
 0x2be   : > { %1956 = vmatpush2.msra.mxu0 %v1557_v61  ;;  %v1709_v61 = vld [vmem:[#allocation10 + $0x730] sm:$0xff] }
 0x2bf   : > { %v1474_v9 = vpop.f32.mrf.mxu1  ;;  %1957 = vmatprep.subr.mxu0 %v1554_v3  ;;  %v1705_v3 = vld [vmem:[#allocation10 + $0x710] sm:$0xff] }
 0x2c0   : > { %1958 = vmatpush2.msra.mxu0 %v1553_v7  ;;  %v2784_v20 = vadd.f32 %v1474_v9, %v1404_v13  ;;  %v1698_v7 = vld [vmem:[#allocation10 + $0x6d8] sm:$0xff] }
 0x2c1   : > { %v1476_v14 = vpop.f32.mrf.mxu1  ;;  %1959 = vmatprep.subr.mxu0 %v1550_v8  ;;  %v1697_v8 = vld [vmem:[#allocation10 + $0x6d0] sm:$0xff]  ;;  %v1694_v9 = vld [vmem:[#allocation10 + $0x6b8] sm:$0xff] }
 0x2c2   : > { %v1477_v63 = vadd.f32 %v1476_v14, %v1406_v11  ;;  %1960 = vmatpush2.msra.mxu0 %v1549_v10  ;;  %v1693_v10 = vld [vmem:[#allocation10 + $0x6b0] sm:$0xff]  ;;  %v1690_v11 = vld [vmem:[#allocation10 + $0x698] sm:$0xff] }
 0x2c3   : > { %1961 = vmatprep.subr.mxu0 %v1546_v12  ;;  %v1689_v12 = vld [vmem:[#allocation10 + $0x690] sm:$0xff]  ;;  %v1686_v13 = vld [vmem:[#allocation10 + $0x678] sm:$0xff] }
 0x2c4   : > { %1892 = vmatprep.mubr.f32.mxu1 %v1477_v63  ;;  %1962 = vmatpush2.msra.mxu0 %v1545_v19  ;;  %v1685_v14 = vld [vmem:[#allocation10 + $0x670] sm:$0xff]  ;;  %v1682_v19 = vld [vmem:[#allocation10 + $0x658] sm:$0xff] }
 0x2c5   : > { %1893 = vmatmul.mubr.f32.vlgmr.msra.gmra.mxu1 %v2784_v20  ;;  %1964 = vmatmul.mubr.f32.vlgmr.msra.gmra.mxu0 %v2777_v62  ;;  %v1646_v62 = vld [vmem:[#allocation10 + $0x538] sm:$0xff] }
 0x2c6   : > { %1971 = vmatpush1.msra.mxu1 %v1669_v53  ;;  %2034 = vmatprep.mubr.f32.mxu1 %v1477_v63  ;;  %v1681_v63 = vld [vmem:[#allocation10 + $0x650] sm:$0xff]  ;;  %v1678_v53 = vld [vmem:[#allocation10 + $0x638] sm:$0xff] }
 0x2c7   : > { %1972 = vmatprep.subr.mxu1 %v1666_v2  ;;  %v1677_v2 = vld [vmem:[#allocation10 + $0x630] sm:$0xff] }
 0x2c8   : > { %1973 = vmatpush1.msra.mxu1 %v1665_v1  ;;  %v1674_v1 = vld [vmem:[#allocation10 + $0x618] sm:$0xff] }
 0x2c9   : > { %1974 = vmatprep.subr.mxu1 %v1662_v5  ;;  %v1673_v5 = vld [vmem:[#allocation10 + $0x610] sm:$0xff] }
 0x2ca   : > { %1975 = vmatpush1.msra.mxu1 %v1661_v22  ;;  %v1735_v22 = vld [vmem:[%s2839_s6] sm:$0xf] }
 0x2cb   : > { %1976 = vmatprep.subr.mxu1 %v1658_v25 }
 0x2cc   : > { %1977 = vmatpush1.msra.mxu1 %v1657_v26  ;;  %v1740_v26 = vrot.slane %v1735_v22, %v2739_v16  ;;  %v1752_v16 = vrot.slane %v1735_v22, %v2757_v23 }
 0x2cd   : > { %1978 = vmatprep.subr.mxu1 %v1654_v27  ;;  %v1744_v27 = vrot.slane %v1735_v22, %v2744_v18 }
 0x2ce   : > { %1979 = vmatpush1.msra.mxu1 %v1653_v28 }
 0x2cf   : > { %1980 = vmatprep.subr.mxu1 %v1650_v29 }
 0x2d0   : > { %1981 = vmatpush1.msra.mxu1 %v1649_v30 }
 0x2d1   : > { %1982 = vmatprep.subr.mxu1 %v1646_v62 }
 0x2d2   : > { %1983 = vmatpush1.msra.mxu1 %v1645_v31 }
 0x2d3   : > { %1984 = vmatprep.subr.mxu1 %v1642_v32 }
 0x2d4   : > { %1985 = vmatpush1.msra.mxu1 %v1641_v33 }
 0x2d5   : > { %1986 = vmatprep.subr.mxu1 %v1638_v15  ;;  %v1748_v15 = vrot.slane %v1735_v22, %v2754_v21 }
 0x2d6   : > { %1987 = vmatpush1.msra.mxu1 %v1637_v34 }
 0x2d7   : > { %1988 = vmatprep.subr.mxu1 %v1634_v35 }
 0x2d8   : > { %1989 = vmatpush1.msra.mxu1 %v1633_v36 }
 0x2d9   : > { %1990 = vmatprep.subr.mxu1 %v1630_v37 }
 0x2da   : > { %1991 = vmatpush1.msra.mxu1 %v1629_v38 }
 0x2db   : > { %1992 = vmatprep.subr.mxu1 %v1626_v17 }
 0x2dc   : > { %1993 = vmatpush1.msra.mxu1 %v1625_v40 }
 0x2dd   : > { %1994 = vmatprep.subr.mxu1 %v1622_v41 }
 0x2de   : > { %1995 = vmatpush1.msra.mxu1 %v1621_v42 }
 0x2df   : > { %1996 = vmatprep.subr.mxu1 %v1618_v43 }
 0x2e0   : > { %1997 = vmatpush1.msra.mxu1 %v1617_v44 }
 0x2e1   : > { %1998 = vmatprep.subr.mxu1 %v1614_v45 }
 0x2e2   : > { %1999 = vmatpush1.msra.mxu1 %v1613_v46 }
 0x2e3   : > { %2000 = vmatprep.subr.mxu1 %v1610_v47 }
 0x2e4   : > { %2001 = vmatpush1.msra.mxu1 %v1609_v24 }
 0x2e5   : > { %2002 = vmatprep.subr.mxu1 %v1734_v48 }
 0x2e6   : > { %2003 = vmatpush2.msra.mxu1 %v1733_v49 }
 0x2e7   : > { %2004 = vmatprep.subr.mxu1 %v1730_v50 }
 0x2e8   : > { %2005 = vmatpush2.msra.mxu1 %v1729_v51 }
 0x2e9   : > { %2006 = vmatprep.subr.mxu1 %v1726_v39 }
 0x2ea   : > { %2007 = vmatpush2.msra.mxu1 %v1725_v52 }
 0x2eb   : > { %2008 = vmatprep.subr.mxu1 %v1722_v54 }
 0x2ec   : > { %2009 = vmatpush2.msra.mxu1 %v1721_v55 }
 0x2ed   : > { %2010 = vmatprep.subr.mxu1 %v1718_v56 }
 0x2ee   : > { %2011 = vmatpush2.msra.mxu1 %v1717_v57 }
 0x2ef   : > { %2012 = vmatprep.subr.mxu1 %v1714_v58 }
 0x2f0   : > { %2013 = vmatpush2.msra.mxu1 %v1713_v59 }
 0x2f1   : > { %2014 = vmatprep.subr.mxu1 %v1710_v60 }
 0x2f2   : > { %2015 = vmatpush2.msra.mxu1 %v1709_v61 }
 0x2f3   : > { %2016 = vmatprep.subr.mxu1 %v1706_v0 }
 0x2f4   : > { %2017 = vmatpush2.msra.mxu1 %v1705_v3 }
 0x2f5   : > { %2018 = vmatprep.subr.mxu1 %v1702_v4 }
 0x2f6   : > { %2019 = vmatpush2.msra.mxu1 %v1701_v6 }
 0x2f7   : > { %2020 = vmatprep.subr.mxu1 %v1698_v7 }
 0x2f8   : > { %2021 = vmatpush2.msra.mxu1 %v1697_v8 }
 0x2f9   : > { %2022 = vmatprep.subr.mxu1 %v1694_v9 }
 0x2fa   : > { %2023 = vmatpush2.msra.mxu1 %v1693_v10 }
 0x2fb   : > { %2024 = vmatprep.subr.mxu1 %v1690_v11 }
 0x2fc   : > { %2025 = vmatpush2.msra.mxu1 %v1689_v12 }
 0x2fd   : > { %2026 = vmatprep.subr.mxu1 %v1686_v13 }
 0x2fe   : > { %2027 = vmatpush2.msra.mxu1 %v1685_v14 }
 0x2ff   : > { %2028 = vmatprep.subr.mxu1 %v1682_v19 }
 0x300   : > { %2029 = vmatpush2.msra.mxu1 %v1681_v63 }
 0x301   : > { %2030 = vmatprep.subr.mxu1 %v1678_v53 }
 0x302   : > { %2031 = vmatpush2.msra.mxu1 %v1677_v2 }
 0x303   : > { %2032 = vmatprep.subr.mxu1 %v1674_v1 }
 0x304   : > { %2033 = vmatpush2.msra.mxu1 %v1673_v5 }
 0x305   : > { %2035 = vmatmul.mubr.f32.vlgmr.msra.gmra.mxu1 %v2784_v20 }
 0x345   : > { %v1823_v25 = vpop.f32.mrf.mxu0 }
 0x346   : > { %v1824_v29 = vadd.f32 %v1823_v25, %v1740_v26 }
 0x347   : > { %v1825_v28 = vpop.f32.mrf.mxu0 }
 0x348   : > { %v1826_v62 = vadd.f32 %v1825_v28, %v1744_v27 }
 0x385   : > { %v1894_v30 = vpop.f32.mrf.mxu1  ;;  %v1965_v33 = vpop.f32.mrf.mxu0 }
 0x386   : > { %v1895_v31 = vadd.f32 %v1894_v30, %v1824_v29  ;;  %v1966_v18 = vadd.f32 %v1965_v33, %v1748_v15 }
 0x387   : > { %v1896_v32 = vpop.f32.mrf.mxu1  ;;  %v1967_v34 = vpop.f32.mrf.mxu0 }
 0x388   : > { %2041 = vst [vmem:[%s350_s11] sm:$0xff] %v1895_v31  ;;  %v1897_v20 = vadd.f32 %v1896_v32, %v1826_v62  ;;  %v1968_v36 = vadd.f32 %v1967_v34, %v1752_v16 }
 0x38a   : > { %2042 = vst [vmem:[%s350_s11 + $0x8] sm:$0xff] %v1897_v20 }
 0x3c5   : > { %v2036_v35 = vpop.f32.mrf.mxu1 }
 0x3c6   : > { %v2037_v37 = vadd.f32 %v2036_v35, %v1966_v18 }
 0x3c7   : > { %v2038_v38 = vpop.f32.mrf.mxu1 }
 0x3c8   : > { %2043 = vst [vmem:[%s350_s11 + $0x10] sm:$0xff] %v2037_v37  ;;  %v2039_v17 = vadd.f32 %v2038_v38, %v1968_v36 }
 0x3ca   : > { %2044 = vst [vmem:[%s350_s11 + $0x18] sm:$0xff] %v2039_v17 }
 0x3cb   : > { %2426 = shalt.err (!%p2423_p11)
}
 0x3cc   : > { %s2427_s2 = scalar_lea.hbm %s2058_s12, 512  ;;  %s2431_s15 = scalar_lea.hbm %s2840_s7, 1024 }
 0x3cd   : > { %p2428_p13 = scmp.ne.s32.totalorder %s2058_s12, %s2427_s2  ;;  %p2432_p4 = scmp.lt.s32.totalorder %s2058_s12, %s2840_s7 }
 0x3ce   : > { %p2433_p6 = scmp.lt.s32.totalorder %s2431_s15, %s2427_s2 }
 0x3cf   : > { %p2429_p1 = pnand %p2428_p13, %p2862_p7 }
 0x3d0   : > { %p2434_p5 = por %p2433_p6, %p2432_p4 }
 0x3d1   : > { %p2430_p3 = pneg %p2429_p1 }
 0x3d3   : > { %p2435_p8 = pnand %p2434_p5, %p2430_p3 }
 0x3d5   : > { %2438 = shalt.err (!%p2435_p8)
}
 0x3d6   : > { %2210 = dma.vmem_to_hbm [thread:$0]  (%p2862_p7), %s2061_s29, 512, %s2058_s12, %s2046_s20  }
 0x3d7 PF: > { %s2072_s11 = sand.u32 1, %s2473_s24   ;;  %p2863_p10 = scmp.ne.s32.totalorder %s2854_s22, 0 }
 0x3d8   : > { %p2864_p0 = scmp.ge.s32.totalorder %s2485_s27, 2  ;;  %s2073_s17 = scalar_lea.sflag [#allocation4], %s2072_s11 }
 0x3da   : > { %p2230_p12 = pnand %p2864_p0, %p2863_p10 }
 0x3dc   : > { %p2231_p2 = pneg %p2230_p12 }
 0x3de   : > { %2468 = dma.done.wait (%p2231_p2), %s2073_s17, 512  }
 0x3df   : > { %2470 = vsyncadd (%p2231_p2), %s2073_s17, 4294966784  ;;  %p22_p9 = scmp.ge.s32.totalorder %s2633_s14, 4   ;;  %s2865_s24 = smov %s2477_s25 }
 0x3e0   : > { %s2866_s25 = smov %s2481_s26  ;;  %s2867_s26 = smov %s2644_s19 }
 0x3e1   : > { %s2868_s27 = smov %s2633_s14  ;;  %24 = sbr.rel (!%p22_p9) target bundleno = 10 (0xa), region = 109 }
 0x3e6   :  { %2078 = vsyncpa [#allocation3], 1 }
 0x3e7   :  { %2080 = vsyncpa [#allocation3 + $0x1], 1 }
 0x3e8   :  { %2081 = vsyncpa [#allocation6], 1 }
 0x3e9   :  { %2082 = vsyncpa [#allocation9], 1 }
 0x3ea   :  { %2083 = vsyncpa [#allocation4], 1 }
 0x3eb   :  { %2085 = vsyncpa [#allocation4 + $0x1], 1 }

// kernel: _siamese_mlp.1
= control target key start
LH: loop header
LB: loop body
LE: loop exit
PB: predicated region body
PF: predicated region fallthrough
CT: control target
= control target key end

     0   :  { %s2833_s0 = inlined_call_operand.hbm [shape: f32[16,512], index: 0, kind: input, shape index: {}]   ;;  %s2834_s1 = inlined_call_operand.hbm [shape: f32[512,512], index: 1, kind: input, shape index: {}]   ;;  %s2835_s2 = inlined_call_operand.hbm [shape: f32[1,512], index: 2, kind: input, shape index: {}]   ;;  %s2836_s3 = inlined_call_operand.hbm [shape: f32[512,512], index: 3, kind: input, shape index: {}]   ;;  %s2837_s4 = inlined_call_operand.vmem [shape: f32[1,512], index: 4, kind: input, shape index: {}]   ;;  %s2838_s5 = inlined_call_operand.hbm [shape: f32[512,512], index: 5, kind: input, shape index: {}]   ;;  %s2839_s6 = inlined_call_operand.vmem [shape: f32[1,512], index: 6, kind: input, shape index: {}]   ;;  %s2840_s7 = inlined_call_operand.hbm [shape: f32[16,512], index: 7, kind: output, shape index: {}]  }
   0x1   :  { %2845 = sst [smem:[#allocation16_spill]] %s2834_s1 }
   0x2   :  { %2846 = sst [smem:[#allocation17_spill]] %s2835_s2 }
   0x3   :  { %12 = vsyncpa [#allocation3], 0 }
   0x4   :  { %14 = vsyncpa [#allocation3 + $0x1], 0 }
   0x5   :  { %15 = vsyncpa [#allocation6], 0 }
   0x6   :  { %16 = vsyncpa [#allocation9], 0 }
   0x7   :  { %17 = vsyncpa [#allocation4], 0 }
   0x8   :  { %19 = vsyncpa [#allocation4 + $0x1], 0  ;;  %s2535_s24 = smov 0   ;;  %s2537_s25 = smov 0  }
   0x9   :  { %s2539_s26 = smov 0   ;;  %s2541_s27 = smov 0  }
   0xa LB: > { %s2487_s28 = smov [#allocation5]   ;;  %s2556_s30 = sadd.s32 4294967295, %s2485_s27   ;;  %s2485_s27 = sphi %s2541_s27, %s2868_s27   ;;  %s2481_s26 = sphi %s2539_s26, %s2867_s26   ;;  %s2477_s25 = sphi %s2537_s25, %s2866_s25   ;;  %s2473_s24 = sphi %s2535_s24, %s2865_s24  }
   0xb   : > { %s220_s29 = sshll.u32 %s2487_s28, 4  ;;  %p2169_p0 = scmp.ge.s32.totalorder %s2485_s27, 1  ;;  %s221_s29 = int_to_ptr.vmem [resolvable:$true] %s220_s29 }
   0xc   : > { %p2841_p1 = scmp.eq.s32.totalorder %s2556_s30, 0  ;;  %p208_p2 = scmp.lt.s32.totalorder %s2485_s27, 3 }
   0xd   : > { %s2488_s9 = smov [#allocation8]   ;;  %s2489_s12 = smov [#allocation7]  }
   0xe   : > { %p2561_p3 = pnand %p2169_p0, %p208_p2  ;;  %s244_s10 = sshll.u32 %s2488_s9, 4  ;;  %s2574_s10 = int_to_ptr.vmem [resolvable:$true] %s244_s10 }
   0xf   : > { %s234_s13 = sshll.u32 %s2489_s12, 4  ;;  %s2292_s14 = scalar_lea.vmem %s221_s29, 32768  ;;  %s2576_s13 = int_to_ptr.vmem [resolvable:$true] %s234_s13 }
  0x10   : > { %s2847_s8 = scalar_select %p2561_p3, 1, 0 }
  0x11   : > { %p2212_p5 = pneg %p2561_p3  ;;  %p2293_p8 = scmp.ne.s32.totalorder %s221_s29, %s2292_s14 }
  0x12   : > { %p2300_p11 = scmp.lt.s32.totalorder %s221_s29, %s221_s29  ;;  %p2301_p12 = scmp.lt.s32.totalorder %s2292_s14, %s2292_s14 }
  0x13   : > { %p2570_p6 = pnand %p2212_p5, %p2841_p1 }
  0x14   : > { %p2302_p13 = por %p2301_p12, %p2300_p11 }
  0x15   : > { %p2283_p7 = pneg %p2570_p6 }
  0x17   : > { %p2295_p9 = pnand %p2293_p8, %p2283_p7 }
  0x19   : > { %p2296_p10 = pneg %p2295_p9 }
  0x1b   : > { %p2303_p0 = pnand %p2302_p13, %p2296_p10 }
  0x1d   : > { %2306 = shalt.err (!%p2303_p0)
}
  0x1e   : > { %s2490_s15 = smov 512   ;;  %s2491_s16 = smov 32  }
  0x1f   : > { %s2849_s1 = sld [smem:[#allocation16_spill]]  ;;  %s2318_s19 = scalar_lea.vmem %s2574_s10, 32768 }
  0x20   : > { %p2319_p2 = scmp.ne.s32.totalorder %s2574_s10, %s2318_s19  ;;  %p2326_p9 = scmp.lt.s32.totalorder %s2574_s10, %s2574_s10 }
  0x21   : > { %p2327_p10 = scmp.lt.s32.totalorder %s2318_s19, %s2318_s19 }
  0x22   : > { %p2321_p5 = pnand %p2319_p2, %p2283_p7 }
  0x23   : > { %p2328_p11 = por %p2327_p10, %p2326_p9 }
  0x24   : > { %p2322_p8 = pneg %p2321_p5 }
  0x25   : > { %2215 = dma.hbm_to_vmem [thread:$0]  (!%p2570_p6), %s2849_s1, 32768, %s221_s29, [#allocation6], %s2490_s15, %s2490_s15, %s2491_s16  }
  0x26   : > { %p2329_p12 = pnand %p2328_p11, %p2322_p8 }
  0x28   : > { %2332 = shalt.err (!%p2329_p12)
}
  0x29   : > { %2221 = dma.hbm_to_vmem [thread:$0]  (!%p2570_p6), %s2836_s3, 32768, %s2574_s10, [#allocation9], %s2490_s15, %s2490_s15, %s2491_s16  }
  0x2a   : > { %s2344_s22 = scalar_lea.vmem %s2576_s13, 64  ;;  %p2352_p5 = scmp.lt.s32.totalorder %s2576_s13, %s2576_s13 }
  0x2b   : > { %p2345_p13 = scmp.ne.s32.totalorder %s2576_s13, %s2344_s22  ;;  %p2353_p8 = scmp.lt.s32.totalorder %s2344_s22, %s2344_s22 }
  0x2d   : > { %p2347_p0 = pnand %p2345_p13, %p2283_p7  ;;  %p2354_p9 = por %p2353_p8, %p2352_p5 }
  0x2f   : > { %p2348_p2 = pneg %p2347_p0 }
  0x31   : > { %p2355_p10 = pnand %p2354_p9, %p2348_p2 }
  0x33   : > { %2358 = shalt.err (!%p2355_p10)
}
  0x34   : > { %s2850_s2 = sld [smem:[#allocation17_spill]]  ;;  %s2492_s29 = smov [#allocation10]  }
  0x35   : > { %s260_s9 = sshll.u32 %s2492_s29, 4  ;;  %s261_s9 = int_to_ptr.vmem [resolvable:$true] %s260_s9 }
  0x36   : > { %s2370_s10 = scalar_lea.vmem %s261_s9, 32768  ;;  %p2378_p0 = scmp.lt.s32.totalorder %s261_s9, %s261_s9 }
  0x37   : > { %p2371_p11 = scmp.ne.s32.totalorder %s261_s9, %s2370_s10  ;;  %p2379_p2 = scmp.lt.s32.totalorder %s2370_s10, %s2370_s10 }
  0x39   : > { %p2373_p12 = pnand %p2371_p11, %p2283_p7  ;;  %p2380_p5 = por %p2379_p2, %p2378_p0 }
  0x3a   : > { %2218 = dma.hbm_to_vmem [thread:$0]  (!%p2570_p6), %s2850_s2, 64, %s2576_s13, [#allocation6]  }
  0x3b   : > { %p2374_p13 = pneg %p2373_p12 }
  0x3d   : > { %p2381_p8 = pnand %p2380_p5, %p2374_p13 }
  0x3f   : > { %2384 = shalt.err (!%p2381_p8)
}
  0x40   : > { %2224 = dma.hbm_to_vmem [thread:$0]  (!%p2570_p6), %s2838_s5, 32768, %s261_s9, [#allocation9], %s2490_s15, %s2490_s15, %s2491_s16  }
  0x41   : > { %s2168_s11 = sadd.s32 4294967294, %s2485_s27   ;;  %s2633_s14 = sadd.s32 1, %s2485_s27  }
  0x42   : > { %s29_s17 = ssub.s32 %s2485_s27, %s2633_s14  ;;  %s32_s18 = sadd.s32 1, %s2481_s26 }
  0x43   : > { %p30_p7 = scmp.eq.s32.totalorder %s29_s17, 0  ;;  %p39_p9 = scmp.ne.s32.totalorder %s2481_s26, %s2477_s25 }
  0x44   : > { %p40_p10 = scmp.eq.s32.totalorder %s2485_s27, 0  ;;  %p45_p11 = scmp.ne.s32.totalorder %s2477_s25, %s2473_s24 }
  0x45   : > { %s2644_s19 = scalar_select %p30_p7, %s2481_s26, %s32_s18  }
  0x46   : > { %p2646_p12 = por %p40_p10, %p39_p9  ;;  %p2652_p6 = por %p2841_p1, %p45_p11 }
  0x47   : > { %p195_p13 = scmp.eq.s32.totalorder %s2556_s30, 1  ;;  %p201_p0 = scmp.eq.s32.totalorder %s2168_s11, 1 }
  0x48   : > { %s2852_s15 = scalar_select %p2652_p6, 1, 0 }
  0x49   : > { %p2237_p2 = scmp.lt.s32.totalorder %s2485_s27, 2  ;;  %s277_s16 = sand.u32 1, %s2481_s26  }
  0x4a   : > { %p2659_p5 = por %p195_p13, %p39_p9  ;;  %p2663_p8 = por %p201_p0, %p45_p11 }
  0x4b   : > { %s2175_s23 = sshll.u32 %s277_s16, 5  ;;  %s2190_s28 = sshll.u32 %s2485_s27, 9 }
  0x4c   : > { %s2853_s21 = scalar_select %p2659_p5, 1, 0 }
  0x4d   : > { %s2854_s22 = scalar_select %p2663_p8, 1, 0 }
  0x4e   : > { %s2671_s10 = scalar_lea.hbm %s2833_s0, %s2190_s28  ;;  %s281_s12 = scalar_lea.vmem [#allocation2], %s2175_s23 }
  0x4f   : > { %s289_s13 = sshll.u32 %s281_s12, 4  ;;  %p2675_p7 = pnand %p2237_p2, %p2646_p12  ;;  %s290_s13 = int_to_ptr.vmem [resolvable:$true] %s289_s13 }
  0x50   : > { %s278_s17 = scalar_lea.sflag [#allocation3], %s277_s16  ;;  %s2385_s18 = scalar_lea.hbm %s2671_s10, 512 }
  0x51   : > { %p2386_p9 = scmp.ne.s32.totalorder %s2671_s10, %s2385_s18  ;;  %p2387_p10 = pneg %p2675_p7 }
  0x52   : > { %s2390_s9 = scalar_lea.hbm %s2833_s0, 1024  ;;  %p2391_p0 = scmp.lt.s32.totalorder %s2671_s10, %s2833_s0 }
  0x53   : > { %p2388_p11 = pnand %p2387_p10, %p2386_p9  ;;  %p2392_p12 = scmp.lt.s32.totalorder %s2390_s9, %s2385_s18 }
  0x55   : > { %p2389_p13 = pneg %p2388_p11  ;;  %p2393_p2 = por %p2392_p12, %p2391_p0 }
  0x57   : > { %p2394_p4 = pnand %p2393_p2, %p2389_p13 }
  0x59   : > { %2397 = shalt.err (!%p2394_p4)
}
  0x5a   : > { %s2398_s20 = scalar_lea.vmem %s290_s13, 512  ;;  %s2493_s16 = smov [#allocation2]  }
  0x5b   : > { %p2399_p1 = scmp.ne.s32.totalorder %s290_s13, %s2398_s20  ;;  %s2403_s1 = sshll.u32 %s2493_s16, 4  ;;  %s2404_s1 = int_to_ptr.vmem [resolvable:$false] %s2403_s1 }
  0x5c   : > { %s2405_s2 = scalar_lea.vmem %s2404_s1, 1024  ;;  %p2406_p9 = scmp.lt.s32.totalorder %s290_s13, %s2404_s1 }
  0x5d   : > { %p2401_p8 = pnand %p2399_p1, %p2387_p10  ;;  %p2407_p11 = scmp.lt.s32.totalorder %s2405_s2, %s2398_s20 }
  0x5f   : > { %p2402_p5 = pneg %p2401_p8  ;;  %p2408_p6 = por %p2407_p11, %p2406_p9 }
  0x61   : > { %p2409_p3 = pnand %p2408_p6, %p2402_p5 }
  0x63   : > { %2412 = shalt.err (!%p2409_p3)
}
  0x64   : > { %2228 = dma.hbm_to_vmem [thread:$0]  (!%p2675_p7), %s2671_s10, 512, %s290_s13, %s278_s17  }
  0x65   : > { %p2856_p13 = scmp.ne.s32.totalorder %s2847_s8, 0 }
  0x66   : > { %s2696_s18 = sand.u32 (!%p2856_p13), 1, %s2477_s25   ;;  %p2857_p1 = scmp.ne.s32.totalorder (!%p2856_p13), %s2852_s15, 0 }
  0x67   : > { %298 = sbr.rel (%p2856_p13) target bundleno = 983 (0x3d7), region = 48  ;;  %s2179_s28 = sshll.u32 (!%p2856_p13), %s2696_s18, 5 }
  0x68   : > { %s301_s1 = scalar_lea.sflag (!%p2856_p13), [#allocation3], %s2696_s18  ;;  %s2702_s2 = scalar_lea.vmem (!%p2856_p13), [#allocation2], %s2179_s28 }
  0x6c   : > { %2456 = dma.done.wait (%p2857_p1), %s301_s1, 512  }
  0x6d   : > { %2458 = vsyncadd (%p2857_p1), %s301_s1, 4294966784  ;;  %p2858_p3 = scmp.eq.s32.totalorder %s2556_s30, 0 }
  0x6f   : > { %2460 = dma.done.wait (%p2858_p3), [#allocation6], 32832   ;;  %p2859_p4 = pmov %p2858_p3 }
  0x70   : > { %p2860_p6 = pmov %p2858_p3 }
  0x71   : > { %2462 = vsyncadd (%p2859_p4), [#allocation6], 4294934464 }
  0x72   : > { %2464 = dma.done.wait (%p2860_p6), [#allocation9], 65536   ;;  %p2861_p5 = pmov %p2858_p3 }
  0x73   : > { %v416_v0 = vld [vmem:[#allocation5 + $0x1e8] sm:$0xff]  ;;  %v415_v2 = vld [vmem:[#allocation5 + $0x1e0] sm:$0xff]  ;;  %s350_s11 = scalar_lea.vmem [#allocation11], %s2179_s28  ;;  %s2191_s17 = sshll.u32 %s2556_s30, 9 }
  0x74   : > { %2466 = vsyncadd (%p2861_p5), [#allocation9], 4294901760  ;;  %v544_v1 = vld [vmem:[#allocation5 + $0x5e8] sm:$0xff]  ;;  %633 = vmatprep.subr.mxu0 %v416_v0  ;;  %v543_v3 = vld [vmem:[#allocation5 + $0x5e0] sm:$0xff]  ;;  %s2060_s29 = sshll.u32 %s350_s11, 4  ;;  %s2058_s12 = scalar_lea.hbm %s2840_s7, %s2191_s17  ;;  %s2061_s29 = int_to_ptr.vmem [resolvable:$true] %s2060_s29 }
  0x75   : > { %704 = vmatprep.subr.mxu1 %v544_v1  ;;  %v412_v4 = vld [vmem:[#allocation5 + $0x1c8] sm:$0xff]  ;;  %634 = vmatpush1.msra.mxu0 %v415_v2  ;;  %v411_v6 = vld [vmem:[#allocation5 + $0x1c0] sm:$0xff]  ;;  %s2046_s20 = scalar_lea.sflag [#allocation4], %s2696_s18  ;;  %s2413_s16 = scalar_lea.vmem %s2061_s29, 512 }
  0x76   : > { %v540_v5 = vld [vmem:[#allocation5 + $0x5c8] sm:$0xff]  ;;  %705 = vmatpush1.msra.mxu1 %v543_v3  ;;  %v539_v7 = vld [vmem:[#allocation5 + $0x5c0] sm:$0xff]  ;;  %635 = vmatprep.subr.mxu0 %v412_v4  ;;  %p2414_p8 = scmp.ne.s32.totalorder %s2061_s29, %s2413_s16  ;;  %p2862_p7 = scmp.ne.s32.totalorder %s2853_s21, 0 }
  0x77   : > { %v408_v8 = vld [vmem:[#allocation5 + $0x1a8] sm:$0xff]  ;;  %706 = vmatprep.subr.mxu1 %v540_v5  ;;  %v407_v10 = vld [vmem:[#allocation5 + $0x1a0] sm:$0xff]  ;;  %636 = vmatpush1.msra.mxu0 %v411_v6  ;;  %s2494_s28 = smov [#allocation11]  }
  0x78   : > { %v536_v9 = vld [vmem:[#allocation5 + $0x5a8] sm:$0xff]  ;;  %v535_v11 = vld [vmem:[#allocation5 + $0x5a0] sm:$0xff]  ;;  %707 = vmatpush1.msra.mxu1 %v539_v7  ;;  %637 = vmatprep.subr.mxu0 %v408_v8  ;;  %p2415_p10 = pnand %p2414_p8, %p2862_p7  ;;  %s2417_s30 = sshll.u32 %s2494_s28, 4  ;;  %s2418_s30 = int_to_ptr.vmem [resolvable:$false] %s2417_s30 }
  0x79   : > { %v404_v12 = vld [vmem:[#allocation5 + $0x188] sm:$0xff]  ;;  %708 = vmatprep.subr.mxu1 %v536_v9  ;;  %v403_v14 = vld [vmem:[#allocation5 + $0x180] sm:$0xff]  ;;  %638 = vmatpush1.msra.mxu0 %v407_v10  ;;  %s2419_s1 = scalar_lea.vmem %s2418_s30, 1024  ;;  %p2420_p12 = scmp.lt.s32.totalorder %s2061_s29, %s2418_s30 }
  0x7a   : > { %v532_v13 = vld [vmem:[#allocation5 + $0x588] sm:$0xff]  ;;  %v531_v15 = vld [vmem:[#allocation5 + $0x580] sm:$0xff]  ;;  %709 = vmatpush1.msra.mxu1 %v535_v11  ;;  %639 = vmatprep.subr.mxu0 %v404_v12  ;;  %p2416_p0 = pneg %p2415_p10  ;;  %p2421_p2 = scmp.lt.s32.totalorder %s2419_s1, %s2413_s16 }
  0x7b   : > { %v400_v16 = vld [vmem:[#allocation5 + $0x168] sm:$0xff]  ;;  %710 = vmatprep.subr.mxu1 %v532_v13  ;;  %v399_v18 = vld [vmem:[#allocation5 + $0x160] sm:$0xff]  ;;  %640 = vmatpush1.msra.mxu0 %v403_v14 }
  0x7c   : > { %v528_v17 = vld [vmem:[#allocation5 + $0x568] sm:$0xff]  ;;  %v527_v19 = vld [vmem:[#allocation5 + $0x560] sm:$0xff]  ;;  %711 = vmatpush1.msra.mxu1 %v531_v15  ;;  %641 = vmatprep.subr.mxu0 %v400_v16  ;;  %p2422_p9 = por %p2421_p2, %p2420_p12 }
  0x7d   : > { %v396_v20 = vld [vmem:[#allocation5 + $0x148] sm:$0xff]  ;;  %712 = vmatprep.subr.mxu1 %v528_v17  ;;  %v395_v22 = vld [vmem:[#allocation5 + $0x140] sm:$0xff]  ;;  %642 = vmatpush1.msra.mxu0 %v399_v18 }
  0x7e   : > { %v524_v21 = vld [vmem:[#allocation5 + $0x548] sm:$0xff]  ;;  %v523_v23 = vld [vmem:[#allocation5 + $0x540] sm:$0xff]  ;;  %713 = vmatpush1.msra.mxu1 %v527_v19  ;;  %643 = vmatprep.subr.mxu0 %v396_v20  ;;  %p2423_p11 = pnand %p2422_p9, %p2416_p0 }
  0x7f   : > { %v392_v24 = vld [vmem:[#allocation5 + $0x128] sm:$0xff]  ;;  %714 = vmatprep.subr.mxu1 %v524_v21  ;;  %v391_v26 = vld [vmem:[#allocation5 + $0x120] sm:$0xff]  ;;  %644 = vmatpush1.msra.mxu0 %v395_v22 }
  0x80   : > { %v520_v25 = vld [vmem:[#allocation5 + $0x528] sm:$0xff]  ;;  %v519_v27 = vld [vmem:[#allocation5 + $0x520] sm:$0xff]  ;;  %715 = vmatpush1.msra.mxu1 %v523_v23  ;;  %645 = vmatprep.subr.mxu0 %v392_v24 }
  0x81   : > { %v388_v28 = vld [vmem:[#allocation5 + $0x108] sm:$0xff]  ;;  %716 = vmatprep.subr.mxu1 %v520_v25  ;;  %v387_v30 = vld [vmem:[#allocation5 + $0x100] sm:$0xff]  ;;  %646 = vmatpush1.msra.mxu0 %v391_v26 }
  0x82   : > { %v516_v29 = vld [vmem:[#allocation5 + $0x508] sm:$0xff]  ;;  %v515_v31 = vld [vmem:[#allocation5 + $0x500] sm:$0xff]  ;;  %717 = vmatpush1.msra.mxu1 %v519_v27  ;;  %647 = vmatprep.subr.mxu0 %v388_v28 }
  0x83   : > { %v384_v32 = vld [vmem:[#allocation5 + $0xe8] sm:$0xff]  ;;  %718 = vmatprep.subr.mxu1 %v516_v29  ;;  %v383_v34 = vld [vmem:[#allocation5 + $0xe0] sm:$0xff]  ;;  %648 = vmatpush1.msra.mxu0 %v387_v30 }
  0x84   : > { %v512_v33 = vld [vmem:[#allocation5 + $0x4e8] sm:$0xff]  ;;  %v511_v35 = vld [vmem:[#allocation5 + $0x4e0] sm:$0xff]  ;;  %719 = vmatpush1.msra.mxu1 %v515_v31  ;;  %649 = vmatprep.subr.mxu0 %v384_v32 }
  0x85   : > { %v380_v36 = vld [vmem:[#allocation5 + $0xc8] sm:$0xff]  ;;  %720 = vmatprep.subr.mxu1 %v512_v33  ;;  %v379_v38 = vld [vmem:[#allocation5 + $0xc0] sm:$0xff]  ;;  %650 = vmatpush1.msra.mxu0 %v383_v34 }
  0x86   : > { %v508_v37 = vld [vmem:[#allocation5 + $0x4c8] sm:$0xff]  ;;  %v507_v39 = vld [vmem:[#allocation5 + $0x4c0] sm:$0xff]  ;;  %721 = vmatpush1.msra.mxu1 %v511_v35  ;;  %651 = vmatprep.subr.mxu0 %v380_v36 }
  0x87   : > { %v376_v40 = vld [vmem:[#allocation5 + $0xa8] sm:$0xff]  ;;  %722 = vmatprep.subr.mxu1 %v508_v37  ;;  %v375_v42 = vld [vmem:[#allocation5 + $0xa0] sm:$0xff]  ;;  %652 = vmatpush1.msra.mxu0 %v379_v38 }
  0x88   : > { %v504_v41 = vld [vmem:[#allocation5 + $0x4a8] sm:$0xff]  ;;  %v503_v43 = vld [vmem:[#allocation5 + $0x4a0] sm:$0xff]  ;;  %723 = vmatpush1.msra.mxu1 %v507_v39  ;;  %653 = vmatprep.subr.mxu0 %v376_v40 }
  0x89   : > { %v372_v44 = vld [vmem:[#allocation5 + $0x88] sm:$0xff]  ;;  %724 = vmatprep.subr.mxu1 %v504_v41  ;;  %v371_v46 = vld [vmem:[#allocation5 + $0x80] sm:$0xff]  ;;  %654 = vmatpush1.msra.mxu0 %v375_v42 }
  0x8a   : > { %v500_v45 = vld [vmem:[#allocation5 + $0x488] sm:$0xff]  ;;  %v499_v47 = vld [vmem:[#allocation5 + $0x480] sm:$0xff]  ;;  %725 = vmatpush1.msra.mxu1 %v503_v43  ;;  %655 = vmatprep.subr.mxu0 %v372_v44 }
  0x8b   : > { %v368_v48 = vld [vmem:[#allocation5 + $0x68] sm:$0xff]  ;;  %726 = vmatprep.subr.mxu1 %v500_v45  ;;  %v367_v50 = vld [vmem:[#allocation5 + $0x60] sm:$0xff]  ;;  %656 = vmatpush1.msra.mxu0 %v371_v46 }
  0x8c   : > { %v496_v49 = vld [vmem:[#allocation5 + $0x468] sm:$0xff]  ;;  %v495_v51 = vld [vmem:[#allocation5 + $0x460] sm:$0xff]  ;;  %727 = vmatpush1.msra.mxu1 %v499_v47  ;;  %657 = vmatprep.subr.mxu0 %v368_v48 }
  0x8d   : > { %v364_v52 = vld [vmem:[#allocation5 + $0x48] sm:$0xff]  ;;  %728 = vmatprep.subr.mxu1 %v496_v49  ;;  %v363_v54 = vld [vmem:[#allocation5 + $0x40] sm:$0xff]  ;;  %658 = vmatpush1.msra.mxu0 %v367_v50 }
  0x8e   : > { %v492_v53 = vld [vmem:[#allocation5 + $0x448] sm:$0xff]  ;;  %v491_v55 = vld [vmem:[#allocation5 + $0x440] sm:$0xff]  ;;  %729 = vmatpush1.msra.mxu1 %v495_v51  ;;  %659 = vmatprep.subr.mxu0 %v364_v52 }
  0x8f   : > { %v360_v56 = vld [vmem:[#allocation5 + $0x28] sm:$0xff]  ;;  %730 = vmatprep.subr.mxu1 %v492_v53  ;;  %v359_v58 = vld [vmem:[#allocation5 + $0x20] sm:$0xff]  ;;  %660 = vmatpush1.msra.mxu0 %v363_v54 }
  0x90   : > { %v488_v57 = vld [vmem:[#allocation5 + $0x428] sm:$0xff]  ;;  %v487_v59 = vld [vmem:[#allocation5 + $0x420] sm:$0xff]  ;;  %731 = vmatpush1.msra.mxu1 %v491_v55  ;;  %661 = vmatprep.subr.mxu0 %v360_v56 }
  0x91   : > { %v356_v60 = vld [vmem:[#allocation5 + $0x8] sm:$0xff]  ;;  %732 = vmatprep.subr.mxu1 %v488_v57  ;;  %v355_v62 = vld [vmem:[#allocation5] sm:$0xff]  ;;  %662 = vmatpush1.msra.mxu0 %v359_v58 }
  0x92   : > { %v484_v61 = vld [vmem:[#allocation5 + $0x408] sm:$0xff]  ;;  %v483_v63 = vld [vmem:[#allocation5 + $0x400] sm:$0xff]  ;;  %733 = vmatpush1.msra.mxu1 %v487_v59  ;;  %663 = vmatprep.subr.mxu0 %v356_v60 }
  0x93   : > { %v480_v0 = vld [vmem:[#allocation5 + $0x3e8] sm:$0xff]  ;;  %734 = vmatprep.subr.mxu1 %v484_v61  ;;  %v479_v2 = vld [vmem:[#allocation5 + $0x3e0] sm:$0xff]  ;;  %664 = vmatpush1.msra.mxu0 %v355_v62 }
  0x94   : > { %v608_v1 = vld [vmem:[#allocation5 + $0x7e8] sm:$0xff]  ;;  %v607_v3 = vld [vmem:[#allocation5 + $0x7e0] sm:$0xff]  ;;  %735 = vmatpush1.msra.mxu1 %v483_v63  ;;  %665 = vmatprep.subr.mxu0 %v480_v0 }
  0x95   : > { %v476_v4 = vld [vmem:[#allocation5 + $0x3c8] sm:$0xff]  ;;  %736 = vmatprep.subr.mxu1 %v608_v1  ;;  %v475_v6 = vld [vmem:[#allocation5 + $0x3c0] sm:$0xff]  ;;  %666 = vmatpush2.msra.mxu0 %v479_v2  ;;  %v2723_v2 = vld [vmem:[%s2702_s2 + $0x18] sm:$0xff] }
  0x96   : > { %v604_v5 = vld [vmem:[#allocation5 + $0x7c8] sm:$0xff]  ;;  %v603_v7 = vld [vmem:[#allocation5 + $0x7c0] sm:$0xff]  ;;  %737 = vmatpush2.msra.mxu1 %v607_v3  ;;  %667 = vmatprep.subr.mxu0 %v476_v4  ;;  %v418_v3 = vld [vmem:[#allocation5 + $0x1f8] sm:$0xff] }
  0x97   : > { %v472_v8 = vld [vmem:[#allocation5 + $0x3a8] sm:$0xff]  ;;  %738 = vmatprep.subr.mxu1 %v604_v5  ;;  %v471_v10 = vld [vmem:[#allocation5 + $0x3a0] sm:$0xff]  ;;  %668 = vmatpush2.msra.mxu0 %v475_v6  ;;  %v546_v4 = vld [vmem:[#allocation5 + $0x5f8] sm:$0xff] }
  0x98   : > { %v600_v9 = vld [vmem:[#allocation5 + $0x7a8] sm:$0xff]  ;;  %v599_v11 = vld [vmem:[#allocation5 + $0x7a0] sm:$0xff]  ;;  %739 = vmatpush2.msra.mxu1 %v603_v7  ;;  %669 = vmatprep.subr.mxu0 %v472_v8  ;;  %v2727_v5 = vld [vmem:[%s2702_s2 + $0x10] sm:$0xff] }
  0x99   : > { %v468_v12 = vld [vmem:[#allocation5 + $0x388] sm:$0xff]  ;;  %740 = vmatprep.subr.mxu1 %v600_v9  ;;  %v467_v14 = vld [vmem:[#allocation5 + $0x380] sm:$0xff]  ;;  %670 = vmatpush2.msra.mxu0 %v471_v10  ;;  %v417_v6 = vld [vmem:[#allocation5 + $0x1f0] sm:$0xff] }
  0x9a   : > { %v596_v13 = vld [vmem:[#allocation5 + $0x788] sm:$0xff]  ;;  %v595_v15 = vld [vmem:[#allocation5 + $0x780] sm:$0xff]  ;;  %741 = vmatpush2.msra.mxu1 %v599_v11  ;;  %671 = vmatprep.subr.mxu0 %v468_v12  ;;  %v545_v7 = vld [vmem:[#allocation5 + $0x5f0] sm:$0xff] }
  0x9b   : > { %v464_v16 = vld [vmem:[#allocation5 + $0x368] sm:$0xff]  ;;  %742 = vmatprep.subr.mxu1 %v596_v13  ;;  %v463_v18 = vld [vmem:[#allocation5 + $0x360] sm:$0xff]  ;;  %672 = vmatpush2.msra.mxu0 %v467_v14  ;;  %v414_v8 = vld [vmem:[#allocation5 + $0x1d8] sm:$0xff] }
  0x9c   : > { %v592_v17 = vld [vmem:[#allocation5 + $0x768] sm:$0xff]  ;;  %v591_v19 = vld [vmem:[#allocation5 + $0x760] sm:$0xff]  ;;  %743 = vmatpush2.msra.mxu1 %v595_v15  ;;  %673 = vmatprep.subr.mxu0 %v464_v16  ;;  %v542_v9 = vld [vmem:[#allocation5 + $0x5d8] sm:$0xff] }
  0x9d   : > { %v460_v20 = vld [vmem:[#allocation5 + $0x348] sm:$0xff]  ;;  %744 = vmatprep.subr.mxu1 %v592_v17  ;;  %v459_v22 = vld [vmem:[#allocation5 + $0x340] sm:$0xff]  ;;  %674 = vmatpush2.msra.mxu0 %v463_v18  ;;  %v413_v10 = vld [vmem:[#allocation5 + $0x1d0] sm:$0xff] }
  0x9e   : > { %v588_v21 = vld [vmem:[#allocation5 + $0x748] sm:$0xff]  ;;  %v587_v23 = vld [vmem:[#allocation5 + $0x740] sm:$0xff]  ;;  %745 = vmatpush2.msra.mxu1 %v591_v19  ;;  %675 = vmatprep.subr.mxu0 %v460_v20  ;;  %v541_v11 = vld [vmem:[#allocation5 + $0x5d0] sm:$0xff] }
  0x9f   : > { %v456_v24 = vld [vmem:[#allocation5 + $0x328] sm:$0xff]  ;;  %746 = vmatprep.subr.mxu1 %v588_v21  ;;  %v455_v26 = vld [vmem:[#allocation5 + $0x320] sm:$0xff]  ;;  %676 = vmatpush2.msra.mxu0 %v459_v22  ;;  %v410_v12 = vld [vmem:[#allocation5 + $0x1b8] sm:$0xff] }
  0xa0   : > { %v584_v25 = vld [vmem:[#allocation5 + $0x728] sm:$0xff]  ;;  %v583_v27 = vld [vmem:[#allocation5 + $0x720] sm:$0xff]  ;;  %747 = vmatpush2.msra.mxu1 %v587_v23  ;;  %677 = vmatprep.subr.mxu0 %v456_v24  ;;  %v538_v13 = vld [vmem:[#allocation5 + $0x5b8] sm:$0xff] }
  0xa1   : > { %v452_v28 = vld [vmem:[#allocation5 + $0x308] sm:$0xff]  ;;  %748 = vmatprep.subr.mxu1 %v584_v25  ;;  %v451_v30 = vld [vmem:[#allocation5 + $0x300] sm:$0xff]  ;;  %678 = vmatpush2.msra.mxu0 %v455_v26  ;;  %v409_v14 = vld [vmem:[#allocation5 + $0x1b0] sm:$0xff] }
  0xa2   : > { %v580_v29 = vld [vmem:[#allocation5 + $0x708] sm:$0xff]  ;;  %v579_v31 = vld [vmem:[#allocation5 + $0x700] sm:$0xff]  ;;  %749 = vmatpush2.msra.mxu1 %v583_v27  ;;  %679 = vmatprep.subr.mxu0 %v452_v28  ;;  %v537_v15 = vld [vmem:[#allocation5 + $0x5b0] sm:$0xff] }
  0xa3   : > { %v448_v32 = vld [vmem:[#allocation5 + $0x2e8] sm:$0xff]  ;;  %750 = vmatprep.subr.mxu1 %v580_v29  ;;  %v447_v34 = vld [vmem:[#allocation5 + $0x2e0] sm:$0xff]  ;;  %680 = vmatpush2.msra.mxu0 %v451_v30  ;;  %v406_v16 = vld [vmem:[#allocation5 + $0x198] sm:$0xff] }
  0xa4   : > { %v576_v33 = vld [vmem:[#allocation5 + $0x6e8] sm:$0xff]  ;;  %v575_v35 = vld [vmem:[#allocation5 + $0x6e0] sm:$0xff]  ;;  %751 = vmatpush2.msra.mxu1 %v579_v31  ;;  %681 = vmatprep.subr.mxu0 %v448_v32  ;;  %v534_v17 = vld [vmem:[#allocation5 + $0x598] sm:$0xff] }
  0xa5   : > { %v444_v36 = vld [vmem:[#allocation5 + $0x2c8] sm:$0xff]  ;;  %752 = vmatprep.subr.mxu1 %v576_v33  ;;  %v443_v38 = vld [vmem:[#allocation5 + $0x2c0] sm:$0xff]  ;;  %682 = vmatpush2.msra.mxu0 %v447_v34  ;;  %v405_v18 = vld [vmem:[#allocation5 + $0x190] sm:$0xff] }
  0xa6   : > { %v572_v37 = vld [vmem:[#allocation5 + $0x6c8] sm:$0xff]  ;;  %v571_v39 = vld [vmem:[#allocation5 + $0x6c0] sm:$0xff]  ;;  %753 = vmatpush2.msra.mxu1 %v575_v35  ;;  %683 = vmatprep.subr.mxu0 %v444_v36  ;;  %v533_v19 = vld [vmem:[#allocation5 + $0x590] sm:$0xff] }
  0xa7   : > { %v440_v40 = vld [vmem:[#allocation5 + $0x2a8] sm:$0xff]  ;;  %754 = vmatprep.subr.mxu1 %v572_v37  ;;  %v439_v42 = vld [vmem:[#allocation5 + $0x2a0] sm:$0xff]  ;;  %684 = vmatpush2.msra.mxu0 %v443_v38  ;;  %v402_v20 = vld [vmem:[#allocation5 + $0x178] sm:$0xff] }
  0xa8   : > { %v568_v41 = vld [vmem:[#allocation5 + $0x6a8] sm:$0xff]  ;;  %v567_v43 = vld [vmem:[#allocation5 + $0x6a0] sm:$0xff]  ;;  %755 = vmatpush2.msra.mxu1 %v571_v39  ;;  %685 = vmatprep.subr.mxu0 %v440_v40  ;;  %v530_v21 = vld [vmem:[#allocation5 + $0x578] sm:$0xff] }
  0xa9   : > { %v436_v44 = vld [vmem:[#allocation5 + $0x288] sm:$0xff]  ;;  %756 = vmatprep.subr.mxu1 %v568_v41  ;;  %v435_v46 = vld [vmem:[#allocation5 + $0x280] sm:$0xff]  ;;  %686 = vmatpush2.msra.mxu0 %v439_v42  ;;  %v401_v22 = vld [vmem:[#allocation5 + $0x170] sm:$0xff] }
  0xaa   : > { %v564_v45 = vld [vmem:[#allocation5 + $0x688] sm:$0xff]  ;;  %v563_v47 = vld [vmem:[#allocation5 + $0x680] sm:$0xff]  ;;  %757 = vmatpush2.msra.mxu1 %v567_v43  ;;  %687 = vmatprep.subr.mxu0 %v436_v44  ;;  %v529_v23 = vld [vmem:[#allocation5 + $0x570] sm:$0xff] }
  0xab   : > { %v432_v48 = vld [vmem:[#allocation5 + $0x268] sm:$0xff]  ;;  %758 = vmatprep.subr.mxu1 %v564_v45  ;;  %v431_v50 = vld [vmem:[#allocation5 + $0x260] sm:$0xff]  ;;  %688 = vmatpush2.msra.mxu0 %v435_v46  ;;  %v398_v24 = vld [vmem:[#allocation5 + $0x158] sm:$0xff] }
  0xac   : > { %v560_v49 = vld [vmem:[#allocation5 + $0x668] sm:$0xff]  ;;  %v559_v51 = vld [vmem:[#allocation5 + $0x660] sm:$0xff]  ;;  %759 = vmatpush2.msra.mxu1 %v563_v47  ;;  %689 = vmatprep.subr.mxu0 %v432_v48  ;;  %v526_v25 = vld [vmem:[#allocation5 + $0x558] sm:$0xff] }
  0xad   : > { %v428_v52 = vld [vmem:[#allocation5 + $0x248] sm:$0xff]  ;;  %760 = vmatprep.subr.mxu1 %v560_v49  ;;  %v427_v54 = vld [vmem:[#allocation5 + $0x240] sm:$0xff]  ;;  %690 = vmatpush2.msra.mxu0 %v431_v50  ;;  %v397_v26 = vld [vmem:[#allocation5 + $0x150] sm:$0xff] }
  0xae   : > { %v556_v53 = vld [vmem:[#allocation5 + $0x648] sm:$0xff]  ;;  %v555_v55 = vld [vmem:[#allocation5 + $0x640] sm:$0xff]  ;;  %761 = vmatpush2.msra.mxu1 %v559_v51  ;;  %691 = vmatprep.subr.mxu0 %v428_v52  ;;  %v525_v27 = vld [vmem:[#allocation5 + $0x550] sm:$0xff] }
  0xaf   : > { %v424_v56 = vld [vmem:[#allocation5 + $0x228] sm:$0xff]  ;;  %762 = vmatprep.subr.mxu1 %v556_v53  ;;  %v423_v58 = vld [vmem:[#allocation5 + $0x220] sm:$0xff]  ;;  %692 = vmatpush2.msra.mxu0 %v427_v54  ;;  %v394_v28 = vld [vmem:[#allocation5 + $0x138] sm:$0xff] }
  0xb0   : > { %v552_v57 = vld [vmem:[#allocation5 + $0x628] sm:$0xff]  ;;  %v551_v59 = vld [vmem:[#allocation5 + $0x620] sm:$0xff]  ;;  %763 = vmatpush2.msra.mxu1 %v555_v55  ;;  %693 = vmatprep.subr.mxu0 %v424_v56  ;;  %v522_v29 = vld [vmem:[#allocation5 + $0x538] sm:$0xff] }
  0xb1   : > { %v420_v60 = vld [vmem:[#allocation5 + $0x208] sm:$0xff]  ;;  %764 = vmatprep.subr.mxu1 %v552_v57  ;;  %v419_v62 = vld [vmem:[#allocation5 + $0x200] sm:$0xff]  ;;  %694 = vmatpush2.msra.mxu0 %v423_v58  ;;  %v393_v30 = vld [vmem:[#allocation5 + $0x130] sm:$0xff] }
  0xb2   : > { %v548_v61 = vld [vmem:[#allocation5 + $0x608] sm:$0xff]  ;;  %765 = vmatpush2.msra.mxu1 %v551_v59  ;;  %v547_v0 = vld [vmem:[#allocation5 + $0x600] sm:$0xff]  ;;  %695 = vmatprep.subr.mxu0 %v420_v60  ;;  %v521_v31 = vld [vmem:[#allocation5 + $0x530] sm:$0xff] }
  0xb3   : > { %v2717_v63 = vld [vmem:[%s2702_s2 + $0x8] sm:$0xff]  ;;  %v2720_v1 = vld [vmem:[%s2702_s2] sm:$0xff]  ;;  %766 = vmatprep.subr.mxu1 %v548_v61  ;;  %696 = vmatpush2.msra.mxu0 %v419_v62  ;;  %v390_v32 = vld [vmem:[#allocation5 + $0x118] sm:$0xff] }
  0xb4   : > { %697 = vmatprep.mubr.f32.mxu0 %v2717_v63  ;;  %767 = vmatpush2.msra.mxu1 %v547_v0  ;;  %v518_v33 = vld [vmem:[#allocation5 + $0x518] sm:$0xff]  ;;  %v389_v34 = vld [vmem:[#allocation5 + $0x110] sm:$0xff] }
  0xb5   : > { %698 = vmatmul.mubr.f32.vlgmr.msra.gmra.mxu0 %v2720_v1  ;;  %768 = vmatprep.mubr.f32.mxu1 %v2723_v2  ;;  %v517_v35 = vld [vmem:[#allocation5 + $0x510] sm:$0xff]  ;;  %v386_v36 = vld [vmem:[#allocation5 + $0xf8] sm:$0xff] }
  0xb6   : > { %775 = vmatprep.subr.mxu0 %v418_v3  ;;  %846 = vmatprep.subr.mxu1 %v546_v4  ;;  %v514_v37 = vld [vmem:[#allocation5 + $0x4f8] sm:$0xff]  ;;  %v385_v38 = vld [vmem:[#allocation5 + $0xf0] sm:$0xff] }
  0xb7   : > { %769 = vmatmul.mubr.f32.vlgmr.msra.gmra.mxu1 %v2727_v5  ;;  %776 = vmatpush1.msra.mxu0 %v417_v6  ;;  %v513_v39 = vld [vmem:[#allocation5 + $0x4f0] sm:$0xff]  ;;  %v382_v40 = vld [vmem:[#allocation5 + $0xd8] sm:$0xff] }
  0xb8   : > { %847 = vmatpush1.msra.mxu1 %v545_v7  ;;  %777 = vmatprep.subr.mxu0 %v414_v8  ;;  %v510_v41 = vld [vmem:[#allocation5 + $0x4d8] sm:$0xff]  ;;  %v381_v42 = vld [vmem:[#allocation5 + $0xd0] sm:$0xff] }
  0xb9   : > { %848 = vmatprep.subr.mxu1 %v542_v9  ;;  %778 = vmatpush1.msra.mxu0 %v413_v10  ;;  %v509_v43 = vld [vmem:[#allocation5 + $0x4d0] sm:$0xff]  ;;  %v378_v44 = vld [vmem:[#allocation5 + $0xb8] sm:$0xff] }
  0xba   : > { %849 = vmatpush1.msra.mxu1 %v541_v11  ;;  %779 = vmatprep.subr.mxu0 %v410_v12  ;;  %v506_v45 = vld [vmem:[#allocation5 + $0x4b8] sm:$0xff]  ;;  %v377_v46 = vld [vmem:[#allocation5 + $0xb0] sm:$0xff] }
  0xbb   : > { %850 = vmatprep.subr.mxu1 %v538_v13  ;;  %780 = vmatpush1.msra.mxu0 %v409_v14  ;;  %v505_v47 = vld [vmem:[#allocation5 + $0x4b0] sm:$0xff]  ;;  %v374_v48 = vld [vmem:[#allocation5 + $0x98] sm:$0xff] }
  0xbc   : > { %851 = vmatpush1.msra.mxu1 %v537_v15  ;;  %781 = vmatprep.subr.mxu0 %v406_v16  ;;  %v502_v49 = vld [vmem:[#allocation5 + $0x498] sm:$0xff]  ;;  %v373_v50 = vld [vmem:[#allocation5 + $0x90] sm:$0xff] }
  0xbd   : > { %852 = vmatprep.subr.mxu1 %v534_v17  ;;  %782 = vmatpush1.msra.mxu0 %v405_v18  ;;  %v501_v51 = vld [vmem:[#allocation5 + $0x490] sm:$0xff]  ;;  %v370_v52 = vld [vmem:[#allocation5 + $0x78] sm:$0xff] }
  0xbe   : > { %853 = vmatpush1.msra.mxu1 %v533_v19  ;;  %783 = vmatprep.subr.mxu0 %v402_v20  ;;  %v498_v53 = vld [vmem:[#allocation5 + $0x478] sm:$0xff]  ;;  %v369_v54 = vld [vmem:[#allocation5 + $0x70] sm:$0xff] }
  0xbf   : > { %854 = vmatprep.subr.mxu1 %v530_v21  ;;  %784 = vmatpush1.msra.mxu0 %v401_v22  ;;  %v497_v55 = vld [vmem:[#allocation5 + $0x470] sm:$0xff]  ;;  %v366_v56 = vld [vmem:[#allocation5 + $0x58] sm:$0xff] }
  0xc0   : > { %855 = vmatpush1.msra.mxu1 %v529_v23  ;;  %785 = vmatprep.subr.mxu0 %v398_v24  ;;  %v494_v57 = vld [vmem:[#allocation5 + $0x458] sm:$0xff]  ;;  %v365_v58 = vld [vmem:[#allocation5 + $0x50] sm:$0xff] }
  0xc1   : > { %856 = vmatprep.subr.mxu1 %v526_v25  ;;  %786 = vmatpush1.msra.mxu0 %v397_v26  ;;  %v493_v59 = vld [vmem:[#allocation5 + $0x450] sm:$0xff]  ;;  %v362_v60 = vld [vmem:[#allocation5 + $0x38] sm:$0xff] }
  0xc2   : > { %857 = vmatpush1.msra.mxu1 %v525_v27  ;;  %787 = vmatprep.subr.mxu0 %v394_v28  ;;  %v490_v61 = vld [vmem:[#allocation5 + $0x438] sm:$0xff]  ;;  %v361_v62 = vld [vmem:[#allocation5 + $0x30] sm:$0xff] }
  0xc3   : > { %858 = vmatprep.subr.mxu1 %v522_v29  ;;  %788 = vmatpush1.msra.mxu0 %v393_v30  ;;  %v489_v0 = vld [vmem:[#allocation5 + $0x430] sm:$0xff]  ;;  %v358_v3 = vld [vmem:[#allocation5 + $0x18] sm:$0xff] }
  0xc4   : > { %859 = vmatpush1.msra.mxu1 %v521_v31  ;;  %789 = vmatprep.subr.mxu0 %v390_v32  ;;  %v486_v4 = vld [vmem:[#allocation5 + $0x418] sm:$0xff]  ;;  %v357_v6 = vld [vmem:[#allocation5 + $0x10] sm:$0xff] }
  0xc5   : > { %860 = vmatprep.subr.mxu1 %v518_v33  ;;  %790 = vmatpush1.msra.mxu0 %v389_v34  ;;  %v485_v7 = vld [vmem:[#allocation5 + $0x410] sm:$0xff]  ;;  %v482_v8 = vld [vmem:[#allocation5 + $0x3f8] sm:$0xff] }
  0xc6   : > { %861 = vmatpush1.msra.mxu1 %v517_v35  ;;  %791 = vmatprep.subr.mxu0 %v386_v36  ;;  %v610_v9 = vld [vmem:[#allocation5 + $0x7f8] sm:$0xff]  ;;  %v481_v10 = vld [vmem:[#allocation5 + $0x3f0] sm:$0xff] }
  0xc7   : > { %862 = vmatprep.subr.mxu1 %v514_v37  ;;  %792 = vmatpush1.msra.mxu0 %v385_v38  ;;  %v609_v11 = vld [vmem:[#allocation5 + $0x7f0] sm:$0xff]  ;;  %v478_v12 = vld [vmem:[#allocation5 + $0x3d8] sm:$0xff] }
  0xc8   : > { %863 = vmatpush1.msra.mxu1 %v513_v39  ;;  %793 = vmatprep.subr.mxu0 %v382_v40  ;;  %v606_v13 = vld [vmem:[#allocation5 + $0x7d8] sm:$0xff]  ;;  %v477_v14 = vld [vmem:[#allocation5 + $0x3d0] sm:$0xff] }
  0xc9   : > { %864 = vmatprep.subr.mxu1 %v510_v41  ;;  %794 = vmatpush1.msra.mxu0 %v381_v42  ;;  %v605_v15 = vld [vmem:[#allocation5 + $0x7d0] sm:$0xff]  ;;  %v474_v16 = vld [vmem:[#allocation5 + $0x3b8] sm:$0xff] }
  0xca   : > { %865 = vmatpush1.msra.mxu1 %v509_v43  ;;  %795 = vmatprep.subr.mxu0 %v378_v44  ;;  %v602_v17 = vld [vmem:[#allocation5 + $0x7b8] sm:$0xff]  ;;  %v473_v18 = vld [vmem:[#allocation5 + $0x3b0] sm:$0xff] }
  0xcb   : > { %866 = vmatprep.subr.mxu1 %v506_v45  ;;  %796 = vmatpush1.msra.mxu0 %v377_v46  ;;  %v601_v19 = vld [vmem:[#allocation5 + $0x7b0] sm:$0xff]  ;;  %v470_v20 = vld [vmem:[#allocation5 + $0x398] sm:$0xff] }
  0xcc   : > { %867 = vmatpush1.msra.mxu1 %v505_v47  ;;  %797 = vmatprep.subr.mxu0 %v374_v48  ;;  %v598_v21 = vld [vmem:[#allocation5 + $0x798] sm:$0xff]  ;;  %v469_v22 = vld [vmem:[#allocation5 + $0x390] sm:$0xff] }
  0xcd   : > { %868 = vmatprep.subr.mxu1 %v502_v49  ;;  %798 = vmatpush1.msra.mxu0 %v373_v50  ;;  %v597_v23 = vld [vmem:[#allocation5 + $0x790] sm:$0xff]  ;;  %v466_v24 = vld [vmem:[#allocation5 + $0x378] sm:$0xff] }
  0xce   : > { %869 = vmatpush1.msra.mxu1 %v501_v51  ;;  %799 = vmatprep.subr.mxu0 %v370_v52  ;;  %v594_v25 = vld [vmem:[#allocation5 + $0x778] sm:$0xff]  ;;  %v465_v26 = vld [vmem:[#allocation5 + $0x370] sm:$0xff] }
  0xcf   : > { %870 = vmatprep.subr.mxu1 %v498_v53  ;;  %800 = vmatpush1.msra.mxu0 %v369_v54  ;;  %v593_v27 = vld [vmem:[#allocation5 + $0x770] sm:$0xff]  ;;  %v462_v28 = vld [vmem:[#allocation5 + $0x358] sm:$0xff] }
  0xd0   : > { %871 = vmatpush1.msra.mxu1 %v497_v55  ;;  %801 = vmatprep.subr.mxu0 %v366_v56  ;;  %v590_v29 = vld [vmem:[#allocation5 + $0x758] sm:$0xff]  ;;  %v461_v30 = vld [vmem:[#allocation5 + $0x350] sm:$0xff] }
  0xd1   : > { %872 = vmatprep.subr.mxu1 %v494_v57  ;;  %802 = vmatpush1.msra.mxu0 %v365_v58  ;;  %v589_v31 = vld [vmem:[#allocation5 + $0x750] sm:$0xff]  ;;  %v458_v32 = vld [vmem:[#allocation5 + $0x338] sm:$0xff] }
  0xd2   : > { %873 = vmatpush1.msra.mxu1 %v493_v59  ;;  %803 = vmatprep.subr.mxu0 %v362_v60  ;;  %v586_v33 = vld [vmem:[#allocation5 + $0x738] sm:$0xff]  ;;  %v457_v34 = vld [vmem:[#allocation5 + $0x330] sm:$0xff] }
  0xd3   : > { %874 = vmatprep.subr.mxu1 %v490_v61  ;;  %804 = vmatpush1.msra.mxu0 %v361_v62  ;;  %v585_v35 = vld [vmem:[#allocation5 + $0x730] sm:$0xff]  ;;  %v454_v36 = vld [vmem:[#allocation5 + $0x318] sm:$0xff] }
  0xd4   : > { %875 = vmatpush1.msra.mxu1 %v489_v0  ;;  %805 = vmatprep.subr.mxu0 %v358_v3  ;;  %v582_v37 = vld [vmem:[#allocation5 + $0x718] sm:$0xff]  ;;  %v453_v38 = vld [vmem:[#allocation5 + $0x310] sm:$0xff] }
  0xd5   : > { %876 = vmatprep.subr.mxu1 %v486_v4  ;;  %806 = vmatpush1.msra.mxu0 %v357_v6  ;;  %v581_v39 = vld [vmem:[#allocation5 + $0x710] sm:$0xff]  ;;  %v450_v40 = vld [vmem:[#allocation5 + $0x2f8] sm:$0xff] }
  0xd6   : > { %877 = vmatpush1.msra.mxu1 %v485_v7  ;;  %807 = vmatprep.subr.mxu0 %v482_v8  ;;  %v578_v41 = vld [vmem:[#allocation5 + $0x6f8] sm:$0xff]  ;;  %v449_v42 = vld [vmem:[#allocation5 + $0x2f0] sm:$0xff] }
  0xd7   : > { %878 = vmatprep.subr.mxu1 %v610_v9  ;;  %808 = vmatpush2.msra.mxu0 %v481_v10  ;;  %v577_v43 = vld [vmem:[#allocation5 + $0x6f0] sm:$0xff]  ;;  %v446_v44 = vld [vmem:[#allocation5 + $0x2d8] sm:$0xff] }
  0xd8   : > { %879 = vmatpush2.msra.mxu1 %v609_v11  ;;  %809 = vmatprep.subr.mxu0 %v478_v12  ;;  %v574_v45 = vld [vmem:[#allocation5 + $0x6d8] sm:$0xff]  ;;  %v445_v46 = vld [vmem:[#allocation5 + $0x2d0] sm:$0xff] }
  0xd9   : > { %880 = vmatprep.subr.mxu1 %v606_v13  ;;  %810 = vmatpush2.msra.mxu0 %v477_v14  ;;  %v573_v47 = vld [vmem:[#allocation5 + $0x6d0] sm:$0xff]  ;;  %v442_v48 = vld [vmem:[#allocation5 + $0x2b8] sm:$0xff]  ;;  %v977_v13 = vld [vmem:[#allocation8 + $0x1e0] sm:$0xff] }
  0xda   : > { %881 = vmatpush2.msra.mxu1 %v605_v15  ;;  %811 = vmatprep.subr.mxu0 %v474_v16  ;;  %v570_v49 = vld [vmem:[#allocation5 + $0x6b8] sm:$0xff]  ;;  %v441_v50 = vld [vmem:[#allocation5 + $0x2b0] sm:$0xff]  ;;  %v973_v15 = vld [vmem:[#allocation8 + $0x1c0] sm:$0xff] }
  0xdb   : > { %882 = vmatprep.subr.mxu1 %v602_v17  ;;  %812 = vmatpush2.msra.mxu0 %v473_v18  ;;  %v569_v51 = vld [vmem:[#allocation5 + $0x6b0] sm:$0xff]  ;;  %v438_v52 = vld [vmem:[#allocation5 + $0x298] sm:$0xff]  ;;  %v969_v17 = vld [vmem:[#allocation8 + $0x1a0] sm:$0xff] }
  0xdc   : > { %883 = vmatpush2.msra.mxu1 %v601_v19  ;;  %813 = vmatprep.subr.mxu0 %v470_v20  ;;  %v566_v53 = vld [vmem:[#allocation5 + $0x698] sm:$0xff]  ;;  %v437_v54 = vld [vmem:[#allocation5 + $0x290] sm:$0xff]  ;;  %v1105_v20 = vld [vmem:[#allocation8 + $0x5e0] sm:$0xff] }
  0xdd   : > { %884 = vmatprep.subr.mxu1 %v598_v21  ;;  %814 = vmatpush2.msra.mxu0 %v469_v22  ;;  %v565_v55 = vld [vmem:[#allocation5 + $0x690] sm:$0xff]  ;;  %v434_v56 = vld [vmem:[#allocation5 + $0x278] sm:$0xff]  ;;  %v1101_v21 = vld [vmem:[#allocation8 + $0x5c0] sm:$0xff] }
  0xde   : > { %885 = vmatpush2.msra.mxu1 %v597_v23  ;;  %815 = vmatprep.subr.mxu0 %v466_v24  ;;  %v562_v57 = vld [vmem:[#allocation5 + $0x678] sm:$0xff]  ;;  %v433_v58 = vld [vmem:[#allocation5 + $0x270] sm:$0xff]  ;;  %v957_v24 = vld [vmem:[#allocation8 + $0x140] sm:$0xff] }
  0xdf   : > { %886 = vmatprep.subr.mxu1 %v594_v25  ;;  %816 = vmatpush2.msra.mxu0 %v465_v26  ;;  %v561_v59 = vld [vmem:[#allocation5 + $0x670] sm:$0xff]  ;;  %v430_v60 = vld [vmem:[#allocation5 + $0x258] sm:$0xff]  ;;  %v1097_v25 = vld [vmem:[#allocation8 + $0x5a0] sm:$0xff] }
  0xe0   : > { %887 = vmatpush2.msra.mxu1 %v593_v27  ;;  %817 = vmatprep.subr.mxu0 %v462_v28  ;;  %v558_v61 = vld [vmem:[#allocation5 + $0x658] sm:$0xff]  ;;  %v429_v62 = vld [vmem:[#allocation5 + $0x250] sm:$0xff]  ;;  %v953_v28 = vld [vmem:[#allocation8 + $0x120] sm:$0xff] }
  0xe1   : > { %888 = vmatprep.subr.mxu1 %v590_v29  ;;  %818 = vmatpush2.msra.mxu0 %v461_v30  ;;  %v557_v0 = vld [vmem:[#allocation5 + $0x650] sm:$0xff]  ;;  %v426_v3 = vld [vmem:[#allocation5 + $0x238] sm:$0xff]  ;;  %v1093_v29 = vld [vmem:[#allocation8 + $0x580] sm:$0xff] }
  0xe2   : > { %889 = vmatpush2.msra.mxu1 %v589_v31  ;;  %819 = vmatprep.subr.mxu0 %v458_v32  ;;  %v554_v4 = vld [vmem:[#allocation5 + $0x638] sm:$0xff]  ;;  %v425_v6 = vld [vmem:[#allocation5 + $0x230] sm:$0xff]  ;;  %v949_v32 = vld [vmem:[#allocation8 + $0x100] sm:$0xff] }
  0xe3   : > { %890 = vmatprep.subr.mxu1 %v586_v33  ;;  %820 = vmatpush2.msra.mxu0 %v457_v34  ;;  %v553_v7 = vld [vmem:[#allocation5 + $0x630] sm:$0xff]  ;;  %v422_v8 = vld [vmem:[#allocation5 + $0x218] sm:$0xff]  ;;  %v1089_v33 = vld [vmem:[#allocation8 + $0x560] sm:$0xff] }
  0xe4   : > { %891 = vmatpush2.msra.mxu1 %v585_v35  ;;  %821 = vmatprep.subr.mxu0 %v454_v36  ;;  %v550_v9 = vld [vmem:[#allocation5 + $0x618] sm:$0xff]  ;;  %v421_v10 = vld [vmem:[#allocation5 + $0x210] sm:$0xff]  ;;  %v945_v36 = vld [vmem:[#allocation8 + $0xe0] sm:$0xff] }
  0xe5   : > { %892 = vmatprep.subr.mxu1 %v582_v37  ;;  %822 = vmatpush2.msra.mxu0 %v453_v38  ;;  %v549_v11 = vld [vmem:[#allocation5 + $0x610] sm:$0xff]  ;;  %v1085_v37 = vld [vmem:[#allocation8 + $0x540] sm:$0xff] }
  0xe6   : > { %893 = vmatpush2.msra.mxu1 %v581_v39  ;;  %823 = vmatprep.subr.mxu0 %v450_v40  ;;  %v978_v12 = vld [vmem:[#allocation8 + $0x1e8] sm:$0xff]  ;;  %v941_v40 = vld [vmem:[#allocation8 + $0xc0] sm:$0xff] }
  0xe7   : > { %894 = vmatprep.subr.mxu1 %v578_v41  ;;  %824 = vmatpush2.msra.mxu0 %v449_v42  ;;  %v974_v14 = vld [vmem:[#allocation8 + $0x1c8] sm:$0xff]  ;;  %v1081_v41 = vld [vmem:[#allocation8 + $0x520] sm:$0xff] }
  0xe8   : > { %895 = vmatpush2.msra.mxu1 %v577_v43  ;;  %825 = vmatprep.subr.mxu0 %v446_v44  ;;  %v970_v16 = vld [vmem:[#allocation8 + $0x1a8] sm:$0xff]  ;;  %v937_v44 = vld [vmem:[#allocation8 + $0xa0] sm:$0xff] }
  0xe9   : > { %896 = vmatprep.subr.mxu1 %v574_v45  ;;  %826 = vmatpush2.msra.mxu0 %v445_v46  ;;  %v966_v18 = vld [vmem:[#allocation8 + $0x188] sm:$0xff]  ;;  %v1077_v45 = vld [vmem:[#allocation8 + $0x500] sm:$0xff] }
  0xea   : > { %897 = vmatpush2.msra.mxu1 %v573_v47  ;;  %827 = vmatprep.subr.mxu0 %v442_v48  ;;  %v1106_v19 = vld [vmem:[#allocation8 + $0x5e8] sm:$0xff]  ;;  %v933_v48 = vld [vmem:[#allocation8 + $0x80] sm:$0xff] }
  0xeb   : > { %898 = vmatprep.subr.mxu1 %v570_v49  ;;  %828 = vmatpush2.msra.mxu0 %v441_v50  ;;  %v958_v22 = vld [vmem:[#allocation8 + $0x148] sm:$0xff]  ;;  %v1073_v49 = vld [vmem:[#allocation8 + $0x4e0] sm:$0xff] }
  0xec   : > { %899 = vmatpush2.msra.mxu1 %v569_v51  ;;  %829 = vmatprep.subr.mxu0 %v438_v52  ;;  %v1098_v23 = vld [vmem:[#allocation8 + $0x5a8] sm:$0xff]  ;;  %v929_v52 = vld [vmem:[#allocation8 + $0x60] sm:$0xff] }
  0xed   : > { %900 = vmatprep.subr.mxu1 %v566_v53  ;;  %830 = vmatpush2.msra.mxu0 %v437_v54  ;;  %v954_v26 = vld [vmem:[#allocation8 + $0x128] sm:$0xff]  ;;  %v1069_v53 = vld [vmem:[#allocation8 + $0x4c0] sm:$0xff] }
  0xee   : > { %901 = vmatpush2.msra.mxu1 %v565_v55  ;;  %831 = vmatprep.subr.mxu0 %v434_v56  ;;  %v1094_v27 = vld [vmem:[#allocation8 + $0x588] sm:$0xff]  ;;  %v925_v56 = vld [vmem:[#allocation8 + $0x40] sm:$0xff] }
  0xef   : > { %902 = vmatprep.subr.mxu1 %v562_v57  ;;  %832 = vmatpush2.msra.mxu0 %v433_v58  ;;  %v950_v30 = vld [vmem:[#allocation8 + $0x108] sm:$0xff]  ;;  %v1065_v57 = vld [vmem:[#allocation8 + $0x4a0] sm:$0xff] }
  0xf0   : > { %903 = vmatpush2.msra.mxu1 %v561_v59  ;;  %833 = vmatprep.subr.mxu0 %v430_v60  ;;  %v1090_v31 = vld [vmem:[#allocation8 + $0x568] sm:$0xff]  ;;  %v921_v60 = vld [vmem:[#allocation8 + $0x20] sm:$0xff] }
  0xf1   : > { %904 = vmatprep.subr.mxu1 %v558_v61  ;;  %834 = vmatpush2.msra.mxu0 %v429_v62  ;;  %v946_v34 = vld [vmem:[#allocation8 + $0xe8] sm:$0xff]  ;;  %v1061_v61 = vld [vmem:[#allocation8 + $0x480] sm:$0xff] }
  0xf2   : > { %905 = vmatpush2.msra.mxu1 %v557_v0  ;;  %835 = vmatprep.subr.mxu0 %v426_v3  ;;  %v1086_v35 = vld [vmem:[#allocation8 + $0x548] sm:$0xff]  ;;  %v917_v3 = vld [vmem:[#allocation8] sm:$0xff] }
  0xf3   : > { %906 = vmatprep.subr.mxu1 %v554_v4  ;;  %836 = vmatpush2.msra.mxu0 %v425_v6  ;;  %v942_v38 = vld [vmem:[#allocation8 + $0xc8] sm:$0xff]  ;;  %v1057_v4 = vld [vmem:[#allocation8 + $0x460] sm:$0xff] }
  0xf4   : > { %907 = vmatpush2.msra.mxu1 %v553_v7  ;;  %837 = vmatprep.subr.mxu0 %v422_v8  ;;  %v1082_v39 = vld [vmem:[#allocation8 + $0x528] sm:$0xff]  ;;  %v1041_v8 = vld [vmem:[#allocation8 + $0x3e0] sm:$0xff] }
  0xf5   : > { %908 = vmatprep.subr.mxu1 %v550_v9  ;;  %838 = vmatpush2.msra.mxu0 %v421_v10  ;;  %v938_v42 = vld [vmem:[#allocation8 + $0xa8] sm:$0xff]  ;;  %v1053_v9 = vld [vmem:[#allocation8 + $0x440] sm:$0xff] }
  0xf6   : > { %839 = vmatprep.mubr.f32.mxu0 %v2717_v63  ;;  %909 = vmatpush2.msra.mxu1 %v549_v11  ;;  %v965_v63 = vld [vmem:[#allocation8 + $0x180] sm:$0xff]  ;;  %v1078_v43 = vld [vmem:[#allocation8 + $0x508] sm:$0xff] }
  0xf7   : > { %910 = vmatprep.mubr.f32.mxu1 %v2723_v2  ;;  %840 = vmatmul.mubr.f32.vlgmr.msra.gmra.mxu0 %v2720_v1  ;;  %v962_v2 = vld [vmem:[#allocation8 + $0x168] sm:$0xff] }
  0xf8   : > { %911 = vmatmul.mubr.f32.vlgmr.msra.gmra.mxu1 %v2727_v5  ;;  %1195 = vmatprep.subr.mxu0 %v978_v12  ;;  %v1102_v1 = vld [vmem:[#allocation8 + $0x5c8] sm:$0xff]  ;;  %v961_v5 = vld [vmem:[#allocation8 + $0x160] sm:$0xff] }
  0xf9   : > { %1196 = vmatpush1.msra.mxu0 %v977_v13  ;;  %1266 = vmatprep.subr.mxu1 %v1106_v19  ;;  %v934_v46 = vld [vmem:[#allocation8 + $0x88] sm:$0xff]  ;;  %v1037_v12 = vld [vmem:[#allocation8 + $0x3c0] sm:$0xff] }
  0xfa   : > { %1197 = vmatprep.subr.mxu0 %v974_v14  ;;  %1267 = vmatpush1.msra.mxu1 %v1105_v20  ;;  %v1074_v47 = vld [vmem:[#allocation8 + $0x4e8] sm:$0xff]  ;;  %v1049_v13 = vld [vmem:[#allocation8 + $0x420] sm:$0xff] }
  0xfb   : > { %1198 = vmatpush1.msra.mxu0 %v973_v15  ;;  %1268 = vmatprep.subr.mxu1 %v1102_v1  ;;  %v930_v50 = vld [vmem:[#allocation8 + $0x68] sm:$0xff]  ;;  %v1169_v20 = vld [vmem:[#allocation8 + $0x7e0] sm:$0xff] }
  0xfc   : > { %1199 = vmatprep.subr.mxu0 %v970_v16  ;;  %1269 = vmatpush1.msra.mxu1 %v1101_v21  ;;  %v1070_v51 = vld [vmem:[#allocation8 + $0x4c8] sm:$0xff]  ;;  %v1033_v16 = vld [vmem:[#allocation8 + $0x3a0] sm:$0xff] }
  0xfd   : > { %1200 = vmatpush1.msra.mxu0 %v969_v17  ;;  %1270 = vmatprep.subr.mxu1 %v1098_v23  ;;  %v926_v54 = vld [vmem:[#allocation8 + $0x48] sm:$0xff]  ;;  %v1045_v17 = vld [vmem:[#allocation8 + $0x400] sm:$0xff] }
  0xfe   : > { %1201 = vmatprep.subr.mxu0 %v966_v18  ;;  %1271 = vmatpush1.msra.mxu1 %v1097_v25  ;;  %v1066_v55 = vld [vmem:[#allocation8 + $0x4a8] sm:$0xff]  ;;  %v1165_v21 = vld [vmem:[#allocation8 + $0x7c0] sm:$0xff] }
  0xff   : > { %1202 = vmatpush1.msra.mxu0 %v965_v63  ;;  %1272 = vmatprep.subr.mxu1 %v1094_v27  ;;  %v922_v58 = vld [vmem:[#allocation8 + $0x28] sm:$0xff]  ;;  %v1029_v63 = vld [vmem:[#allocation8 + $0x380] sm:$0xff] }
 0x100   : > { %1203 = vmatprep.subr.mxu0 %v962_v2  ;;  %1273 = vmatpush1.msra.mxu1 %v1093_v29  ;;  %v1062_v59 = vld [vmem:[#allocation8 + $0x488] sm:$0xff]  ;;  %v1161_v25 = vld [vmem:[#allocation8 + $0x7a0] sm:$0xff] }
 0x101   : > { %1204 = vmatpush1.msra.mxu0 %v961_v5  ;;  %1274 = vmatprep.subr.mxu1 %v1090_v31  ;;  %v918_v62 = vld [vmem:[#allocation8 + $0x8] sm:$0xff]  ;;  %v1025_v5 = vld [vmem:[#allocation8 + $0x360] sm:$0xff] }
 0x102   : > { %1205 = vmatprep.subr.mxu0 %v958_v22  ;;  %1275 = vmatpush1.msra.mxu1 %v1089_v33  ;;  %v1058_v0 = vld [vmem:[#allocation8 + $0x468] sm:$0xff]  ;;  %v1157_v29 = vld [vmem:[#allocation8 + $0x780] sm:$0xff] }
 0x103   : > { %1206 = vmatpush1.msra.mxu0 %v957_v24  ;;  %1276 = vmatprep.subr.mxu1 %v1086_v35  ;;  %v1042_v6 = vld [vmem:[#allocation8 + $0x3e8] sm:$0xff]  ;;  %v1021_v24 = vld [vmem:[#allocation8 + $0x340] sm:$0xff] }
 0x104   : > { %1207 = vmatprep.subr.mxu0 %v954_v26  ;;  %1277 = vmatpush1.msra.mxu1 %v1085_v37  ;;  %v1054_v7 = vld [vmem:[#allocation8 + $0x448] sm:$0xff]  ;;  %v1153_v33 = vld [vmem:[#allocation8 + $0x760] sm:$0xff] }
 0x105   : > { %1208 = vmatpush1.msra.mxu0 %v953_v28  ;;  %1278 = vmatprep.subr.mxu1 %v1082_v39  ;;  %v1038_v10 = vld [vmem:[#allocation8 + $0x3c8] sm:$0xff]  ;;  %v1017_v28 = vld [vmem:[#allocation8 + $0x320] sm:$0xff] }
 0x106   : > { %1209 = vmatprep.subr.mxu0 %v950_v30  ;;  %1279 = vmatpush1.msra.mxu1 %v1081_v41  ;;  %v1050_v11 = vld [vmem:[#allocation8 + $0x428] sm:$0xff]  ;;  %v1149_v37 = vld [vmem:[#allocation8 + $0x740] sm:$0xff] }
 0x107   : > { %1210 = vmatpush1.msra.mxu0 %v949_v32  ;;  %1280 = vmatprep.subr.mxu1 %v1078_v43  ;;  %v1034_v14 = vld [vmem:[#allocation8 + $0x3a8] sm:$0xff]  ;;  %v1013_v32 = vld [vmem:[#allocation8 + $0x300] sm:$0xff] }
 0x108   : > { %1211 = vmatprep.subr.mxu0 %v946_v34  ;;  %1281 = vmatpush1.msra.mxu1 %v1077_v45  ;;  %v1046_v15 = vld [vmem:[#allocation8 + $0x408] sm:$0xff]  ;;  %v1145_v41 = vld [vmem:[#allocation8 + $0x720] sm:$0xff] }
 0x109   : > { %1212 = vmatpush1.msra.mxu0 %v945_v36  ;;  %1282 = vmatprep.subr.mxu1 %v1074_v47  ;;  %v1030_v18 = vld [vmem:[#allocation8 + $0x388] sm:$0xff]  ;;  %v1009_v36 = vld [vmem:[#allocation8 + $0x2e0] sm:$0xff] }
 0x10a   : > { %1213 = vmatprep.subr.mxu0 %v942_v38  ;;  %1283 = vmatpush1.msra.mxu1 %v1073_v49  ;;  %v1170_v19 = vld [vmem:[#allocation8 + $0x7e8] sm:$0xff]  ;;  %v1141_v45 = vld [vmem:[#allocation8 + $0x700] sm:$0xff] }
 0x10b   : > { %1214 = vmatpush1.msra.mxu0 %v941_v40  ;;  %1284 = vmatprep.subr.mxu1 %v1070_v51  ;;  %v1026_v2 = vld [vmem:[#allocation8 + $0x368] sm:$0xff]  ;;  %v1005_v40 = vld [vmem:[#allocation8 + $0x2c0] sm:$0xff] }
 0x10c   : > { %1215 = vmatprep.subr.mxu0 %v938_v42  ;;  %1285 = vmatpush1.msra.mxu1 %v1069_v53  ;;  %v1166_v1 = vld [vmem:[#allocation8 + $0x7c8] sm:$0xff]  ;;  %v1137_v49 = vld [vmem:[#allocation8 + $0x6e0] sm:$0xff] }
 0x10d   : > { %1216 = vmatpush1.msra.mxu0 %v937_v44  ;;  %1286 = vmatprep.subr.mxu1 %v1066_v55  ;;  %v1022_v22 = vld [vmem:[#allocation8 + $0x348] sm:$0xff]  ;;  %v1001_v44 = vld [vmem:[#allocation8 + $0x2a0] sm:$0xff] }
 0x10e   : > { %1217 = vmatprep.subr.mxu0 %v934_v46  ;;  %1287 = vmatpush1.msra.mxu1 %v1065_v57  ;;  %v1162_v23 = vld [vmem:[#allocation8 + $0x7a8] sm:$0xff]  ;;  %v1133_v53 = vld [vmem:[#allocation8 + $0x6c0] sm:$0xff] }
 0x10f   : > { %1218 = vmatpush1.msra.mxu0 %v933_v48  ;;  %1288 = vmatprep.subr.mxu1 %v1062_v59  ;;  %v1018_v26 = vld [vmem:[#allocation8 + $0x328] sm:$0xff]  ;;  %v997_v48 = vld [vmem:[#allocation8 + $0x280] sm:$0xff] }
 0x110   : > { %1219 = vmatprep.subr.mxu0 %v930_v50  ;;  %1289 = vmatpush1.msra.mxu1 %v1061_v61  ;;  %v1158_v27 = vld [vmem:[#allocation8 + $0x788] sm:$0xff]  ;;  %v1129_v57 = vld [vmem:[#allocation8 + $0x6a0] sm:$0xff] }
 0x111   : > { %1220 = vmatpush1.msra.mxu0 %v929_v52  ;;  %1290 = vmatprep.subr.mxu1 %v1058_v0  ;;  %v1014_v30 = vld [vmem:[#allocation8 + $0x308] sm:$0xff]  ;;  %v993_v52 = vld [vmem:[#allocation8 + $0x260] sm:$0xff] }
 0x112   : > { %1221 = vmatprep.subr.mxu0 %v926_v54  ;;  %1291 = vmatpush1.msra.mxu1 %v1057_v4  ;;  %v1154_v31 = vld [vmem:[#allocation8 + $0x768] sm:$0xff]  ;;  %v1125_v61 = vld [vmem:[#allocation8 + $0x680] sm:$0xff]  ;;  %v980_v4 = vld [vmem:[#allocation8 + $0x1f8] sm:$0xff] }
 0x113   : > { %1222 = vmatpush1.msra.mxu0 %v925_v56  ;;  %1292 = vmatprep.subr.mxu1 %v1054_v7  ;;  %v1010_v34 = vld [vmem:[#allocation8 + $0x2e8] sm:$0xff]  ;;  %v989_v56 = vld [vmem:[#allocation8 + $0x240] sm:$0xff] }
 0x114   : > { %1223 = vmatprep.subr.mxu0 %v922_v58  ;;  %1293 = vmatpush1.msra.mxu1 %v1053_v9  ;;  %v1150_v35 = vld [vmem:[#allocation8 + $0x748] sm:$0xff] }
 0x115   : > { %1224 = vmatpush1.msra.mxu0 %v921_v60  ;;  %1294 = vmatprep.subr.mxu1 %v1050_v11  ;;  %v1006_v38 = vld [vmem:[#allocation8 + $0x2c8] sm:$0xff]  ;;  %v985_v60 = vld [vmem:[#allocation8 + $0x220] sm:$0xff] }
 0x116   : > { %1225 = vmatprep.subr.mxu0 %v918_v62  ;;  %1295 = vmatpush1.msra.mxu1 %v1049_v13  ;;  %v1146_v39 = vld [vmem:[#allocation8 + $0x728] sm:$0xff]  ;;  %v1108_v13 = vld [vmem:[#allocation8 + $0x5f8] sm:$0xff] }
 0x117   : > { %1226 = vmatpush1.msra.mxu0 %v917_v3  ;;  %1296 = vmatprep.subr.mxu1 %v1046_v15  ;;  %v1002_v42 = vld [vmem:[#allocation8 + $0x2a8] sm:$0xff]  ;;  %v981_v3 = vld [vmem:[#allocation8 + $0x200] sm:$0xff] }
 0x118   : > { %1227 = vmatprep.subr.mxu0 %v1042_v6  ;;  %1297 = vmatpush1.msra.mxu1 %v1045_v17  ;;  %v1142_v43 = vld [vmem:[#allocation8 + $0x708] sm:$0xff]  ;;  %v1121_v6 = vld [vmem:[#allocation8 + $0x660] sm:$0xff]  ;;  %v2741_v17 = vld [vmem:[#allocation7] sm:$0xf] }
 0x119   : > { %1228 = vmatpush2.msra.mxu0 %v1041_v8  ;;  %1298 = vmatprep.subr.mxu1 %v1170_v19  ;;  %v998_v46 = vld [vmem:[#allocation8 + $0x288] sm:$0xff]  ;;  %v1117_v8 = vld [vmem:[#allocation8 + $0x640] sm:$0xff] }
 0x11a   : > { %1229 = vmatprep.subr.mxu0 %v1038_v10  ;;  %1299 = vmatpush2.msra.mxu1 %v1169_v20  ;;  %v1138_v47 = vld [vmem:[#allocation8 + $0x6e8] sm:$0xff]  ;;  %v1113_v10 = vld [vmem:[#allocation8 + $0x620] sm:$0xff] }
 0x11b   : > { %1230 = vmatpush2.msra.mxu0 %v1037_v12  ;;  %1300 = vmatprep.subr.mxu1 %v1166_v1  ;;  %v994_v50 = vld [vmem:[#allocation8 + $0x268] sm:$0xff]  ;;  %v1109_v12 = vld [vmem:[#allocation8 + $0x600] sm:$0xff] }
 0x11c   : > { %1231 = vmatprep.subr.mxu0 %v1034_v14  ;;  %1301 = vmatpush2.msra.mxu1 %v1165_v21  ;;  %v1134_v51 = vld [vmem:[#allocation8 + $0x6c8] sm:$0xff]  ;;  %v613_v14 = vlaneseq }
 0x11d   : > { %1232 = vmatpush2.msra.mxu0 %v1033_v16  ;;  %1302 = vmatprep.subr.mxu1 %v1162_v23  ;;  %v990_v54 = vld [vmem:[#allocation8 + $0x248] sm:$0xff] }
 0x11e   : > { %1233 = vmatprep.subr.mxu0 %v1030_v18  ;;  %1303 = vmatpush2.msra.mxu1 %v1161_v25  ;;  %v1130_v55 = vld [vmem:[#allocation8 + $0x6a8] sm:$0xff]  ;;  %v2736_v15 = vshrl.u32 %v613_v14, 7  ;;  %v979_v25 = vld [vmem:[#allocation8 + $0x1f0] sm:$0xff]  ;;  %v1008_v14 = vld [vmem:[#allocation8 + $0x2d8] sm:$0xff] }
 0x11f   : > { %1234 = vmatpush2.msra.mxu0 %v1029_v63  ;;  %1304 = vmatprep.subr.mxu1 %v1158_v27  ;;  %v986_v58 = vld [vmem:[#allocation8 + $0x228] sm:$0xff]  ;;  %v975_v27 = vld [vmem:[#allocation8 + $0x1d0] sm:$0xff] }
 0x120   : > { %1235 = vmatprep.subr.mxu0 %v1026_v2  ;;  %1305 = vmatpush2.msra.mxu1 %v1157_v29  ;;  %v1126_v59 = vld [vmem:[#allocation8 + $0x688] sm:$0xff]  ;;  %v2739_v16 = vsub.s32 0, %v2736_v15  ;;  %v2744_v18 = vsub.s32 1, %v2736_v15  ;;  %v971_v29 = vld [vmem:[#allocation8 + $0x1b0] sm:$0xff] }
 0x121   : > { %1236 = vmatpush2.msra.mxu0 %v1025_v5  ;;  %1306 = vmatprep.subr.mxu1 %v1154_v31  ;;  %v982_v62 = vld [vmem:[#allocation8 + $0x208] sm:$0xff]  ;;  %v967_v31 = vld [vmem:[#allocation8 + $0x190] sm:$0xff] }
 0x122   : > { %1237 = vmatprep.subr.mxu0 %v1022_v22  ;;  %1307 = vmatpush2.msra.mxu1 %v1153_v33  ;;  %v1122_v0 = vld [vmem:[#allocation8 + $0x668] sm:$0xff]  ;;  %v616_v19 = vrot.slane %v2741_v17, %v2739_v16  ;;  %v620_v63 = vrot.slane %v2741_v17, %v2744_v18  ;;  %v963_v33 = vld [vmem:[#allocation8 + $0x170] sm:$0xff] }
 0x123   : > { %1238 = vmatpush2.msra.mxu0 %v1021_v24  ;;  %1308 = vmatprep.subr.mxu1 %v1150_v35  ;;  %v1118_v7 = vld [vmem:[#allocation8 + $0x648] sm:$0xff]  ;;  %v959_v35 = vld [vmem:[#allocation8 + $0x150] sm:$0xff] }
 0x124   : > { %1239 = vmatprep.subr.mxu0 %v1018_v26  ;;  %1309 = vmatpush2.msra.mxu1 %v1149_v37  ;;  %v1114_v9 = vld [vmem:[#allocation8 + $0x628] sm:$0xff]  ;;  %v976_v26 = vld [vmem:[#allocation8 + $0x1d8] sm:$0xff]  ;;  %v955_v37 = vld [vmem:[#allocation8 + $0x130] sm:$0xff] }
 0x125   : > { %1240 = vmatpush2.msra.mxu0 %v1017_v28  ;;  %1310 = vmatprep.subr.mxu1 %v1146_v39  ;;  %v1110_v11 = vld [vmem:[#allocation8 + $0x608] sm:$0xff]  ;;  %v972_v28 = vld [vmem:[#allocation8 + $0x1b8] sm:$0xff]  ;;  %v951_v39 = vld [vmem:[#allocation8 + $0x110] sm:$0xff] }
 0x126   : > { %1241 = vmatprep.subr.mxu0 %v1014_v30  ;;  %1311 = vmatpush2.msra.mxu1 %v1145_v41  ;;  %v968_v30 = vld [vmem:[#allocation8 + $0x198] sm:$0xff]  ;;  %v947_v41 = vld [vmem:[#allocation8 + $0xf0] sm:$0xff] }
 0x127   : > { %1242 = vmatpush2.msra.mxu0 %v1013_v32  ;;  %1312 = vmatprep.subr.mxu1 %v1142_v43  ;;  %v964_v32 = vld [vmem:[#allocation8 + $0x178] sm:$0xff]  ;;  %v943_v43 = vld [vmem:[#allocation8 + $0xd0] sm:$0xff] }
 0x128   : > { %1243 = vmatprep.subr.mxu0 %v1010_v34  ;;  %1313 = vmatpush2.msra.mxu1 %v1141_v45  ;;  %v960_v34 = vld [vmem:[#allocation8 + $0x158] sm:$0xff]  ;;  %v939_v45 = vld [vmem:[#allocation8 + $0xb0] sm:$0xff] }
 0x129   : > { %1244 = vmatpush2.msra.mxu0 %v1009_v36  ;;  %1314 = vmatprep.subr.mxu1 %v1138_v47  ;;  %v956_v36 = vld [vmem:[#allocation8 + $0x138] sm:$0xff]  ;;  %v935_v47 = vld [vmem:[#allocation8 + $0x90] sm:$0xff] }
 0x12a   : > { %1245 = vmatprep.subr.mxu0 %v1006_v38  ;;  %1315 = vmatpush2.msra.mxu1 %v1137_v49  ;;  %v952_v38 = vld [vmem:[#allocation8 + $0x118] sm:$0xff]  ;;  %v931_v49 = vld [vmem:[#allocation8 + $0x70] sm:$0xff] }
 0x12b   : > { %1246 = vmatpush2.msra.mxu0 %v1005_v40  ;;  %1316 = vmatprep.subr.mxu1 %v1134_v51  ;;  %v948_v40 = vld [vmem:[#allocation8 + $0xf8] sm:$0xff]  ;;  %v927_v51 = vld [vmem:[#allocation8 + $0x50] sm:$0xff] }
 0x12c   : > { %1247 = vmatprep.subr.mxu0 %v1002_v42  ;;  %1317 = vmatpush2.msra.mxu1 %v1133_v53  ;;  %v944_v42 = vld [vmem:[#allocation8 + $0xd8] sm:$0xff]  ;;  %v923_v53 = vld [vmem:[#allocation8 + $0x30] sm:$0xff] }
 0x12d   : > { %1248 = vmatpush2.msra.mxu0 %v1001_v44  ;;  %1318 = vmatprep.subr.mxu1 %v1130_v55  ;;  %v940_v44 = vld [vmem:[#allocation8 + $0xb8] sm:$0xff]  ;;  %v919_v55 = vld [vmem:[#allocation8 + $0x10] sm:$0xff] }
 0x12e   : > { %1249 = vmatprep.subr.mxu0 %v998_v46  ;;  %1319 = vmatpush2.msra.mxu1 %v1129_v57  ;;  %v936_v46 = vld [vmem:[#allocation8 + $0x98] sm:$0xff]  ;;  %v1043_v57 = vld [vmem:[#allocation8 + $0x3f0] sm:$0xff] }
 0x12f   : > { %1250 = vmatpush2.msra.mxu0 %v997_v48  ;;  %1320 = vmatprep.subr.mxu1 %v1126_v59  ;;  %v932_v48 = vld [vmem:[#allocation8 + $0x78] sm:$0xff]  ;;  %v1039_v59 = vld [vmem:[#allocation8 + $0x3d0] sm:$0xff] }
 0x130   : > { %1251 = vmatprep.subr.mxu0 %v994_v50  ;;  %1321 = vmatpush2.msra.mxu1 %v1125_v61  ;;  %v928_v50 = vld [vmem:[#allocation8 + $0x58] sm:$0xff]  ;;  %v1035_v61 = vld [vmem:[#allocation8 + $0x3b0] sm:$0xff] }
 0x131   : > { %1252 = vmatpush2.msra.mxu0 %v993_v52  ;;  %1322 = vmatprep.subr.mxu1 %v1122_v0  ;;  %v924_v52 = vld [vmem:[#allocation8 + $0x38] sm:$0xff]  ;;  %v1031_v0 = vld [vmem:[#allocation8 + $0x390] sm:$0xff] }
 0x132   : > { %1253 = vmatprep.subr.mxu0 %v990_v54  ;;  %1323 = vmatpush2.msra.mxu1 %v1121_v6  ;;  %v920_v54 = vld [vmem:[#allocation8 + $0x18] sm:$0xff] }
 0x133   : > { %1254 = vmatpush2.msra.mxu0 %v989_v56  ;;  %1324 = vmatprep.subr.mxu1 %v1118_v7  ;;  %v1044_v56 = vld [vmem:[#allocation8 + $0x3f8] sm:$0xff]  ;;  %v1023_v7 = vld [vmem:[#allocation8 + $0x350] sm:$0xff] }
 0x134   : > { %1255 = vmatprep.subr.mxu0 %v986_v58  ;;  %1325 = vmatpush2.msra.mxu1 %v1117_v8  ;;  %v1040_v58 = vld [vmem:[#allocation8 + $0x3d8] sm:$0xff] }
 0x135   : > { %1256 = vmatpush2.msra.mxu0 %v985_v60  ;;  %1326 = vmatprep.subr.mxu1 %v1114_v9  ;;  %v1036_v60 = vld [vmem:[#allocation8 + $0x3b8] sm:$0xff]  ;;  %v1019_v9 = vld [vmem:[#allocation8 + $0x330] sm:$0xff] }
 0x136   : > { %1257 = vmatprep.subr.mxu0 %v982_v62  ;;  %1327 = vmatpush2.msra.mxu1 %v1113_v10  ;;  %v1032_v62 = vld [vmem:[#allocation8 + $0x398] sm:$0xff] }
 0x137   : > { %1258 = vmatpush2.msra.mxu0 %v981_v3  ;;  %1328 = vmatprep.subr.mxu1 %v1110_v11  ;;  %v1028_v3 = vld [vmem:[#allocation8 + $0x378] sm:$0xff]  ;;  %v1015_v11 = vld [vmem:[#allocation8 + $0x310] sm:$0xff] }
 0x138   : > { %1337 = vmatprep.subr.mxu0 %v980_v4  ;;  %1329 = vmatpush2.msra.mxu1 %v1109_v12  ;;  %v1027_v4 = vld [vmem:[#allocation8 + $0x370] sm:$0xff]  ;;  %v1024_v6 = vld [vmem:[#allocation8 + $0x358] sm:$0xff] }
 0x139   : > { %1408 = vmatprep.subr.mxu1 %v1108_v13  ;;  %v1020_v8 = vld [vmem:[#allocation8 + $0x338] sm:$0xff]  ;;  %v1011_v13 = vld [vmem:[#allocation8 + $0x2f0] sm:$0xff] }
 0x13a   : > { %v1016_v10 = vld [vmem:[#allocation8 + $0x318] sm:$0xff] }
 0x13b   : > { %v1012_v12 = vld [vmem:[#allocation8 + $0x2f8] sm:$0xff] }
 0x175   : > { %v699_v20 = vpop.f32.mrf.mxu0 }
 0x176   : > { %v700_v2 = vadd.f32 %v699_v20, %v616_v19  ;;  %v1007_v19 = vld [vmem:[#allocation8 + $0x2d0] sm:$0xff] }
 0x177   : > { %v770_v1 = vpop.f32.mrf.mxu1  ;;  %v701_v5 = vpop.f32.mrf.mxu0  ;;  %v1003_v20 = vld [vmem:[#allocation8 + $0x2b0] sm:$0xff] }
 0x178   : > { %v702_v21 = vadd.f32 %v701_v5, %v620_v63  ;;  %v2750_v24 = vadd.f32 %v770_v1, %v700_v2  ;;  %v1004_v63 = vld [vmem:[#allocation8 + $0x2b8] sm:$0xff]  ;;  %v999_v1 = vld [vmem:[#allocation8 + $0x290] sm:$0xff] }
 0x179   : > { %v772_v22 = vpop.f32.mrf.mxu1  ;;  %v1000_v2 = vld [vmem:[#allocation8 + $0x298] sm:$0xff] }
 0x17a   : > { %v773_v23 = vadd.f32 %v772_v22, %v702_v21  ;;  %v996_v5 = vld [vmem:[#allocation8 + $0x278] sm:$0xff]  ;;  %v2754_v21 = vsub.s32 2, %v2736_v15  ;;  %v995_v22 = vld [vmem:[#allocation8 + $0x270] sm:$0xff] }
 0x17c   : > { %1259 = vmatprep.mubr.f32.mxu0 %v773_v23 }
 0x17d   : > { %1260 = vmatmul.mubr.f32.vlgmr.msra.gmra.mxu0 %v2750_v24 }
 0x17e   : > { %1338 = vmatpush1.msra.mxu0 %v979_v25  ;;  %1401 = vmatprep.mubr.f32.mxu0 %v773_v23  ;;  %v2757_v23 = vsub.s32 3, %v2736_v15  ;;  %v992_v25 = vld [vmem:[#allocation8 + $0x258] sm:$0xff]  ;;  %v983_v15 = vld [vmem:[#allocation8 + $0x210] sm:$0xff] }
 0x17f   : > { %1339 = vmatprep.subr.mxu0 %v976_v26  ;;  %v991_v26 = vld [vmem:[#allocation8 + $0x250] sm:$0xff] }
 0x180   : > { %1340 = vmatpush1.msra.mxu0 %v975_v27  ;;  %v624_v27 = vrot.slane %v2741_v17, %v2754_v21 }
 0x181   : > { %1341 = vmatprep.subr.mxu0 %v972_v28  ;;  %v988_v28 = vld [vmem:[#allocation8 + $0x238] sm:$0xff] }
 0x182   : > { %1342 = vmatpush1.msra.mxu0 %v971_v29  ;;  %v628_v29 = vrot.slane %v2741_v17, %v2757_v23  ;;  %v1107_v17 = vld [vmem:[#allocation8 + $0x5f0] sm:$0xff] }
 0x183   : > { %1343 = vmatprep.subr.mxu0 %v968_v30  ;;  %v987_v30 = vld [vmem:[#allocation8 + $0x230] sm:$0xff] }
 0x184   : > { %1344 = vmatpush1.msra.mxu0 %v967_v31 }
 0x185   : > { %1345 = vmatprep.subr.mxu0 %v964_v32 }
 0x186   : > { %1346 = vmatpush1.msra.mxu0 %v963_v33  ;;  %v984_v33 = vld [vmem:[#allocation8 + $0x218] sm:$0xff] }
 0x187   : > { %1347 = vmatprep.subr.mxu0 %v960_v34 }
 0x188   : > { %1348 = vmatpush1.msra.mxu0 %v959_v35 }
 0x189   : > { %1349 = vmatprep.subr.mxu0 %v956_v36 }
 0x18a   : > { %1350 = vmatpush1.msra.mxu0 %v955_v37 }
 0x18b   : > { %1351 = vmatprep.subr.mxu0 %v952_v38 }
 0x18c   : > { %1352 = vmatpush1.msra.mxu0 %v951_v39 }
 0x18d   : > { %1353 = vmatprep.subr.mxu0 %v948_v40  ;;  %v1104_v40 = vld [vmem:[#allocation8 + $0x5d8] sm:$0xff] }
 0x18e   : > { %1354 = vmatpush1.msra.mxu0 %v947_v41  ;;  %v1103_v41 = vld [vmem:[#allocation8 + $0x5d0] sm:$0xff] }
 0x18f   : > { %1355 = vmatprep.subr.mxu0 %v944_v42  ;;  %v1540_v42 = vld [vmem:[#allocation10 + $0x1e8] sm:$0xff] }
 0x190   : > { %1356 = vmatpush1.msra.mxu0 %v943_v43  ;;  %v1539_v43 = vld [vmem:[#allocation10 + $0x1e0] sm:$0xff] }
 0x191   : > { %1357 = vmatprep.subr.mxu0 %v940_v44  ;;  %v1100_v44 = vld [vmem:[#allocation8 + $0x5b8] sm:$0xff] }
 0x192   : > { %1358 = vmatpush1.msra.mxu0 %v939_v45  ;;  %v1536_v45 = vld [vmem:[#allocation10 + $0x1c8] sm:$0xff] }
 0x193   : > { %1359 = vmatprep.subr.mxu0 %v936_v46  ;;  %v1099_v46 = vld [vmem:[#allocation8 + $0x5b0] sm:$0xff] }
 0x194   : > { %1360 = vmatpush1.msra.mxu0 %v935_v47  ;;  %v1535_v47 = vld [vmem:[#allocation10 + $0x1c0] sm:$0xff] }
 0x195   : > { %1361 = vmatprep.subr.mxu0 %v932_v48  ;;  %v1532_v48 = vld [vmem:[#allocation10 + $0x1a8] sm:$0xff] }
 0x196   : > { %1362 = vmatpush1.msra.mxu0 %v931_v49  ;;  %v1095_v49 = vld [vmem:[#allocation8 + $0x590] sm:$0xff] }
 0x197   : > { %1363 = vmatprep.subr.mxu0 %v928_v50  ;;  %v1531_v50 = vld [vmem:[#allocation10 + $0x1a0] sm:$0xff] }
 0x198   : > { %1364 = vmatpush1.msra.mxu0 %v927_v51  ;;  %v1092_v51 = vld [vmem:[#allocation8 + $0x578] sm:$0xff] }
 0x199   : > { %1365 = vmatprep.subr.mxu0 %v924_v52  ;;  %v1528_v52 = vld [vmem:[#allocation10 + $0x188] sm:$0xff] }
 0x19a   : > { %1366 = vmatpush1.msra.mxu0 %v923_v53  ;;  %v1091_v53 = vld [vmem:[#allocation8 + $0x570] sm:$0xff] }
 0x19b   : > { %1367 = vmatprep.subr.mxu0 %v920_v54  ;;  %v1527_v54 = vld [vmem:[#allocation10 + $0x180] sm:$0xff] }
 0x19c   : > { %1368 = vmatpush1.msra.mxu0 %v919_v55  ;;  %v1088_v55 = vld [vmem:[#allocation8 + $0x558] sm:$0xff] }
 0x19d   : > { %1369 = vmatprep.subr.mxu0 %v1044_v56  ;;  %v1524_v56 = vld [vmem:[#allocation10 + $0x168] sm:$0xff] }
 0x19e   : > { %1370 = vmatpush2.msra.mxu0 %v1043_v57  ;;  %v1087_v57 = vld [vmem:[#allocation8 + $0x550] sm:$0xff] }
 0x19f   : > { %1371 = vmatprep.subr.mxu0 %v1040_v58  ;;  %v1523_v58 = vld [vmem:[#allocation10 + $0x160] sm:$0xff] }
 0x1a0   : > { %1372 = vmatpush2.msra.mxu0 %v1039_v59  ;;  %v1084_v59 = vld [vmem:[#allocation8 + $0x538] sm:$0xff] }
 0x1a1   : > { %1373 = vmatprep.subr.mxu0 %v1036_v60  ;;  %v1520_v60 = vld [vmem:[#allocation10 + $0x148] sm:$0xff] }
 0x1a2   : > { %1374 = vmatpush2.msra.mxu0 %v1035_v61  ;;  %v1083_v61 = vld [vmem:[#allocation8 + $0x530] sm:$0xff] }
 0x1a3   : > { %1375 = vmatprep.subr.mxu0 %v1032_v62  ;;  %v1519_v62 = vld [vmem:[#allocation10 + $0x140] sm:$0xff] }
 0x1a4   : > { %1376 = vmatpush2.msra.mxu0 %v1031_v0  ;;  %v1080_v0 = vld [vmem:[#allocation8 + $0x518] sm:$0xff] }
 0x1a5   : > { %1377 = vmatprep.subr.mxu0 %v1028_v3  ;;  %v1516_v3 = vld [vmem:[#allocation10 + $0x128] sm:$0xff] }
 0x1a6   : > { %1378 = vmatpush2.msra.mxu0 %v1027_v4  ;;  %v1079_v4 = vld [vmem:[#allocation8 + $0x510] sm:$0xff] }
 0x1a7   : > { %1379 = vmatprep.subr.mxu0 %v1024_v6  ;;  %v1515_v6 = vld [vmem:[#allocation10 + $0x120] sm:$0xff] }
 0x1a8   : > { %1380 = vmatpush2.msra.mxu0 %v1023_v7  ;;  %v1076_v7 = vld [vmem:[#allocation8 + $0x4f8] sm:$0xff] }
 0x1a9   : > { %1381 = vmatprep.subr.mxu0 %v1020_v8  ;;  %v1512_v8 = vld [vmem:[#allocation10 + $0x108] sm:$0xff] }
 0x1aa   : > { %1382 = vmatpush2.msra.mxu0 %v1019_v9  ;;  %v1075_v9 = vld [vmem:[#allocation8 + $0x4f0] sm:$0xff] }
 0x1ab   : > { %1383 = vmatprep.subr.mxu0 %v1016_v10  ;;  %v1511_v10 = vld [vmem:[#allocation10 + $0x100] sm:$0xff] }
 0x1ac   : > { %1384 = vmatpush2.msra.mxu0 %v1015_v11  ;;  %v1072_v11 = vld [vmem:[#allocation8 + $0x4d8] sm:$0xff] }
 0x1ad   : > { %1385 = vmatprep.subr.mxu0 %v1012_v12  ;;  %v1508_v12 = vld [vmem:[#allocation10 + $0xe8] sm:$0xff] }
 0x1ae   : > { %1386 = vmatpush2.msra.mxu0 %v1011_v13  ;;  %v1071_v13 = vld [vmem:[#allocation8 + $0x4d0] sm:$0xff] }
 0x1af   : > { %1387 = vmatprep.subr.mxu0 %v1008_v14  ;;  %v1507_v14 = vld [vmem:[#allocation10 + $0xe0] sm:$0xff] }
 0x1b0   : > { %1388 = vmatpush2.msra.mxu0 %v1007_v19  ;;  %v1068_v19 = vld [vmem:[#allocation8 + $0x4b8] sm:$0xff] }
 0x1b1   : > { %1389 = vmatprep.subr.mxu0 %v1004_v63  ;;  %v1504_v63 = vld [vmem:[#allocation10 + $0xc8] sm:$0xff] }
 0x1b2   : > { %1390 = vmatpush2.msra.mxu0 %v1003_v20  ;;  %v1067_v20 = vld [vmem:[#allocation8 + $0x4b0] sm:$0xff] }
 0x1b3   : > { %1391 = vmatprep.subr.mxu0 %v1000_v2  ;;  %v1503_v2 = vld [vmem:[#allocation10 + $0xc0] sm:$0xff] }
 0x1b4   : > { %1392 = vmatpush2.msra.mxu0 %v999_v1  ;;  %v1064_v1 = vld [vmem:[#allocation8 + $0x498] sm:$0xff] }
 0x1b5   : > { %1393 = vmatprep.subr.mxu0 %v996_v5  ;;  %v1500_v5 = vld [vmem:[#allocation10 + $0xa8] sm:$0xff] }
 0x1b6   : > { %1394 = vmatpush2.msra.mxu0 %v995_v22  ;;  %v1063_v22 = vld [vmem:[#allocation8 + $0x490] sm:$0xff] }
 0x1b7   : > { %1395 = vmatprep.subr.mxu0 %v992_v25  ;;  %v841_v31 = vpop.f32.mrf.mxu0  ;;  %v1499_v25 = vld [vmem:[#allocation10 + $0xa0] sm:$0xff] }
 0x1b8   : > { %v912_v32 = vpop.f32.mrf.mxu1  ;;  %1396 = vmatpush2.msra.mxu0 %v991_v26  ;;  %v842_v34 = vadd.f32 %v841_v31, %v624_v27  ;;  %v1060_v26 = vld [vmem:[#allocation8 + $0x478] sm:$0xff]  ;;  %v1496_v27 = vld [vmem:[#allocation10 + $0x88] sm:$0xff] }
 0x1b9   : > { %1397 = vmatprep.subr.mxu0 %v988_v28  ;;  %v843_v35 = vpop.f32.mrf.mxu0  ;;  %v1059_v28 = vld [vmem:[#allocation8 + $0x470] sm:$0xff]  ;;  %v1492_v31 = vld [vmem:[#allocation10 + $0x68] sm:$0xff] }
 0x1ba   : > { %1398 = vmatpush2.msra.mxu0 %v987_v30  ;;  %v844_v36 = vadd.f32 %v843_v35, %v628_v29  ;;  %v914_v37 = vpop.f32.mrf.mxu1  ;;  %v2764_v39 = vadd.f32 %v912_v32, %v842_v34  ;;  %v1495_v29 = vld [vmem:[#allocation10 + $0x80] sm:$0xff]  ;;  %v1056_v30 = vld [vmem:[#allocation8 + $0x458] sm:$0xff]  ;;  %v1055_v32 = vld [vmem:[#allocation8 + $0x450] sm:$0xff] }
 0x1bb   : > { %1399 = vmatprep.subr.mxu0 %v984_v33  ;;  %v1491_v33 = vld [vmem:[#allocation10 + $0x60] sm:$0xff]  ;;  %v1488_v34 = vld [vmem:[#allocation10 + $0x48] sm:$0xff]  ;;  %v1051_v35 = vld [vmem:[#allocation8 + $0x430] sm:$0xff] }
 0x1bc   : > { %1400 = vmatpush2.msra.mxu0 %v983_v15  ;;  %v915_v38 = vadd.f32 %v914_v37, %v844_v36  ;;  %v1052_v15 = vld [vmem:[#allocation8 + $0x438] sm:$0xff]  ;;  %v1487_v36 = vld [vmem:[#allocation10 + $0x40] sm:$0xff] }
 0x1bd   : > { %1402 = vmatmul.mubr.f32.vlgmr.msra.gmra.mxu0 %v2750_v24  ;;  %1757 = vmatprep.subr.mxu0 %v1540_v42  ;;  %v1096_v24 = vld [vmem:[#allocation8 + $0x598] sm:$0xff]  ;;  %v1480_v42 = vld [vmem:[#allocation10 + $0x8] sm:$0xff] }
 0x1be   : > { %1330 = vmatprep.mubr.f32.mxu1 %v915_v38  ;;  %1758 = vmatpush1.msra.mxu0 %v1539_v43  ;;  %v1048_v37 = vld [vmem:[#allocation8 + $0x418] sm:$0xff]  ;;  %v1171_v43 = vld [vmem:[#allocation8 + $0x7f0] sm:$0xff] }
 0x1bf   : > { %1331 = vmatmul.mubr.f32.vlgmr.msra.gmra.mxu1 %v2764_v39  ;;  %1759 = vmatprep.subr.mxu0 %v1536_v45  ;;  %v1168_v45 = vld [vmem:[#allocation8 + $0x7d8] sm:$0xff] }
 0x1c0   : > { %1409 = vmatpush1.msra.mxu1 %v1107_v17  ;;  %1472 = vmatprep.mubr.f32.mxu1 %v915_v38  ;;  %v1484_v38 = vld [vmem:[#allocation10 + $0x28] sm:$0xff]  ;;  %v1047_v17 = vld [vmem:[#allocation8 + $0x410] sm:$0xff] }
 0x1c1   : > { %1410 = vmatprep.subr.mxu1 %v1104_v40  ;;  %1760 = vmatpush1.msra.mxu0 %v1535_v47  ;;  %v1483_v40 = vld [vmem:[#allocation10 + $0x20] sm:$0xff]  ;;  %v1167_v47 = vld [vmem:[#allocation8 + $0x7d0] sm:$0xff] }
 0x1c2   : > { %1411 = vmatpush1.msra.mxu1 %v1103_v41  ;;  %1761 = vmatprep.subr.mxu0 %v1532_v48  ;;  %v1172_v41 = vld [vmem:[#allocation8 + $0x7f8] sm:$0xff] }
 0x1c3   : > { %1412 = vmatprep.subr.mxu1 %v1100_v44  ;;  %1762 = vmatpush1.msra.mxu0 %v1531_v50  ;;  %v1479_v44 = vld [vmem:[#allocation10] sm:$0xff]  ;;  %v1164_v48 = vld [vmem:[#allocation8 + $0x7b8] sm:$0xff]  ;;  %v1163_v50 = vld [vmem:[#allocation8 + $0x7b0] sm:$0xff] }
 0x1c4   : > { %1413 = vmatpush1.msra.mxu1 %v1099_v46  ;;  %1763 = vmatprep.subr.mxu0 %v1528_v52  ;;  %v1604_v46 = vld [vmem:[#allocation10 + $0x3e8] sm:$0xff]  ;;  %v1160_v52 = vld [vmem:[#allocation8 + $0x798] sm:$0xff] }
 0x1c5   : > { %1414 = vmatprep.subr.mxu1 %v1096_v24  ;;  %1764 = vmatpush1.msra.mxu0 %v1527_v54  ;;  %v1603_v24 = vld [vmem:[#allocation10 + $0x3e0] sm:$0xff]  ;;  %v1159_v54 = vld [vmem:[#allocation8 + $0x790] sm:$0xff] }
 0x1c6   : > { %1415 = vmatpush1.msra.mxu1 %v1095_v49  ;;  %1765 = vmatprep.subr.mxu0 %v1524_v56  ;;  %v1600_v49 = vld [vmem:[#allocation10 + $0x3c8] sm:$0xff]  ;;  %v1156_v56 = vld [vmem:[#allocation8 + $0x778] sm:$0xff] }
 0x1c7   : > { %1416 = vmatprep.subr.mxu1 %v1092_v51  ;;  %1766 = vmatpush1.msra.mxu0 %v1523_v58  ;;  %v1599_v51 = vld [vmem:[#allocation10 + $0x3c0] sm:$0xff]  ;;  %v1155_v58 = vld [vmem:[#allocation8 + $0x770] sm:$0xff] }
 0x1c8   : > { %1417 = vmatpush1.msra.mxu1 %v1091_v53  ;;  %1767 = vmatprep.subr.mxu0 %v1520_v60  ;;  %v1596_v53 = vld [vmem:[#allocation10 + $0x3a8] sm:$0xff]  ;;  %v1152_v60 = vld [vmem:[#allocation8 + $0x758] sm:$0xff] }
 0x1c9   : > { %1418 = vmatprep.subr.mxu1 %v1088_v55  ;;  %1768 = vmatpush1.msra.mxu0 %v1519_v62  ;;  %v1595_v55 = vld [vmem:[#allocation10 + $0x3a0] sm:$0xff]  ;;  %v1151_v62 = vld [vmem:[#allocation8 + $0x750] sm:$0xff] }
 0x1ca   : > { %1419 = vmatpush1.msra.mxu1 %v1087_v57  ;;  %1769 = vmatprep.subr.mxu0 %v1516_v3  ;;  %v1592_v57 = vld [vmem:[#allocation10 + $0x388] sm:$0xff]  ;;  %v1148_v3 = vld [vmem:[#allocation8 + $0x738] sm:$0xff] }
 0x1cb   : > { %1420 = vmatprep.subr.mxu1 %v1084_v59  ;;  %1770 = vmatpush1.msra.mxu0 %v1515_v6  ;;  %v1591_v59 = vld [vmem:[#allocation10 + $0x380] sm:$0xff]  ;;  %v1147_v6 = vld [vmem:[#allocation8 + $0x730] sm:$0xff] }
 0x1cc   : > { %1421 = vmatpush1.msra.mxu1 %v1083_v61  ;;  %1771 = vmatprep.subr.mxu0 %v1512_v8  ;;  %v1588_v61 = vld [vmem:[#allocation10 + $0x368] sm:$0xff]  ;;  %v1144_v8 = vld [vmem:[#allocation8 + $0x718] sm:$0xff] }
 0x1cd   : > { %1422 = vmatprep.subr.mxu1 %v1080_v0  ;;  %1772 = vmatpush1.msra.mxu0 %v1511_v10  ;;  %v1587_v0 = vld [vmem:[#allocation10 + $0x360] sm:$0xff]  ;;  %v1143_v10 = vld [vmem:[#allocation8 + $0x710] sm:$0xff] }
 0x1ce   : > { %1423 = vmatpush1.msra.mxu1 %v1079_v4  ;;  %1773 = vmatprep.subr.mxu0 %v1508_v12  ;;  %v1584_v4 = vld [vmem:[#allocation10 + $0x348] sm:$0xff]  ;;  %v1140_v12 = vld [vmem:[#allocation8 + $0x6f8] sm:$0xff] }
 0x1cf   : > { %1424 = vmatprep.subr.mxu1 %v1076_v7  ;;  %1774 = vmatpush1.msra.mxu0 %v1507_v14  ;;  %v1583_v7 = vld [vmem:[#allocation10 + $0x340] sm:$0xff]  ;;  %v1139_v14 = vld [vmem:[#allocation8 + $0x6f0] sm:$0xff] }
 0x1d0   : > { %1425 = vmatpush1.msra.mxu1 %v1075_v9  ;;  %1775 = vmatprep.subr.mxu0 %v1504_v63  ;;  %v1580_v9 = vld [vmem:[#allocation10 + $0x328] sm:$0xff]  ;;  %v1136_v63 = vld [vmem:[#allocation8 + $0x6d8] sm:$0xff] }
 0x1d1   : > { %1426 = vmatprep.subr.mxu1 %v1072_v11  ;;  %1776 = vmatpush1.msra.mxu0 %v1503_v2  ;;  %v1579_v11 = vld [vmem:[#allocation10 + $0x320] sm:$0xff]  ;;  %v1135_v2 = vld [vmem:[#allocation8 + $0x6d0] sm:$0xff] }
 0x1d2   : > { %1427 = vmatpush1.msra.mxu1 %v1071_v13  ;;  %1777 = vmatprep.subr.mxu0 %v1500_v5  ;;  %v1576_v13 = vld [vmem:[#allocation10 + $0x308] sm:$0xff]  ;;  %v1132_v5 = vld [vmem:[#allocation8 + $0x6b8] sm:$0xff] }
 0x1d3   : > { %1428 = vmatprep.subr.mxu1 %v1068_v19  ;;  %1778 = vmatpush1.msra.mxu0 %v1499_v25  ;;  %v1575_v19 = vld [vmem:[#allocation10 + $0x300] sm:$0xff]  ;;  %v1131_v25 = vld [vmem:[#allocation8 + $0x6b0] sm:$0xff] }
 0x1d4   : > { %1429 = vmatpush1.msra.mxu1 %v1067_v20  ;;  %1779 = vmatprep.subr.mxu0 %v1496_v27  ;;  %v1572_v20 = vld [vmem:[#allocation10 + $0x2e8] sm:$0xff]  ;;  %v1128_v27 = vld [vmem:[#allocation8 + $0x698] sm:$0xff] }
 0x1d5   : > { %1430 = vmatprep.subr.mxu1 %v1064_v1  ;;  %1780 = vmatpush1.msra.mxu0 %v1495_v29  ;;  %v1571_v1 = vld [vmem:[#allocation10 + $0x2e0] sm:$0xff]  ;;  %v1127_v29 = vld [vmem:[#allocation8 + $0x690] sm:$0xff] }
 0x1d6   : > { %1431 = vmatpush1.msra.mxu1 %v1063_v22  ;;  %1781 = vmatprep.subr.mxu0 %v1492_v31  ;;  %v1568_v22 = vld [vmem:[#allocation10 + $0x2c8] sm:$0xff]  ;;  %v1124_v31 = vld [vmem:[#allocation8 + $0x678] sm:$0xff] }
 0x1d7   : > { %1432 = vmatprep.subr.mxu1 %v1060_v26  ;;  %1782 = vmatpush1.msra.mxu0 %v1491_v33  ;;  %v1567_v26 = vld [vmem:[#allocation10 + $0x2c0] sm:$0xff]  ;;  %v1123_v33 = vld [vmem:[#allocation8 + $0x670] sm:$0xff] }
 0x1d8   : > { %1433 = vmatpush1.msra.mxu1 %v1059_v28  ;;  %1783 = vmatprep.subr.mxu0 %v1488_v34  ;;  %v1564_v28 = vld [vmem:[#allocation10 + $0x2a8] sm:$0xff]  ;;  %v1120_v34 = vld [vmem:[#allocation8 + $0x658] sm:$0xff] }
 0x1d9   : > { %1434 = vmatprep.subr.mxu1 %v1056_v30  ;;  %1784 = vmatpush1.msra.mxu0 %v1487_v36  ;;  %v1563_v30 = vld [vmem:[#allocation10 + $0x2a0] sm:$0xff]  ;;  %v1119_v36 = vld [vmem:[#allocation8 + $0x650] sm:$0xff] }
 0x1da   : > { %1435 = vmatpush1.msra.mxu1 %v1055_v32  ;;  %1785 = vmatprep.subr.mxu0 %v1484_v38  ;;  %v1560_v32 = vld [vmem:[#allocation10 + $0x288] sm:$0xff]  ;;  %v1116_v38 = vld [vmem:[#allocation8 + $0x638] sm:$0xff] }
 0x1db   : > { %1436 = vmatprep.subr.mxu1 %v1052_v15  ;;  %1786 = vmatpush1.msra.mxu0 %v1483_v40  ;;  %v1559_v15 = vld [vmem:[#allocation10 + $0x280] sm:$0xff]  ;;  %v1112_v40 = vld [vmem:[#allocation8 + $0x618] sm:$0xff] }
 0x1dc   : > { %1437 = vmatpush1.msra.mxu1 %v1051_v35  ;;  %1787 = vmatprep.subr.mxu0 %v1480_v42  ;;  %v1556_v35 = vld [vmem:[#allocation10 + $0x268] sm:$0xff] }
 0x1dd   : > { %1438 = vmatprep.subr.mxu1 %v1048_v37  ;;  %1788 = vmatpush1.msra.mxu0 %v1479_v44  ;;  %v1555_v37 = vld [vmem:[#allocation10 + $0x260] sm:$0xff]  ;;  %v1552_v42 = vld [vmem:[#allocation10 + $0x248] sm:$0xff] }
 0x1de   : > { %1439 = vmatpush1.msra.mxu1 %v1047_v17  ;;  %1789 = vmatprep.subr.mxu0 %v1604_v46  ;;  %v1115_v17 = vld [vmem:[#allocation8 + $0x630] sm:$0xff]  ;;  %v1548_v44 = vld [vmem:[#allocation10 + $0x228] sm:$0xff] }
 0x1df   : > { %1440 = vmatprep.subr.mxu1 %v1172_v41  ;;  %1790 = vmatpush2.msra.mxu0 %v1603_v24  ;;  %v1111_v41 = vld [vmem:[#allocation8 + $0x610] sm:$0xff]  ;;  %v1544_v46 = vld [vmem:[#allocation10 + $0x208] sm:$0xff] }
 0x1e0   : > { %1441 = vmatpush2.msra.mxu1 %v1171_v43  ;;  %1791 = vmatprep.subr.mxu0 %v1600_v49  ;;  %v1551_v43 = vld [vmem:[#allocation10 + $0x240] sm:$0xff]  ;;  %v1668_v24 = vld [vmem:[#allocation10 + $0x5e8] sm:$0xff]  ;;  %v1542_v49 = vld [vmem:[#allocation10 + $0x1f8] sm:$0xff] }
 0x1e1   : > { %1442 = vmatprep.subr.mxu1 %v1168_v45  ;;  %1792 = vmatpush2.msra.mxu0 %v1599_v51  ;;  %v1547_v45 = vld [vmem:[#allocation10 + $0x220] sm:$0xff] }
 0x1e2   : > { %1443 = vmatpush2.msra.mxu1 %v1167_v47  ;;  %1793 = vmatprep.subr.mxu0 %v1596_v53  ;;  %v1543_v47 = vld [vmem:[#allocation10 + $0x200] sm:$0xff]  ;;  %v1656_v53 = vld [vmem:[#allocation10 + $0x588] sm:$0xff] }
 0x1e3   : > { %1444 = vmatprep.subr.mxu1 %v1164_v48  ;;  %1794 = vmatpush2.msra.mxu0 %v1595_v55  ;;  %v1667_v48 = vld [vmem:[#allocation10 + $0x5e0] sm:$0xff]  ;;  %v1652_v55 = vld [vmem:[#allocation10 + $0x568] sm:$0xff] }
 0x1e4   : > { %1445 = vmatpush2.msra.mxu1 %v1163_v50  ;;  %1795 = vmatprep.subr.mxu0 %v1592_v57  ;;  %v1664_v50 = vld [vmem:[#allocation10 + $0x5c8] sm:$0xff]  ;;  %v1663_v51 = vld [vmem:[#allocation10 + $0x5c0] sm:$0xff] }
 0x1e5   : > { %1446 = vmatprep.subr.mxu1 %v1160_v52  ;;  %1796 = vmatpush2.msra.mxu0 %v1591_v59  ;;  %v1659_v52 = vld [vmem:[#allocation10 + $0x5a0] sm:$0xff]  ;;  %v1648_v57 = vld [vmem:[#allocation10 + $0x548] sm:$0xff] }
 0x1e6   : > { %1447 = vmatpush2.msra.mxu1 %v1159_v54  ;;  %1797 = vmatprep.subr.mxu0 %v1588_v61  ;;  %v1655_v54 = vld [vmem:[#allocation10 + $0x580] sm:$0xff]  ;;  %v1644_v59 = vld [vmem:[#allocation10 + $0x528] sm:$0xff] }
 0x1e7   : > { %1448 = vmatprep.subr.mxu1 %v1156_v56  ;;  %1798 = vmatpush2.msra.mxu0 %v1587_v0  ;;  %v1651_v56 = vld [vmem:[#allocation10 + $0x560] sm:$0xff]  ;;  %v1640_v61 = vld [vmem:[#allocation10 + $0x508] sm:$0xff] }
 0x1e8   : > { %1449 = vmatpush2.msra.mxu1 %v1155_v58  ;;  %1799 = vmatprep.subr.mxu0 %v1584_v4  ;;  %v1647_v58 = vld [vmem:[#allocation10 + $0x540] sm:$0xff]  ;;  %v1636_v0 = vld [vmem:[#allocation10 + $0x4e8] sm:$0xff] }
 0x1e9   : > { %1450 = vmatprep.subr.mxu1 %v1152_v60  ;;  %1800 = vmatpush2.msra.mxu0 %v1583_v7  ;;  %v1643_v60 = vld [vmem:[#allocation10 + $0x520] sm:$0xff]  ;;  %v1632_v4 = vld [vmem:[#allocation10 + $0x4c8] sm:$0xff] }
 0x1ea   : > { %1451 = vmatpush2.msra.mxu1 %v1151_v62  ;;  %1801 = vmatprep.subr.mxu0 %v1580_v9  ;;  %v1639_v62 = vld [vmem:[#allocation10 + $0x500] sm:$0xff]  ;;  %v1628_v7 = vld [vmem:[#allocation10 + $0x4a8] sm:$0xff] }
 0x1eb   : > { %1452 = vmatprep.subr.mxu1 %v1148_v3  ;;  %1802 = vmatpush2.msra.mxu0 %v1579_v11  ;;  %v1635_v3 = vld [vmem:[#allocation10 + $0x4e0] sm:$0xff]  ;;  %v1624_v9 = vld [vmem:[#allocation10 + $0x488] sm:$0xff] }
 0x1ec   : > { %1453 = vmatpush2.msra.mxu1 %v1147_v6  ;;  %1803 = vmatprep.subr.mxu0 %v1576_v13  ;;  %v1631_v6 = vld [vmem:[#allocation10 + $0x4c0] sm:$0xff]  ;;  %v1620_v11 = vld [vmem:[#allocation10 + $0x468] sm:$0xff] }
 0x1ed   : > { %1454 = vmatprep.subr.mxu1 %v1144_v8  ;;  %1804 = vmatpush2.msra.mxu0 %v1575_v19  ;;  %v1627_v8 = vld [vmem:[#allocation10 + $0x4a0] sm:$0xff]  ;;  %v1616_v13 = vld [vmem:[#allocation10 + $0x448] sm:$0xff] }
 0x1ee   : > { %1455 = vmatpush2.msra.mxu1 %v1143_v10  ;;  %1805 = vmatprep.subr.mxu0 %v1572_v20  ;;  %v1623_v10 = vld [vmem:[#allocation10 + $0x480] sm:$0xff]  ;;  %v1612_v19 = vld [vmem:[#allocation10 + $0x428] sm:$0xff] }
 0x1ef   : > { %1456 = vmatprep.subr.mxu1 %v1140_v12  ;;  %1806 = vmatpush2.msra.mxu0 %v1571_v1  ;;  %v1619_v12 = vld [vmem:[#allocation10 + $0x460] sm:$0xff]  ;;  %v1608_v20 = vld [vmem:[#allocation10 + $0x408] sm:$0xff] }
 0x1f0   : > { %1457 = vmatpush2.msra.mxu1 %v1139_v14  ;;  %1807 = vmatprep.subr.mxu0 %v1568_v22  ;;  %v1615_v14 = vld [vmem:[#allocation10 + $0x440] sm:$0xff]  ;;  %v1732_v1 = vld [vmem:[#allocation10 + $0x7e8] sm:$0xff] }
 0x1f1   : > { %1458 = vmatprep.subr.mxu1 %v1136_v63  ;;  %1808 = vmatpush2.msra.mxu0 %v1567_v26  ;;  %v1611_v63 = vld [vmem:[#allocation10 + $0x420] sm:$0xff]  ;;  %v1728_v22 = vld [vmem:[#allocation10 + $0x7c8] sm:$0xff] }
 0x1f2   : > { %1459 = vmatpush2.msra.mxu1 %v1135_v2  ;;  %1809 = vmatprep.subr.mxu0 %v1564_v28  ;;  %v1607_v2 = vld [vmem:[#allocation10 + $0x400] sm:$0xff]  ;;  %v1724_v26 = vld [vmem:[#allocation10 + $0x7a8] sm:$0xff] }
 0x1f3   : > { %1460 = vmatprep.subr.mxu1 %v1132_v5  ;;  %1810 = vmatpush2.msra.mxu0 %v1563_v30  ;;  %v1731_v5 = vld [vmem:[#allocation10 + $0x7e0] sm:$0xff]  ;;  %v1720_v28 = vld [vmem:[#allocation10 + $0x788] sm:$0xff] }
 0x1f4   : > { %1461 = vmatpush2.msra.mxu1 %v1131_v25  ;;  %1811 = vmatprep.subr.mxu0 %v1560_v32  ;;  %v1727_v25 = vld [vmem:[#allocation10 + $0x7c0] sm:$0xff]  ;;  %v1716_v30 = vld [vmem:[#allocation10 + $0x768] sm:$0xff] }
 0x1f5   : > { %1462 = vmatprep.subr.mxu1 %v1128_v27  ;;  %1812 = vmatpush2.msra.mxu0 %v1559_v15  ;;  %v1723_v27 = vld [vmem:[#allocation10 + $0x7a0] sm:$0xff]  ;;  %v1712_v32 = vld [vmem:[#allocation10 + $0x748] sm:$0xff] }
 0x1f6   : > { %1463 = vmatpush2.msra.mxu1 %v1127_v29  ;;  %1813 = vmatprep.subr.mxu0 %v1556_v35  ;;  %v1719_v29 = vld [vmem:[#allocation10 + $0x780] sm:$0xff]  ;;  %v1708_v15 = vld [vmem:[#allocation10 + $0x728] sm:$0xff] }
 0x1f7   : > { %1464 = vmatprep.subr.mxu1 %v1124_v31  ;;  %1814 = vmatpush2.msra.mxu0 %v1555_v37  ;;  %v1715_v31 = vld [vmem:[#allocation10 + $0x760] sm:$0xff]  ;;  %v1704_v35 = vld [vmem:[#allocation10 + $0x708] sm:$0xff] }
 0x1f8   : > { %1465 = vmatpush2.msra.mxu1 %v1123_v33  ;;  %1815 = vmatprep.subr.mxu0 %v1552_v42  ;;  %v1711_v33 = vld [vmem:[#allocation10 + $0x740] sm:$0xff]  ;;  %v1700_v37 = vld [vmem:[#allocation10 + $0x6e8] sm:$0xff] }
 0x1f9   : > { %1466 = vmatprep.subr.mxu1 %v1120_v34  ;;  %1816 = vmatpush2.msra.mxu0 %v1551_v43  ;;  %v1707_v34 = vld [vmem:[#allocation10 + $0x720] sm:$0xff]  ;;  %v1688_v43 = vld [vmem:[#allocation10 + $0x688] sm:$0xff] }
 0x1fa   : > { %1467 = vmatpush2.msra.mxu1 %v1119_v36  ;;  %1817 = vmatprep.subr.mxu0 %v1548_v44  ;;  %v1703_v36 = vld [vmem:[#allocation10 + $0x700] sm:$0xff] }
 0x1fb   : > { %1468 = vmatprep.subr.mxu1 %v1116_v38  ;;  %1818 = vmatpush2.msra.mxu0 %v1547_v45  ;;  %v1699_v38 = vld [vmem:[#allocation10 + $0x6e0] sm:$0xff]  ;;  %v1684_v45 = vld [vmem:[#allocation10 + $0x668] sm:$0xff] }
 0x1fc   : > { %1469 = vmatpush2.msra.mxu1 %v1115_v17  ;;  %1819 = vmatprep.subr.mxu0 %v1544_v46  ;;  %v1696_v17 = vld [vmem:[#allocation10 + $0x6c8] sm:$0xff]  ;;  %v1691_v42 = vld [vmem:[#allocation10 + $0x6a0] sm:$0xff] }
 0x1fd   : > { %1470 = vmatprep.subr.mxu1 %v1112_v40  ;;  %1820 = vmatpush2.msra.mxu0 %v1543_v47  ;;  %v1695_v40 = vld [vmem:[#allocation10 + $0x6c0] sm:$0xff]  ;;  %v1680_v47 = vld [vmem:[#allocation10 + $0x648] sm:$0xff] }
 0x1fe   : > { %1471 = vmatpush2.msra.mxu1 %v1111_v41  ;;  %1899 = vmatprep.subr.mxu0 %v1542_v49  ;;  %v1692_v41 = vld [vmem:[#allocation10 + $0x6a8] sm:$0xff]  ;;  %v1687_v44 = vld [vmem:[#allocation10 + $0x680] sm:$0xff] }
 0x1ff   : > { %1473 = vmatmul.mubr.f32.vlgmr.msra.gmra.mxu1 %v2764_v39  ;;  %1828 = vmatprep.subr.mxu1 %v1668_v24  ;;  %v1660_v39 = vld [vmem:[#allocation10 + $0x5a8] sm:$0xff]  ;;  %v1683_v46 = vld [vmem:[#allocation10 + $0x660] sm:$0xff] }
 0x200   : > { %1829 = vmatpush1.msra.mxu1 %v1667_v48  ;;  %v1679_v24 = vld [vmem:[#allocation10 + $0x640] sm:$0xff]  ;;  %v1676_v48 = vld [vmem:[#allocation10 + $0x628] sm:$0xff] }
 0x201   : > { %1830 = vmatprep.subr.mxu1 %v1664_v50  ;;  %v1675_v49 = vld [vmem:[#allocation10 + $0x620] sm:$0xff]  ;;  %v1672_v50 = vld [vmem:[#allocation10 + $0x608] sm:$0xff] }
 0x202   : > { %1831 = vmatpush1.msra.mxu1 %v1663_v51  ;;  %v1671_v51 = vld [vmem:[#allocation10 + $0x600] sm:$0xff] }
 0x203   : > { %1832 = vmatprep.subr.mxu1 %v1660_v39  ;;  %v1670_v39 = vld [vmem:[#allocation10 + $0x5f8] sm:$0xff] }
 0x204   : > { %1833 = vmatpush1.msra.mxu1 %v1659_v52 }
 0x205   : > { %1834 = vmatprep.subr.mxu1 %v1656_v53  ;;  %v2771_v53 = vld [vmem:[%s2837_s4] sm:$0xf] }
 0x206   : > { %1835 = vmatpush1.msra.mxu1 %v1655_v54  ;;  %v1182_v54 = vrot.slane %v2771_v53, %v2744_v18 }
 0x207   : > { %1836 = vmatprep.subr.mxu1 %v1652_v55  ;;  %v1178_v55 = vrot.slane %v2771_v53, %v2739_v16 }
 0x208   : > { %1837 = vmatpush1.msra.mxu1 %v1651_v56 }
 0x209   : > { %1838 = vmatprep.subr.mxu1 %v1648_v57 }
 0x20a   : > { %1839 = vmatpush1.msra.mxu1 %v1647_v58 }
 0x20b   : > { %1840 = vmatprep.subr.mxu1 %v1644_v59 }
 0x20c   : > { %1841 = vmatpush1.msra.mxu1 %v1643_v60 }
 0x20d   : > { %1842 = vmatprep.subr.mxu1 %v1640_v61 }
 0x20e   : > { %1843 = vmatpush1.msra.mxu1 %v1639_v62 }
 0x20f   : > { %1844 = vmatprep.subr.mxu1 %v1636_v0  ;;  %v1541_v0 = vld [vmem:[#allocation10 + $0x1f0] sm:$0xff] }
 0x210   : > { %1845 = vmatpush1.msra.mxu1 %v1635_v3  ;;  %v1538_v3 = vld [vmem:[#allocation10 + $0x1d8] sm:$0xff] }
 0x211   : > { %1846 = vmatprep.subr.mxu1 %v1632_v4  ;;  %v1537_v4 = vld [vmem:[#allocation10 + $0x1d0] sm:$0xff] }
 0x212   : > { %1847 = vmatpush1.msra.mxu1 %v1631_v6  ;;  %v1534_v6 = vld [vmem:[#allocation10 + $0x1b8] sm:$0xff] }
 0x213   : > { %1848 = vmatprep.subr.mxu1 %v1628_v7  ;;  %v1533_v7 = vld [vmem:[#allocation10 + $0x1b0] sm:$0xff] }
 0x214   : > { %1849 = vmatpush1.msra.mxu1 %v1627_v8  ;;  %v1530_v8 = vld [vmem:[#allocation10 + $0x198] sm:$0xff] }
 0x215   : > { %1850 = vmatprep.subr.mxu1 %v1624_v9  ;;  %v1529_v9 = vld [vmem:[#allocation10 + $0x190] sm:$0xff] }
 0x216   : > { %1851 = vmatpush1.msra.mxu1 %v1623_v10  ;;  %v1526_v10 = vld [vmem:[#allocation10 + $0x178] sm:$0xff] }
 0x217   : > { %1852 = vmatprep.subr.mxu1 %v1620_v11  ;;  %v1525_v11 = vld [vmem:[#allocation10 + $0x170] sm:$0xff] }
 0x218   : > { %1853 = vmatpush1.msra.mxu1 %v1619_v12  ;;  %v1522_v12 = vld [vmem:[#allocation10 + $0x158] sm:$0xff] }
 0x219   : > { %1854 = vmatprep.subr.mxu1 %v1616_v13  ;;  %v1521_v13 = vld [vmem:[#allocation10 + $0x150] sm:$0xff] }
 0x21a   : > { %1855 = vmatpush1.msra.mxu1 %v1615_v14  ;;  %v1518_v14 = vld [vmem:[#allocation10 + $0x138] sm:$0xff] }
 0x21b   : > { %1856 = vmatprep.subr.mxu1 %v1612_v19  ;;  %v1517_v19 = vld [vmem:[#allocation10 + $0x130] sm:$0xff] }
 0x21c   : > { %1857 = vmatpush1.msra.mxu1 %v1611_v63  ;;  %v1514_v63 = vld [vmem:[#allocation10 + $0x118] sm:$0xff] }
 0x21d   : > { %1858 = vmatprep.subr.mxu1 %v1608_v20  ;;  %v1513_v20 = vld [vmem:[#allocation10 + $0x110] sm:$0xff] }
 0x21e   : > { %1859 = vmatpush1.msra.mxu1 %v1607_v2  ;;  %v1510_v2 = vld [vmem:[#allocation10 + $0xf8] sm:$0xff] }
 0x21f   : > { %1860 = vmatprep.subr.mxu1 %v1732_v1  ;;  %v1509_v1 = vld [vmem:[#allocation10 + $0xf0] sm:$0xff] }
 0x220   : > { %1861 = vmatpush2.msra.mxu1 %v1731_v5  ;;  %v1506_v5 = vld [vmem:[#allocation10 + $0xd8] sm:$0xff] }
 0x221   : > { %1862 = vmatprep.subr.mxu1 %v1728_v22  ;;  %v1505_v22 = vld [vmem:[#allocation10 + $0xd0] sm:$0xff] }
 0x222   : > { %1863 = vmatpush2.msra.mxu1 %v1727_v25  ;;  %v1502_v25 = vld [vmem:[#allocation10 + $0xb8] sm:$0xff] }
 0x223   : > { %1864 = vmatprep.subr.mxu1 %v1724_v26  ;;  %v1501_v26 = vld [vmem:[#allocation10 + $0xb0] sm:$0xff] }
 0x224   : > { %1865 = vmatpush2.msra.mxu1 %v1723_v27  ;;  %v1498_v27 = vld [vmem:[#allocation10 + $0x98] sm:$0xff] }
 0x225   : > { %1866 = vmatprep.subr.mxu1 %v1720_v28  ;;  %v1497_v28 = vld [vmem:[#allocation10 + $0x90] sm:$0xff] }
 0x226   : > { %1867 = vmatpush2.msra.mxu1 %v1719_v29  ;;  %v1494_v29 = vld [vmem:[#allocation10 + $0x78] sm:$0xff] }
 0x227   : > { %1868 = vmatprep.subr.mxu1 %v1716_v30  ;;  %v1493_v30 = vld [vmem:[#allocation10 + $0x70] sm:$0xff] }
 0x228   : > { %1869 = vmatpush2.msra.mxu1 %v1715_v31  ;;  %v1490_v31 = vld [vmem:[#allocation10 + $0x58] sm:$0xff] }
 0x229   : > { %1870 = vmatprep.subr.mxu1 %v1712_v32  ;;  %v1489_v32 = vld [vmem:[#allocation10 + $0x50] sm:$0xff] }
 0x22a   : > { %1871 = vmatpush2.msra.mxu1 %v1711_v33  ;;  %v1486_v33 = vld [vmem:[#allocation10 + $0x38] sm:$0xff] }
 0x22b   : > { %1872 = vmatprep.subr.mxu1 %v1708_v15  ;;  %v1485_v15 = vld [vmem:[#allocation10 + $0x30] sm:$0xff] }
 0x22c   : > { %1873 = vmatpush2.msra.mxu1 %v1707_v34  ;;  %v1482_v34 = vld [vmem:[#allocation10 + $0x18] sm:$0xff] }
 0x22d   : > { %1874 = vmatprep.subr.mxu1 %v1704_v35  ;;  %v1481_v35 = vld [vmem:[#allocation10 + $0x10] sm:$0xff] }
 0x22e   : > { %1875 = vmatpush2.msra.mxu1 %v1703_v36  ;;  %v1606_v36 = vld [vmem:[#allocation10 + $0x3f8] sm:$0xff] }
 0x22f   : > { %1876 = vmatprep.subr.mxu1 %v1700_v37  ;;  %v1605_v37 = vld [vmem:[#allocation10 + $0x3f0] sm:$0xff] }
 0x230   : > { %1877 = vmatpush2.msra.mxu1 %v1699_v38  ;;  %v1602_v38 = vld [vmem:[#allocation10 + $0x3d8] sm:$0xff] }
 0x231   : > { %1878 = vmatprep.subr.mxu1 %v1696_v17  ;;  %v1601_v17 = vld [vmem:[#allocation10 + $0x3d0] sm:$0xff] }
 0x232   : > { %1879 = vmatpush2.msra.mxu1 %v1695_v40  ;;  %v1598_v40 = vld [vmem:[#allocation10 + $0x3b8] sm:$0xff] }
 0x233   : > { %1880 = vmatprep.subr.mxu1 %v1692_v41  ;;  %v1597_v41 = vld [vmem:[#allocation10 + $0x3b0] sm:$0xff] }
 0x234   : > { %1881 = vmatpush2.msra.mxu1 %v1691_v42  ;;  %v1594_v42 = vld [vmem:[#allocation10 + $0x398] sm:$0xff] }
 0x235   : > { %1882 = vmatprep.subr.mxu1 %v1688_v43  ;;  %v1593_v43 = vld [vmem:[#allocation10 + $0x390] sm:$0xff] }
 0x236   : > { %1883 = vmatpush2.msra.mxu1 %v1687_v44  ;;  %v1590_v44 = vld [vmem:[#allocation10 + $0x378] sm:$0xff] }
 0x237   : > { %1884 = vmatprep.subr.mxu1 %v1684_v45  ;;  %v1589_v45 = vld [vmem:[#allocation10 + $0x370] sm:$0xff] }
 0x238   : > { %1885 = vmatpush2.msra.mxu1 %v1683_v46  ;;  %v1586_v46 = vld [vmem:[#allocation10 + $0x358] sm:$0xff] }
 0x239   : > { %1886 = vmatprep.subr.mxu1 %v1680_v47  ;;  %v1585_v47 = vld [vmem:[#allocation10 + $0x350] sm:$0xff] }
 0x23a   : > { %1887 = vmatpush2.msra.mxu1 %v1679_v24  ;;  %v1582_v24 = vld [vmem:[#allocation10 + $0x338] sm:$0xff] }
 0x23b   : > { %1888 = vmatprep.subr.mxu1 %v1676_v48  ;;  %v1581_v48 = vld [vmem:[#allocation10 + $0x330] sm:$0xff] }
 0x23c   : > { %1889 = vmatpush2.msra.mxu1 %v1675_v49  ;;  %v1578_v49 = vld [vmem:[#allocation10 + $0x318] sm:$0xff] }
 0x23d   : > { %1890 = vmatprep.subr.mxu1 %v1672_v50  ;;  %v1261_v52 = vpop.f32.mrf.mxu0  ;;  %v1577_v50 = vld [vmem:[#allocation10 + $0x310] sm:$0xff] }
 0x23e   : > { %1891 = vmatpush2.msra.mxu1 %v1671_v51  ;;  %v1262_v59 = vadd.f32 %v1261_v52, %v1178_v55  ;;  %v1574_v51 = vld [vmem:[#allocation10 + $0x2f8] sm:$0xff] }
 0x23f   : > { %1970 = vmatprep.subr.mxu1 %v1670_v39  ;;  %v1263_v56 = vpop.f32.mrf.mxu0  ;;  %v1573_v39 = vld [vmem:[#allocation10 + $0x2f0] sm:$0xff]  ;;  %v1570_v52 = vld [vmem:[#allocation10 + $0x2d8] sm:$0xff] }
 0x240   : > { %v1264_v58 = vadd.f32 %v1263_v56, %v1182_v54  ;;  %v1569_v54 = vld [vmem:[#allocation10 + $0x2d0] sm:$0xff]  ;;  %v1566_v55 = vld [vmem:[#allocation10 + $0x2b8] sm:$0xff] }
 0x241   : > { %v1565_v56 = vld [vmem:[#allocation10 + $0x2b0] sm:$0xff] }
 0x27f   : > { %v1332_v57 = vpop.f32.mrf.mxu1 }
 0x280   : > { %v2777_v62 = vadd.f32 %v1332_v57, %v1262_v59  ;;  %v1562_v57 = vld [vmem:[#allocation10 + $0x298] sm:$0xff]  ;;  %v1561_v59 = vld [vmem:[#allocation10 + $0x290] sm:$0xff] }
 0x281   : > { %v1334_v60 = vpop.f32.mrf.mxu1 }
 0x282   : > { %v1335_v61 = vadd.f32 %v1334_v60, %v1264_v58  ;;  %v1403_v58 = vpop.f32.mrf.mxu0  ;;  %v1558_v60 = vld [vmem:[#allocation10 + $0x278] sm:$0xff] }
 0x284   : > { %1821 = vmatprep.mubr.f32.mxu0 %v1335_v61 }
 0x285   : > { %1822 = vmatmul.mubr.f32.vlgmr.msra.gmra.mxu0 %v2777_v62 }
 0x286   : > { %1900 = vmatpush1.msra.mxu0 %v1541_v0  ;;  %1963 = vmatprep.mubr.f32.mxu0 %v1335_v61  ;;  %v1557_v61 = vld [vmem:[#allocation10 + $0x270] sm:$0xff]  ;;  %v1190_v0 = vrot.slane %v2771_v53, %v2757_v23 }
 0x287   : > { %1901 = vmatprep.subr.mxu0 %v1538_v3  ;;  %v1554_v3 = vld [vmem:[#allocation10 + $0x258] sm:$0xff] }
 0x288   : > { %1902 = vmatpush1.msra.mxu0 %v1537_v4  ;;  %v1186_v4 = vrot.slane %v2771_v53, %v2754_v21  ;;  %v1669_v53 = vld [vmem:[#allocation10 + $0x5f0] sm:$0xff] }
 0x289   : > { %1903 = vmatprep.subr.mxu0 %v1534_v6  ;;  %v1405_v6 = vpop.f32.mrf.mxu0 }
 0x28a   : > { %1904 = vmatpush1.msra.mxu0 %v1533_v7  ;;  %v1553_v7 = vld [vmem:[#allocation10 + $0x250] sm:$0xff] }
 0x28b   : > { %1905 = vmatprep.subr.mxu0 %v1530_v8  ;;  %v1550_v8 = vld [vmem:[#allocation10 + $0x238] sm:$0xff] }
 0x28c   : > { %1906 = vmatpush1.msra.mxu0 %v1529_v9 }
 0x28d   : > { %1907 = vmatprep.subr.mxu0 %v1526_v10  ;;  %v1549_v10 = vld [vmem:[#allocation10 + $0x230] sm:$0xff] }
 0x28e   : > { %1908 = vmatpush1.msra.mxu0 %v1525_v11  ;;  %v1406_v11 = vadd.f32 %v1405_v6, %v1190_v0  ;;  %v1706_v0 = vld [vmem:[#allocation10 + $0x718] sm:$0xff]  ;;  %v1701_v6 = vld [vmem:[#allocation10 + $0x6f0] sm:$0xff] }
 0x28f   : > { %1909 = vmatprep.subr.mxu0 %v1522_v12  ;;  %v1546_v12 = vld [vmem:[#allocation10 + $0x218] sm:$0xff] }
 0x290   : > { %1910 = vmatpush1.msra.mxu0 %v1521_v13  ;;  %v1404_v13 = vadd.f32 %v1403_v58, %v1186_v4  ;;  %v1714_v58 = vld [vmem:[#allocation10 + $0x758] sm:$0xff] }
 0x291   : > { %1911 = vmatprep.subr.mxu0 %v1518_v14  ;;  %v1702_v4 = vld [vmem:[#allocation10 + $0x6f8] sm:$0xff] }
 0x292   : > { %1912 = vmatpush1.msra.mxu0 %v1517_v19  ;;  %v1545_v19 = vld [vmem:[#allocation10 + $0x210] sm:$0xff] }
 0x293   : > { %1913 = vmatprep.subr.mxu0 %v1514_v63 }
 0x294   : > { %1914 = vmatpush1.msra.mxu0 %v1513_v20 }
 0x295   : > { %1915 = vmatprep.subr.mxu0 %v1510_v2  ;;  %v1666_v2 = vld [vmem:[#allocation10 + $0x5d8] sm:$0xff] }
 0x296   : > { %1916 = vmatpush1.msra.mxu0 %v1509_v1  ;;  %v1665_v1 = vld [vmem:[#allocation10 + $0x5d0] sm:$0xff] }
 0x297   : > { %1917 = vmatprep.subr.mxu0 %v1506_v5  ;;  %v1662_v5 = vld [vmem:[#allocation10 + $0x5b8] sm:$0xff] }
 0x298   : > { %1918 = vmatpush1.msra.mxu0 %v1505_v22  ;;  %v1661_v22 = vld [vmem:[#allocation10 + $0x5b0] sm:$0xff] }
 0x299   : > { %1919 = vmatprep.subr.mxu0 %v1502_v25  ;;  %v1658_v25 = vld [vmem:[#allocation10 + $0x598] sm:$0xff] }
 0x29a   : > { %1920 = vmatpush1.msra.mxu0 %v1501_v26  ;;  %v1657_v26 = vld [vmem:[#allocation10 + $0x590] sm:$0xff] }
 0x29b   : > { %1921 = vmatprep.subr.mxu0 %v1498_v27  ;;  %v1654_v27 = vld [vmem:[#allocation10 + $0x578] sm:$0xff] }
 0x29c   : > { %1922 = vmatpush1.msra.mxu0 %v1497_v28  ;;  %v1653_v28 = vld [vmem:[#allocation10 + $0x570] sm:$0xff] }
 0x29d   : > { %1923 = vmatprep.subr.mxu0 %v1494_v29  ;;  %v1650_v29 = vld [vmem:[#allocation10 + $0x558] sm:$0xff] }
 0x29e   : > { %1924 = vmatpush1.msra.mxu0 %v1493_v30  ;;  %v1649_v30 = vld [vmem:[#allocation10 + $0x550] sm:$0xff] }
 0x29f   : > { %1925 = vmatprep.subr.mxu0 %v1490_v31  ;;  %v1645_v31 = vld [vmem:[#allocation10 + $0x530] sm:$0xff] }
 0x2a0   : > { %1926 = vmatpush1.msra.mxu0 %v1489_v32  ;;  %v1642_v32 = vld [vmem:[#allocation10 + $0x518] sm:$0xff] }
 0x2a1   : > { %1927 = vmatprep.subr.mxu0 %v1486_v33  ;;  %v1641_v33 = vld [vmem:[#allocation10 + $0x510] sm:$0xff] }
 0x2a2   : > { %1928 = vmatpush1.msra.mxu0 %v1485_v15  ;;  %v1638_v15 = vld [vmem:[#allocation10 + $0x4f8] sm:$0xff] }
 0x2a3   : > { %1929 = vmatprep.subr.mxu0 %v1482_v34  ;;  %v1637_v34 = vld [vmem:[#allocation10 + $0x4f0] sm:$0xff] }
 0x2a4   : > { %1930 = vmatpush1.msra.mxu0 %v1481_v35  ;;  %v1634_v35 = vld [vmem:[#allocation10 + $0x4d8] sm:$0xff] }
 0x2a5   : > { %1931 = vmatprep.subr.mxu0 %v1606_v36  ;;  %v1633_v36 = vld [vmem:[#allocation10 + $0x4d0] sm:$0xff] }
 0x2a6   : > { %1932 = vmatpush2.msra.mxu0 %v1605_v37  ;;  %v1630_v37 = vld [vmem:[#allocation10 + $0x4b8] sm:$0xff] }
 0x2a7   : > { %1933 = vmatprep.subr.mxu0 %v1602_v38  ;;  %v1629_v38 = vld [vmem:[#allocation10 + $0x4b0] sm:$0xff] }
 0x2a8   : > { %1934 = vmatpush2.msra.mxu0 %v1601_v17  ;;  %v1626_v17 = vld [vmem:[#allocation10 + $0x498] sm:$0xff] }
 0x2a9   : > { %1935 = vmatprep.subr.mxu0 %v1598_v40  ;;  %v1625_v40 = vld [vmem:[#allocation10 + $0x490] sm:$0xff] }
 0x2aa   : > { %1936 = vmatpush2.msra.mxu0 %v1597_v41  ;;  %v1622_v41 = vld [vmem:[#allocation10 + $0x478] sm:$0xff] }
 0x2ab   : > { %1937 = vmatprep.subr.mxu0 %v1594_v42  ;;  %v1621_v42 = vld [vmem:[#allocation10 + $0x470] sm:$0xff] }
 0x2ac   : > { %1938 = vmatpush2.msra.mxu0 %v1593_v43  ;;  %v1618_v43 = vld [vmem:[#allocation10 + $0x458] sm:$0xff] }
 0x2ad   : > { %1939 = vmatprep.subr.mxu0 %v1590_v44  ;;  %v1617_v44 = vld [vmem:[#allocation10 + $0x450] sm:$0xff] }
 0x2ae   : > { %1940 = vmatpush2.msra.mxu0 %v1589_v45  ;;  %v1614_v45 = vld [vmem:[#allocation10 + $0x438] sm:$0xff] }
 0x2af   : > { %1941 = vmatprep.subr.mxu0 %v1586_v46  ;;  %v1613_v46 = vld [vmem:[#allocation10 + $0x430] sm:$0xff] }
 0x2b0   : > { %1942 = vmatpush2.msra.mxu0 %v1585_v47  ;;  %v1610_v47 = vld [vmem:[#allocation10 + $0x418] sm:$0xff] }
 0x2b1   : > { %1943 = vmatprep.subr.mxu0 %v1582_v24  ;;  %v1609_v24 = vld [vmem:[#allocation10 + $0x410] sm:$0xff] }
 0x2b2   : > { %1944 = vmatpush2.msra.mxu0 %v1581_v48  ;;  %v1734_v48 = vld [vmem:[#allocation10 + $0x7f8] sm:$0xff] }
 0x2b3   : > { %1945 = vmatprep.subr.mxu0 %v1578_v49  ;;  %v1733_v49 = vld [vmem:[#allocation10 + $0x7f0] sm:$0xff] }
 0x2b4   : > { %1946 = vmatpush2.msra.mxu0 %v1577_v50  ;;  %v1730_v50 = vld [vmem:[#allocation10 + $0x7d8] sm:$0xff] }
 0x2b5   : > { %1947 = vmatprep.subr.mxu0 %v1574_v51  ;;  %v1729_v51 = vld [vmem:[#allocation10 + $0x7d0] sm:$0xff] }
 0x2b6   : > { %1948 = vmatpush2.msra.mxu0 %v1573_v39  ;;  %v1726_v39 = vld [vmem:[#allocation10 + $0x7b8] sm:$0xff] }
 0x2b7   : > { %1949 = vmatprep.subr.mxu0 %v1570_v52  ;;  %v1725_v52 = vld [vmem:[#allocation10 + $0x7b0] sm:$0xff] }
 0x2b8   : > { %1950 = vmatpush2.msra.mxu0 %v1569_v54  ;;  %v1722_v54 = vld [vmem:[#allocation10 + $0x798] sm:$0xff] }
 0x2b9   : > { %1951 = vmatprep.subr.mxu0 %v1566_v55  ;;  %v1721_v55 = vld [vmem:[#allocation10 + $0x790] sm:$0xff] }
 0x2ba   : > { %1952 = vmatpush2.msra.mxu0 %v1565_v56  ;;  %v1718_v56 = vld [vmem:[#allocation10 + $0x778] sm:$0xff] }
 0x2bb   : > { %1953 = vmatprep.subr.mxu0 %v1562_v57  ;;  %v1717_v57 = vld [vmem:[#allocation10 + $0x770] sm:$0xff] }
 0x2bc   : > { %1954 = vmatpush2.msra.mxu0 %v1561_v59  ;;  %v1713_v59 = vld [vmem:[#allocation10 + $0x750] sm:$0xff] }
 0x2bd   : > { %1955 = vmatprep.subr.mxu0 %v1558_v60  ;;  %v1710_v60 = vld [vmem:[#allocation10 + $0x738] sm:$0xff] }
 0x2be   : > { %1956 = vmatpush2.msra.mxu0 %v1557_v61  ;;  %v1709_v61 = vld [vmem:[#allocation10 + $0x730] sm:$0xff] }
 0x2bf   : > { %v1474_v9 = vpop.f32.mrf.mxu1  ;;  %1957 = vmatprep.subr.mxu0 %v1554_v3  ;;  %v1705_v3 = vld [vmem:[#allocation10 + $0x710] sm:$0xff] }
 0x2c0   : > { %1958 = vmatpush2.msra.mxu0 %v1553_v7  ;;  %v2784_v20 = vadd.f32 %v1474_v9, %v1404_v13  ;;  %v1698_v7 = vld [vmem:[#allocation10 + $0x6d8] sm:$0xff] }
 0x2c1   : > { %v1476_v14 = vpop.f32.mrf.mxu1  ;;  %1959 = vmatprep.subr.mxu0 %v1550_v8  ;;  %v1697_v8 = vld [vmem:[#allocation10 + $0x6d0] sm:$0xff]  ;;  %v1694_v9 = vld [vmem:[#allocation10 + $0x6b8] sm:$0xff] }
 0x2c2   : > { %v1477_v63 = vadd.f32 %v1476_v14, %v1406_v11  ;;  %1960 = vmatpush2.msra.mxu0 %v1549_v10  ;;  %v1693_v10 = vld [vmem:[#allocation10 + $0x6b0] sm:$0xff]  ;;  %v1690_v11 = vld [vmem:[#allocation10 + $0x698] sm:$0xff] }
 0x2c3   : > { %1961 = vmatprep.subr.mxu0 %v1546_v12  ;;  %v1689_v12 = vld [vmem:[#allocation10 + $0x690] sm:$0xff]  ;;  %v1686_v13 = vld [vmem:[#allocation10 + $0x678] sm:$0xff] }
 0x2c4   : > { %1892 = vmatprep.mubr.f32.mxu1 %v1477_v63  ;;  %1962 = vmatpush2.msra.mxu0 %v1545_v19  ;;  %v1685_v14 = vld [vmem:[#allocation10 + $0x670] sm:$0xff]  ;;  %v1682_v19 = vld [vmem:[#allocation10 + $0x658] sm:$0xff] }
 0x2c5   : > { %1893 = vmatmul.mubr.f32.vlgmr.msra.gmra.mxu1 %v2784_v20  ;;  %1964 = vmatmul.mubr.f32.vlgmr.msra.gmra.mxu0 %v2777_v62  ;;  %v1646_v62 = vld [vmem:[#allocation10 + $0x538] sm:$0xff] }
 0x2c6   : > { %1971 = vmatpush1.msra.mxu1 %v1669_v53  ;;  %2034 = vmatprep.mubr.f32.mxu1 %v1477_v63  ;;  %v1681_v63 = vld [vmem:[#allocation10 + $0x650] sm:$0xff]  ;;  %v1678_v53 = vld [vmem:[#allocation10 + $0x638] sm:$0xff] }
 0x2c7   : > { %1972 = vmatprep.subr.mxu1 %v1666_v2  ;;  %v1677_v2 = vld [vmem:[#allocation10 + $0x630] sm:$0xff] }
 0x2c8   : > { %1973 = vmatpush1.msra.mxu1 %v1665_v1  ;;  %v1674_v1 = vld [vmem:[#allocation10 + $0x618] sm:$0xff] }
 0x2c9   : > { %1974 = vmatprep.subr.mxu1 %v1662_v5  ;;  %v1673_v5 = vld [vmem:[#allocation10 + $0x610] sm:$0xff] }
 0x2ca   : > { %1975 = vmatpush1.msra.mxu1 %v1661_v22  ;;  %v1735_v22 = vld [vmem:[%s2839_s6] sm:$0xf] }
 0x2cb   : > { %1976 = vmatprep.subr.mxu1 %v1658_v25 }
 0x2cc   : > { %1977 = vmatpush1.msra.mxu1 %v1657_v26  ;;  %v1740_v26 = vrot.slane %v1735_v22, %v2739_v16  ;;  %v1752_v16 = vrot.slane %v1735_v22, %v2757_v23 }
 0x2cd   : > { %1978 = vmatprep.subr.mxu1 %v1654_v27  ;;  %v1744_v27 = vrot.slane %v1735_v22, %v2744_v18 }
 0x2ce   : > { %1979 = vmatpush1.msra.mxu1 %v1653_v28 }
 0x2cf   : > { %1980 = vmatprep.subr.mxu1 %v1650_v29 }
 0x2d0   : > { %1981 = vmatpush1.msra.mxu1 %v1649_v30 }
 0x2d1   : > { %1982 = vmatprep.subr.mxu1 %v1646_v62 }
 0x2d2   : > { %1983 = vmatpush1.msra.mxu1 %v1645_v31 }
 0x2d3   : > { %1984 = vmatprep.subr.mxu1 %v1642_v32 }
 0x2d4   : > { %1985 = vmatpush1.msra.mxu1 %v1641_v33 }
 0x2d5   : > { %1986 = vmatprep.subr.mxu1 %v1638_v15  ;;  %v1748_v15 = vrot.slane %v1735_v22, %v2754_v21 }
 0x2d6   : > { %1987 = vmatpush1.msra.mxu1 %v1637_v34 }
 0x2d7   : > { %1988 = vmatprep.subr.mxu1 %v1634_v35 }
 0x2d8   : > { %1989 = vmatpush1.msra.mxu1 %v1633_v36 }
 0x2d9   : > { %1990 = vmatprep.subr.mxu1 %v1630_v37 }
 0x2da   : > { %1991 = vmatpush1.msra.mxu1 %v1629_v38 }
 0x2db   : > { %1992 = vmatprep.subr.mxu1 %v1626_v17 }
 0x2dc   : > { %1993 = vmatpush1.msra.mxu1 %v1625_v40 }
 0x2dd   : > { %1994 = vmatprep.subr.mxu1 %v1622_v41 }
 0x2de   : > { %1995 = vmatpush1.msra.mxu1 %v1621_v42 }
 0x2df   : > { %1996 = vmatprep.subr.mxu1 %v1618_v43 }
 0x2e0   : > { %1997 = vmatpush1.msra.mxu1 %v1617_v44 }
 0x2e1   : > { %1998 = vmatprep.subr.mxu1 %v1614_v45 }
 0x2e2   : > { %1999 = vmatpush1.msra.mxu1 %v1613_v46 }
 0x2e3   : > { %2000 = vmatprep.subr.mxu1 %v1610_v47 }
 0x2e4   : > { %2001 = vmatpush1.msra.mxu1 %v1609_v24 }
 0x2e5   : > { %2002 = vmatprep.subr.mxu1 %v1734_v48 }
 0x2e6   : > { %2003 = vmatpush2.msra.mxu1 %v1733_v49 }
 0x2e7   : > { %2004 = vmatprep.subr.mxu1 %v1730_v50 }
 0x2e8   : > { %2005 = vmatpush2.msra.mxu1 %v1729_v51 }
 0x2e9   : > { %2006 = vmatprep.subr.mxu1 %v1726_v39 }
 0x2ea   : > { %2007 = vmatpush2.msra.mxu1 %v1725_v52 }
 0x2eb   : > { %2008 = vmatprep.subr.mxu1 %v1722_v54 }
 0x2ec   : > { %2009 = vmatpush2.msra.mxu1 %v1721_v55 }
 0x2ed   : > { %2010 = vmatprep.subr.mxu1 %v1718_v56 }
 0x2ee   : > { %2011 = vmatpush2.msra.mxu1 %v1717_v57 }
 0x2ef   : > { %2012 = vmatprep.subr.mxu1 %v1714_v58 }
 0x2f0   : > { %2013 = vmatpush2.msra.mxu1 %v1713_v59 }
 0x2f1   : > { %2014 = vmatprep.subr.mxu1 %v1710_v60 }
 0x2f2   : > { %2015 = vmatpush2.msra.mxu1 %v1709_v61 }
 0x2f3   : > { %2016 = vmatprep.subr.mxu1 %v1706_v0 }
 0x2f4   : > { %2017 = vmatpush2.msra.mxu1 %v1705_v3 }
 0x2f5   : > { %2018 = vmatprep.subr.mxu1 %v1702_v4 }
 0x2f6   : > { %2019 = vmatpush2.msra.mxu1 %v1701_v6 }
 0x2f7   : > { %2020 = vmatprep.subr.mxu1 %v1698_v7 }
 0x2f8   : > { %2021 = vmatpush2.msra.mxu1 %v1697_v8 }
 0x2f9   : > { %2022 = vmatprep.subr.mxu1 %v1694_v9 }
 0x2fa   : > { %2023 = vmatpush2.msra.mxu1 %v1693_v10 }
 0x2fb   : > { %2024 = vmatprep.subr.mxu1 %v1690_v11 }
 0x2fc   : > { %2025 = vmatpush2.msra.mxu1 %v1689_v12 }
 0x2fd   : > { %2026 = vmatprep.subr.mxu1 %v1686_v13 }
 0x2fe   : > { %2027 = vmatpush2.msra.mxu1 %v1685_v14 }
 0x2ff   : > { %2028 = vmatprep.subr.mxu1 %v1682_v19 }
 0x300   : > { %2029 = vmatpush2.msra.mxu1 %v1681_v63 }
 0x301   : > { %2030 = vmatprep.subr.mxu1 %v1678_v53 }
 0x302   : > { %2031 = vmatpush2.msra.mxu1 %v1677_v2 }
 0x303   : > { %2032 = vmatprep.subr.mxu1 %v1674_v1 }
 0x304   : > { %2033 = vmatpush2.msra.mxu1 %v1673_v5 }
 0x305   : > { %2035 = vmatmul.mubr.f32.vlgmr.msra.gmra.mxu1 %v2784_v20 }
 0x345   : > { %v1823_v25 = vpop.f32.mrf.mxu0 }
 0x346   : > { %v1824_v29 = vadd.f32 %v1823_v25, %v1740_v26 }
 0x347   : > { %v1825_v28 = vpop.f32.mrf.mxu0 }
 0x348   : > { %v1826_v62 = vadd.f32 %v1825_v28, %v1744_v27 }
 0x385   : > { %v1894_v30 = vpop.f32.mrf.mxu1  ;;  %v1965_v33 = vpop.f32.mrf.mxu0 }
 0x386   : > { %v1895_v31 = vadd.f32 %v1894_v30, %v1824_v29  ;;  %v1966_v18 = vadd.f32 %v1965_v33, %v1748_v15 }
 0x387   : > { %v1896_v32 = vpop.f32.mrf.mxu1  ;;  %v1967_v34 = vpop.f32.mrf.mxu0 }
 0x388   : > { %2041 = vst [vmem:[%s350_s11] sm:$0xff] %v1895_v31  ;;  %v1897_v20 = vadd.f32 %v1896_v32, %v1826_v62  ;;  %v1968_v36 = vadd.f32 %v1967_v34, %v1752_v16 }
 0x38a   : > { %2042 = vst [vmem:[%s350_s11 + $0x8] sm:$0xff] %v1897_v20 }
 0x3c5   : > { %v2036_v35 = vpop.f32.mrf.mxu1 }
 0x3c6   : > { %v2037_v37 = vadd.f32 %v2036_v35, %v1966_v18 }
 0x3c7   : > { %v2038_v38 = vpop.f32.mrf.mxu1 }
 0x3c8   : > { %2043 = vst [vmem:[%s350_s11 + $0x10] sm:$0xff] %v2037_v37  ;;  %v2039_v17 = vadd.f32 %v2038_v38, %v1968_v36 }
 0x3ca   : > { %2044 = vst [vmem:[%s350_s11 + $0x18] sm:$0xff] %v2039_v17 }
 0x3cb   : > { %2426 = shalt.err (!%p2423_p11)
}
 0x3cc   : > { %s2427_s2 = scalar_lea.hbm %s2058_s12, 512  ;;  %s2431_s15 = scalar_lea.hbm %s2840_s7, 1024 }
 0x3cd   : > { %p2428_p13 = scmp.ne.s32.totalorder %s2058_s12, %s2427_s2  ;;  %p2432_p4 = scmp.lt.s32.totalorder %s2058_s12, %s2840_s7 }
 0x3ce   : > { %p2433_p6 = scmp.lt.s32.totalorder %s2431_s15, %s2427_s2 }
 0x3cf   : > { %p2429_p1 = pnand %p2428_p13, %p2862_p7 }
 0x3d0   : > { %p2434_p5 = por %p2433_p6, %p2432_p4 }
 0x3d1   : > { %p2430_p3 = pneg %p2429_p1 }
 0x3d3   : > { %p2435_p8 = pnand %p2434_p5, %p2430_p3 }
 0x3d5   : > { %2438 = shalt.err (!%p2435_p8)
}
 0x3d6   : > { %2210 = dma.vmem_to_hbm [thread:$0]  (%p2862_p7), %s2061_s29, 512, %s2058_s12, %s2046_s20  }
 0x3d7 PF: > { %s2072_s11 = sand.u32 1, %s2473_s24   ;;  %p2863_p10 = scmp.ne.s32.totalorder %s2854_s22, 0 }
 0x3d8   : > { %p2864_p0 = scmp.ge.s32.totalorder %s2485_s27, 2  ;;  %s2073_s17 = scalar_lea.sflag [#allocation4], %s2072_s11 }
 0x3da   : > { %p2230_p12 = pnand %p2864_p0, %p2863_p10 }
 0x3dc   : > { %p2231_p2 = pneg %p2230_p12 }
 0x3de   : > { %2468 = dma.done.wait (%p2231_p2), %s2073_s17, 512  }
 0x3df   : > { %2470 = vsyncadd (%p2231_p2), %s2073_s17, 4294966784  ;;  %p22_p9 = scmp.ge.s32.totalorder %s2633_s14, 4   ;;  %s2865_s24 = smov %s2477_s25 }
 0x3e0   : > { %s2866_s25 = smov %s2481_s26  ;;  %s2867_s26 = smov %s2644_s19 }
 0x3e1   : > { %s2868_s27 = smov %s2633_s14  ;;  %24 = sbr.rel (!%p22_p9) target bundleno = 10 (0xa), region = 109 }
 0x3e6   :  { %2078 = vsyncpa [#allocation3], 1 }
 0x3e7   :  { %2080 = vsyncpa [#allocation3 + $0x1], 1 }
 0x3e8   :  { %2081 = vsyncpa [#allocation6], 1 }
 0x3e9   :  { %2082 = vsyncpa [#allocation9], 1 }
 0x3ea   :  { %2083 = vsyncpa [#allocation4], 1 }
 0x3eb   :  { %2085 = vsyncpa [#allocation4 + $0x1], 1 }

</bundles_post_ra>
